<compile_context>
chip_gen: v7x
topology: tpu7x:2x2x1
jax: 0.10.0
libtpu: 0.0.40
codegen_flags: <defaults>
</compile_context>

<pallas_src>
import math

import numpy as np

import jax
import jax.numpy as jnp
from jax.experimental import pallas as pl
from jax.experimental.pallas import tpu as pltpu

F32 = jnp.float32
LN_EPS = 1e-5  # PyTorch LayerNorm / TransformerEncoderLayer default


# ----------------------------------------------------------------------------
# small in-kernel math helpers (traced inside the Pallas kernel)
# ----------------------------------------------------------------------------
def _erf(x):
    # Abramowitz & Stegun 7.1.26 (abs err ~1.5e-7), only Mosaic-safe ops.
    a1, a2, a3, a4, a5 = (0.254829592, -0.284496736, 1.421413741,
                          -1.453152027, 1.061405429)
    p = 0.3275911
    sign = jnp.where(x >= 0.0, 1.0, -1.0)
    ax = jnp.abs(x)
    t = 1.0 / (1.0 + p * ax)
    poly = ((((a5 * t + a4) * t + a3) * t + a2) * t + a1) * t
    return sign * (1.0 - poly * jnp.exp(-ax * ax))


def _gelu_exact(x):
    # matches torch.nn.functional.gelu (approximate='none')
    return 0.5 * x * (1.0 + _erf(x * (1.0 / math.sqrt(2.0))))


def _layernorm(x, g, b, eps=LN_EPS):
    mu = jnp.mean(x, axis=-1, keepdims=True)
    var = jnp.mean(jnp.square(x - mu), axis=-1, keepdims=True)
    return (x - mu) * jax.lax.rsqrt(var + eps) * g + b


def _leaky_relu(x, slope=0.2):
    return jnp.where(x > 0.0, x, slope * x)


# ----------------------------------------------------------------------------
# the fused GT-BEHRT kernel
# ----------------------------------------------------------------------------
def gt_behrt_kernel(idx_ref, table_ref,
                    # visit graph transformer
                    w1_ref, asrc1_ref, adst1_ref, b1g_ref,
                    w2_ref, asrc2_ref, adst2_ref, b2g_ref,
                    lng2_ref, lnb2_ref,
                    # patient transformer
                    pos_ref, plng_ref, plnb_ref,
                    wv_ref, bv_ref, wo_ref, bo_ref,
                    pg1_ref, pb1_ref, wff1_ref, bff1_ref,
                    wff2_ref, bff2_ref, pg2_ref, pb2_ref,
                    # classifier
                    wc1_ref, bc1_ref, clng_ref, clnb_ref,
                    wc2_ref, bc2_ref,
                    out_ref):
    V, N, T = idx_ref.shape
    VOCAB, E = table_ref.shape
    H = w1_ref.shape[1]
    heads = asrc1_ref.shape[1]
    dh = H // heads
    L = wv_ref.shape[0]

    # ---- MEDTOK: mean token embedding per code as a one-hot matmul ---------
    # mean_t(table[idx_t]) == ((sum_t onehot(idx_t)) / T) @ table
    idx = idx_ref[...]                                            # [V,N,T] int32
    iota = jax.lax.broadcasted_iota(jnp.int32, (V, N, VOCAB), 2)
    cnt = jnp.zeros((V, N, VOCAB), F32)
    for t in range(T):                                            # static, tiny
        cnt = cnt + jnp.where(idx[:, :, t:t + 1] == iota, 1.0, 0.0)
    x = jnp.dot(cnt.reshape(V * N, VOCAB), table_ref[...],
                preferred_element_type=F32) * (1.0 / T)           # [V*N, E]

    # ---- VisitGraphTransformer: dense GAT (fully connected + self-loops) ---
    h2d = jnp.dot(x, w1_ref[...], preferred_element_type=F32)     # [V*N, H]
    h3 = h2d.reshape(V, N, H)
    # all heads' attention logits in one matmul vs block-diagonal [H, heads]
    a_src = jnp.dot(h2d, asrc1_ref[...],
                    preferred_element_type=F32).reshape(V, N, heads)
    a_dst = jnp.dot(h2d, adst1_ref[...],
                    preferred_element_type=F32).reshape(V, N, heads)
    head_outs = []
    for hi in range(heads):                                       # static, heads=4
        a_s = jnp.swapaxes(a_src[:, :, hi:hi + 1], 1, 2)          # [V, 1, N] (src)
        a_d = a_dst[:, :, hi:hi + 1]                              # [V, N, 1] (tgt)
        attn = jax.nn.softmax(_leaky_relu(a_d + a_s), axis=-1)    # [V, N, N]
        hh = h3[:, :, hi * dh:(hi + 1) * dh]                      # [V, N, dh]
        head_outs.append(jnp.einsum('vts,vsd->vtd', attn, hh,
                                    preferred_element_type=F32))
    h1 = jnp.concatenate(head_outs, axis=-1) + b1g_ref[...]       # [V, N, H]
    h1 = jnp.maximum(h1, 0.0)                                     # F.relu; dropout=id

    # GAT2 (single head)
    h1_2d = h1.reshape(V * N, H)
    g2d = jnp.dot(h1_2d, w2_ref[...], preferred_element_type=F32)  # [V*N, H]
    g3 = g2d.reshape(V, N, H)
    a_s2 = jnp.swapaxes(
        jnp.dot(g2d, asrc2_ref[...],
                preferred_element_type=F32).reshape(V, N, 1), 1, 2)  # [V, 1, N]
    a_d2 = jnp.dot(g2d, adst2_ref[...],
                   preferred_element_type=F32).reshape(V, N, 1)      # [V, N, 1]
    attn2 = jax.nn.softmax(_leaky_relu(a_d2 + a_s2), axis=-1)        # [V, N, N]
    gat2 = jnp.einsum('vts,vsd->vtd', attn2, g3,
                      preferred_element_type=F32) + b2g_ref[...]     # [V, N, H]
    gat2 = _layernorm(gat2, lng2_ref[...], lnb2_ref[...])            # layer_norm2
    visit_emb = jnp.mean(gat2, axis=1)                               # mean-pool [V, H]

    # ---- PatientTransformer (batch=V, seq_len=1) ----------------------------
    xp = visit_emb + pos_ref[0, 0:1, :]            # + position_embedding[:, :1, :]
    xp = _layernorm(xp, plng_ref[...], plnb_ref[...])
    for l in range(L):                             # static loop over stacked layers
        # seq_len == 1: softmax over one key == 1 -> attention out == V proj.
        v = jnp.dot(xp, wv_ref[l], preferred_element_type=F32) + bv_ref[l]
        attn_out = jnp.dot(v, wo_ref[l], preferred_element_type=F32) + bo_ref[l]
        xp = _layernorm(xp + attn_out, pg1_ref[l], pb1_ref[l])        # norm1 (post)
        ff = _gelu_exact(jnp.dot(xp, wff1_ref[l],
                                 preferred_element_type=F32) + bff1_ref[l])
        ff = jnp.dot(ff, wff2_ref[l], preferred_element_type=F32) + bff2_ref[l]
        xp = _layernorm(xp + ff, pg2_ref[l], pb2_ref[l])              # norm2 (post)

    # ---- classifier: Linear -> LayerNorm -> GELU -> (dropout=id) -> Linear --
    hcls = jnp.dot(xp, wc1_ref[...], preferred_element_type=F32) + bc1_ref[...]
    hcls = _gelu_exact(_layernorm(hcls, clng_ref[...], clnb_ref[...]))
    logits = jnp.dot(hcls, wc2_ref[...], preferred_element_type=F32) + bc2_ref[...]
    out_ref[...] = jax.nn.sigmoid(logits)          # binary_classification head


# ----------------------------------------------------------------------------
# pallas_call wrapper
# ----------------------------------------------------------------------------
def _fullspec(shape):
    n = len(shape)
    return pl.BlockSpec(shape, lambda *_: (0,) * n)


def gt_behrt_forward(patient_data, params):
    # Vectorized MEDTOK index packing: one [V, N, T] int32 array, built on the
    # host (no per-code XLA dispatches).
    visits = patient_data['visits']
    idx = np.asarray([[np.asarray(c['token_indices']) for c in v['codes']]
                      for v in visits], dtype=np.int32)           # [V, N, T]
    V = idx.shape[0]

    vp, pp, cp = params['visit'], params['patient'], params['classifier']
    arrays = [
        jnp.asarray(idx), params['medtok_table'],
        vp['w1'], vp['att_src1'], vp['att_dst1'], vp['b1'],
        vp['w2'], vp['att_src2'], vp['att_dst2'], vp['b2'],
        vp['ln2_g'], vp['ln2_b'],
        pp['pos_emb'], pp['ln_g'], pp['ln_b'],
        pp['wv'], pp['bv'], pp['wo'], pp['bo'],
        pp['g1'], pp['b1'], pp['wff1'], pp['bff1'],
        pp['wff2'], pp['bff2'], pp['g2'], pp['b2'],
        cp['wc1'], cp['bc1'], cp['lng'], cp['lnb'],
        cp['wc2'], cp['bc2'],
    ]
    out_shape = jax.ShapeDtypeStruct((V, 1), F32)
    return pl.pallas_call(
        gt_behrt_kernel,
        out_shape=out_shape,
        grid=(1,),                                   # single fused invocation
        in_specs=[_fullspec(a.shape) for a in arrays],
        out_specs=_fullspec(out_shape.shape),
        compiler_params=pltpu.CompilerParams(
            dimension_semantics=("arbitrary",)),
    )(*arrays)


# ----------------------------------------------------------------------------
# deterministic parameter init (mirrors module __init__ shapes; weights stored
# as [in, out] so kernels compute y = x @ W + b)
# ----------------------------------------------------------------------------
def init_params(key, *, vocab, embed_dim, hidden, num_heads, num_layers):
    dh = hidden // num_heads
    keys = iter(jax.random.split(key, 64))

    def nrm(shape, scale=0.1):
        return (scale * jax.random.normal(next(keys), shape)).astype(F32)

    ones = lambda s: jnp.ones(s, F32)
    zeros = lambda s: jnp.zeros(s, F32)

    # GAT1 attention vectors (PyG shape [heads, dh]) expanded to a
    # block-diagonal [H, heads] matrix so one matmul produces every head's
    # attention logit (equivalent math, no per-head mini-matmuls in-kernel).
    att_src1_raw = nrm((num_heads, dh))
    att_dst1_raw = nrm((num_heads, dh))
    eye = jnp.eye(num_heads, dtype=F32)
    expand = lambda a: (a[:, :, None] * eye[:, None, :]).reshape(hidden, num_heads)

    visit = dict(
        w1=nrm((embed_dim, hidden)),          # GATConv1 lin (heads*dh == hidden)
        att_src1=expand(att_src1_raw),
        att_dst1=expand(att_dst1_raw),
        b1=nrm((1, hidden)),
        w2=nrm((hidden, hidden)),             # GATConv2 (1 head, concat)
        att_src2=nrm((hidden, 1)),
        att_dst2=nrm((hidden, 1)),
        b2=nrm((1, hidden)),
        ln2_g=ones((1, hidden)), ln2_b=zeros((1, hidden)),
    )

    L, H = num_layers, hidden
    patient = dict(
        pos_emb=zeros((1, 512, H)),           # nn.Parameter(torch.zeros(1,512,H))
        ln_g=ones((1, H)), ln_b=zeros((1, H)),
        # seq_len == 1 in this model -> Q/K projections cannot change the
        # output (softmax over one key is 1), so only V / out-proj are kept.
        wv=nrm((L, H, H)), bv=nrm((L, 1, H)),
        wo=nrm((L, H, H)), bo=nrm((L, 1, H)),
        g1=ones((L, 1, H)), b1=zeros((L, 1, H)),
        wff1=nrm((L, H, 4 * H)), bff1=nrm((L, 1, 4 * H)),
        wff2=nrm((L, 4 * H, H)), bff2=nrm((L, 1, H)),
        g2=ones((L, 1, H)), b2=zeros((L, 1, H)),
    )

    classifier = dict(
        wc1=nrm((H, H)), bc1=nrm((1, H)),
        lng=ones((1, H)), lnb=zeros((1, H)),
        wc2=nrm((H, 1)), bc2=nrm((1, 1)),
    )

    return dict(medtok_table=nrm((vocab, embed_dim), scale=0.5),
                visit=visit, patient=patient, classifier=classifier)


# ----------------------------------------------------------------------------
if __name__ == "__main__":
    VOCAB = 64
    EMBED_DIM = 32        # medtok_model.config.embedding_dim
    HIDDEN = 32           # config.hidden_size
    NUM_HEADS = 4         # config.num_heads
    NUM_LAYERS = 2        # config.num_layers (small)
    NUM_VISITS = 3
    CODES_PER_VISIT = 8
    TOKENS_PER_CODE = 4
    # task_type = 'binary_classification'

    key = jax.random.PRNGKey(0)
    key, pkey, dkey = jax.random.split(key, 3)
    params = init_params(pkey, vocab=VOCAB, embed_dim=EMBED_DIM, hidden=HIDDEN,
                         num_heads=NUM_HEADS, num_layers=NUM_LAYERS)

    # patient_data mimics the reference dict-of-visits structure
    visits = []
    for _ in range(NUM_VISITS):
        dkey, sub = jax.random.split(dkey)
        idx = jax.random.randint(sub, (CODES_PER_VISIT, TOKENS_PER_CODE),
                                 0, VOCAB, dtype=jnp.int32)
        visits.append({'codes': [{'token_indices': idx[c]}
                                 for c in range(CODES_PER_VISIT)]})
    patient_data = {'visits': visits}

    preds = gt_behrt_forward(patient_data, params)
    preds = jax.block_until_ready(preds)

    assert preds.shape == (NUM_VISITS, 1), preds.shape
    assert bool(jnp.all(jnp.isfinite(preds)))
    assert bool(jnp.all((preds >= 0.0) & (preds <= 1.0)))   # sigmoid output
    print("KERNEL_OK")
</pallas_src>

<mosaic_0001>
module attributes {stable_mosaic.version = 11 : i64} {
  func.func @gt_behrt_kernel(%arg0: i32, %arg1: memref<3x8x4xi32, #tpu.memory_space<vmem>>, %arg2: memref<64x32xf32, #tpu.memory_space<vmem>>, %arg3: memref<32x32xf32, #tpu.memory_space<vmem>>, %arg4: memref<32x4xf32, #tpu.memory_space<vmem>>, %arg5: memref<32x4xf32, #tpu.memory_space<vmem>>, %arg6: memref<1x32xf32, #tpu.memory_space<vmem>>, %arg7: memref<32x32xf32, #tpu.memory_space<vmem>>, %arg8: memref<32x1xf32, #tpu.memory_space<vmem>>, %arg9: memref<32x1xf32, #tpu.memory_space<vmem>>, %arg10: memref<1x32xf32, #tpu.memory_space<vmem>>, %arg11: memref<1x32xf32, #tpu.memory_space<vmem>>, %arg12: memref<1x32xf32, #tpu.memory_space<vmem>>, %arg13: memref<1x512x32xf32, #tpu.memory_space<vmem>>, %arg14: memref<1x32xf32, #tpu.memory_space<vmem>>, %arg15: memref<1x32xf32, #tpu.memory_space<vmem>>, %arg16: memref<2x32x32xf32, #tpu.memory_space<vmem>>, %arg17: memref<2x1x32xf32, #tpu.memory_space<vmem>>, %arg18: memref<2x32x32xf32, #tpu.memory_space<vmem>>, %arg19: memref<2x1x32xf32, #tpu.memory_space<vmem>>, %arg20: memref<2x1x32xf32, #tpu.memory_space<vmem>>, %arg21: memref<2x1x32xf32, #tpu.memory_space<vmem>>, %arg22: memref<2x32x128xf32, #tpu.memory_space<vmem>>, %arg23: memref<2x1x128xf32, #tpu.memory_space<vmem>>, %arg24: memref<2x128x32xf32, #tpu.memory_space<vmem>>, %arg25: memref<2x1x32xf32, #tpu.memory_space<vmem>>, %arg26: memref<2x1x32xf32, #tpu.memory_space<vmem>>, %arg27: memref<2x1x32xf32, #tpu.memory_space<vmem>>, %arg28: memref<32x32xf32, #tpu.memory_space<vmem>>, %arg29: memref<1x32xf32, #tpu.memory_space<vmem>>, %arg30: memref<1x32xf32, #tpu.memory_space<vmem>>, %arg31: memref<1x32xf32, #tpu.memory_space<vmem>>, %arg32: memref<32x1xf32, #tpu.memory_space<vmem>>, %arg33: memref<1x1xf32, #tpu.memory_space<vmem>>, %arg34: memref<3x1xf32, #tpu.memory_space<vmem>>) attributes {dimension_semantics = [#tpu.dimension_semantics<arbitrary>], iteration_bounds = array<i64: 1>, scalar_prefetch = 0 : i64, scratch_operands = 0 : i64, tpu.core_type = #tpu.core_type<tc>, window_params = [{pipeline_mode = #tpu.pipeline_mode<synchronous>, transform_indices = @transform_0, window_bounds = array<i64: 3, 8, 4>}, {pipeline_mode = #tpu.pipeline_mode<synchronous>, transform_indices = @transform_1, window_bounds = array<i64: 64, 32>}, {pipeline_mode = #tpu.pipeline_mode<synchronous>, transform_indices = @transform_2, window_bounds = array<i64: 32, 32>}, {pipeline_mode = #tpu.pipeline_mode<synchronous>, transform_indices = @transform_3, window_bounds = array<i64: 32, 4>}, {pipeline_mode = #tpu.pipeline_mode<synchronous>, transform_indices = @transform_4, window_bounds = array<i64: 32, 4>}, {pipeline_mode = #tpu.pipeline_mode<synchronous>, transform_indices = @transform_5, window_bounds = array<i64: 1, 32>}, {pipeline_mode = #tpu.pipeline_mode<synchronous>, transform_indices = @transform_6, window_bounds = array<i64: 32, 32>}, {pipeline_mode = #tpu.pipeline_mode<synchronous>, transform_indices = @transform_7, window_bounds = array<i64: 32, 1>}, {pipeline_mode = #tpu.pipeline_mode<synchronous>, transform_indices = @transform_8, window_bounds = array<i64: 32, 1>}, {pipeline_mode = #tpu.pipeline_mode<synchronous>, transform_indices = @transform_9, window_bounds = array<i64: 1, 32>}, {pipeline_mode = #tpu.pipeline_mode<synchronous>, transform_indices = @transform_10, window_bounds = array<i64: 1, 32>}, {pipeline_mode = #tpu.pipeline_mode<synchronous>, transform_indices = @transform_11, window_bounds = array<i64: 1, 32>}, {pipeline_mode = #tpu.pipeline_mode<synchronous>, transform_indices = @transform_12, window_bounds = array<i64: 1, 512, 32>}, {pipeline_mode = #tpu.pipeline_mode<synchronous>, transform_indices = @transform_13, window_bounds = array<i64: 1, 32>}, {pipeline_mode = #tpu.pipeline_mode<synchronous>, transform_indices = @transform_14, window_bounds = array<i64: 1, 32>}, {pipeline_mode = #tpu.pipeline_mode<synchronous>, transform_indices = @transform_15, window_bounds = array<i64: 2, 32, 32>}, {pipeline_mode = #tpu.pipeline_mode<synchronous>, transform_indices = @transform_16, window_bounds = array<i64: 2, 1, 32>}, {pipeline_mode = #tpu.pipeline_mode<synchronous>, transform_indices = @transform_17, window_bounds = array<i64: 2, 32, 32>}, {pipeline_mode = #tpu.pipeline_mode<synchronous>, transform_indices = @transform_18, window_bounds = array<i64: 2, 1, 32>}, {pipeline_mode = #tpu.pipeline_mode<synchronous>, transform_indices = @transform_19, window_bounds = array<i64: 2, 1, 32>}, {pipeline_mode = #tpu.pipeline_mode<synchronous>, transform_indices = @transform_20, window_bounds = array<i64: 2, 1, 32>}, {pipeline_mode = #tpu.pipeline_mode<synchronous>, transform_indices = @transform_21, window_bounds = array<i64: 2, 32, 128>}, {pipeline_mode = #tpu.pipeline_mode<synchronous>, transform_indices = @transform_22, window_bounds = array<i64: 2, 1, 128>}, {pipeline_mode = #tpu.pipeline_mode<synchronous>, transform_indices = @transform_23, window_bounds = array<i64: 2, 128, 32>}, {pipeline_mode = #tpu.pipeline_mode<synchronous>, transform_indices = @transform_24, window_bounds = array<i64: 2, 1, 32>}, {pipeline_mode = #tpu.pipeline_mode<synchronous>, transform_indices = @transform_25, window_bounds = array<i64: 2, 1, 32>}, {pipeline_mode = #tpu.pipeline_mode<synchronous>, transform_indices = @transform_26, window_bounds = array<i64: 2, 1, 32>}, {pipeline_mode = #tpu.pipeline_mode<synchronous>, transform_indices = @transform_27, window_bounds = array<i64: 32, 32>}, {pipeline_mode = #tpu.pipeline_mode<synchronous>, transform_indices = @transform_28, window_bounds = array<i64: 1, 32>}, {pipeline_mode = #tpu.pipeline_mode<synchronous>, transform_indices = @transform_29, window_bounds = array<i64: 1, 32>}, {pipeline_mode = #tpu.pipeline_mode<synchronous>, transform_indices = @transform_30, window_bounds = array<i64: 1, 32>}, {pipeline_mode = #tpu.pipeline_mode<synchronous>, transform_indices = @transform_31, window_bounds = array<i64: 32, 1>}, {pipeline_mode = #tpu.pipeline_mode<synchronous>, transform_indices = @transform_32, window_bounds = array<i64: 1, 1>}, {pipeline_mode = #tpu.pipeline_mode<synchronous>, transform_indices = @transform_33, window_bounds = array<i64: 3, 1>}]} {
    %c0 = arith.constant 0 : index
    %c0_0 = arith.constant 0 : index
    %c0_1 = arith.constant 0 : index
    %0 = vector.load %arg1[%c0, %c0_0, %c0_1] : memref<3x8x4xi32, #tpu.memory_space<vmem>>, vector<3x8x4xi32>
    %1 = tpu.iota {dimensions = array<i32: 2>} : vector<3x8x64xi32>
    %cst = arith.constant 0.000000e+00 : f32
    %2 = vector.broadcast %cst : f32 to vector<3x8x64xf32>
    %3 = vector.extract_strided_slice %0 {offsets = [0, 0, 0], sizes = [3, 8, 1], strides = [1, 1, 1]} : vector<3x8x4xi32> to vector<3x8x1xi32>
    %4 = vector.broadcast %3 : vector<3x8x1xi32> to vector<3x8x64xi32>
    %5 = arith.cmpi eq, %4, %1 : vector<3x8x64xi32>
    %cst_2 = arith.constant 1.000000e+00 : f32
    %cst_3 = arith.constant 0.000000e+00 : f32
    %6 = vector.broadcast %cst_2 : f32 to vector<3x8x64xf32>
    %7 = vector.broadcast %cst_3 : f32 to vector<3x8x64xf32>
    %8 = arith.select %5, %6, %7 : vector<3x8x64xi1>, vector<3x8x64xf32>
    %9 = arith.addf %2, %8 : vector<3x8x64xf32>
    %10 = vector.extract_strided_slice %0 {offsets = [0, 0, 1], sizes = [3, 8, 1], strides = [1, 1, 1]} : vector<3x8x4xi32> to vector<3x8x1xi32>
    %11 = vector.broadcast %10 : vector<3x8x1xi32> to vector<3x8x64xi32>
    %12 = arith.cmpi eq, %11, %1 : vector<3x8x64xi32>
    %cst_4 = arith.constant 1.000000e+00 : f32
    %cst_5 = arith.constant 0.000000e+00 : f32
    %13 = vector.broadcast %cst_4 : f32 to vector<3x8x64xf32>
    %14 = vector.broadcast %cst_5 : f32 to vector<3x8x64xf32>
    %15 = arith.select %12, %13, %14 : vector<3x8x64xi1>, vector<3x8x64xf32>
    %16 = arith.addf %9, %15 : vector<3x8x64xf32>
    %17 = vector.extract_strided_slice %0 {offsets = [0, 0, 2], sizes = [3, 8, 1], strides = [1, 1, 1]} : vector<3x8x4xi32> to vector<3x8x1xi32>
    %18 = vector.broadcast %17 : vector<3x8x1xi32> to vector<3x8x64xi32>
    %19 = arith.cmpi eq, %18, %1 : vector<3x8x64xi32>
    %cst_6 = arith.constant 1.000000e+00 : f32
    %cst_7 = arith.constant 0.000000e+00 : f32
    %20 = vector.broadcast %cst_6 : f32 to vector<3x8x64xf32>
    %21 = vector.broadcast %cst_7 : f32 to vector<3x8x64xf32>
    %22 = arith.select %19, %20, %21 : vector<3x8x64xi1>, vector<3x8x64xf32>
    %23 = arith.addf %16, %22 : vector<3x8x64xf32>
    %24 = vector.extract_strided_slice %0 {offsets = [0, 0, 3], sizes = [3, 8, 1], strides = [1, 1, 1]} : vector<3x8x4xi32> to vector<3x8x1xi32>
    %25 = vector.broadcast %24 : vector<3x8x1xi32> to vector<3x8x64xi32>
    %26 = arith.cmpi eq, %25, %1 : vector<3x8x64xi32>
    %cst_8 = arith.constant 1.000000e+00 : f32
    %cst_9 = arith.constant 0.000000e+00 : f32
    %27 = vector.broadcast %cst_8 : f32 to vector<3x8x64xf32>
    %28 = vector.broadcast %cst_9 : f32 to vector<3x8x64xf32>
    %29 = arith.select %26, %27, %28 : vector<3x8x64xi1>, vector<3x8x64xf32>
    %30 = arith.addf %23, %29 : vector<3x8x64xf32>
    %31 = vector.shape_cast %30 : vector<3x8x64xf32> to vector<24x64xf32>
    %c0_10 = arith.constant 0 : index
    %c0_11 = arith.constant 0 : index
    %32 = vector.load %arg2[%c0_10, %c0_11] : memref<64x32xf32, #tpu.memory_space<vmem>>, vector<64x32xf32>
    %cst_12 = arith.constant dense<0.000000e+00> : vector<24x32xf32>
    %33 = tpu.matmul %31, %32, %cst_12 {dimension_numbers = #tpu.dot_dimension_numbers<[1], [0], [0], [1], [0, 0, 1, 1], [], []>} : vector<24x64xf32>, vector<64x32xf32>, vector<24x32xf32> -> vector<24x32xf32>
    %cst_13 = arith.constant 2.500000e-01 : f32
    %34 = vector.broadcast %cst_13 : f32 to vector<24x32xf32>
    %35 = arith.mulf %33, %34 : vector<24x32xf32>
    %c0_14 = arith.constant 0 : index
    %c0_15 = arith.constant 0 : index
    %36 = vector.load %arg3[%c0_14, %c0_15] : memref<32x32xf32, #tpu.memory_space<vmem>>, vector<32x32xf32>
    %cst_16 = arith.constant dense<0.000000e+00> : vector<24x32xf32>
    %37 = tpu.matmul %35, %36, %cst_16 {dimension_numbers = #tpu.dot_dimension_numbers<[1], [0], [0], [1], [0, 0, 1, 1], [], []>} : vector<24x32xf32>, vector<32x32xf32>, vector<24x32xf32> -> vector<24x32xf32>
    %38 = vector.shape_cast %37 : vector<24x32xf32> to vector<3x8x32xf32>
    %c0_17 = arith.constant 0 : index
    %c0_18 = arith.constant 0 : index
    %39 = vector.load %arg4[%c0_17, %c0_18] : memref<32x4xf32, #tpu.memory_space<vmem>>, vector<32x4xf32>
    %cst_19 = arith.constant dense<0.000000e+00> : vector<24x4xf32>
    %40 = tpu.matmul %37, %39, %cst_19 {dimension_numbers = #tpu.dot_dimension_numbers<[1], [0], [0], [1], [0, 0, 1, 1], [], []>} : vector<24x32xf32>, vector<32x4xf32>, vector<24x4xf32> -> vector<24x4xf32>
    %41 = vector.shape_cast %40 : vector<24x4xf32> to vector<3x8x4xf32>
    %c0_20 = arith.constant 0 : index
    %c0_21 = arith.constant 0 : index
    %42 = vector.load %arg5[%c0_20, %c0_21] : memref<32x4xf32, #tpu.memory_space<vmem>>, vector<32x4xf32>
    %cst_22 = arith.constant dense<0.000000e+00> : vector<24x4xf32>
    %43 = tpu.matmul %37, %42, %cst_22 {dimension_numbers = #tpu.dot_dimension_numbers<[1], [0], [0], [1], [0, 0, 1, 1], [], []>} : vector<24x32xf32>, vector<32x4xf32>, vector<24x4xf32> -> vector<24x4xf32>
    %44 = vector.shape_cast %43 : vector<24x4xf32> to vector<3x8x4xf32>
    %45 = vector.extract_strided_slice %41 {offsets = [0, 0, 0], sizes = [3, 8, 1], strides = [1, 1, 1]} : vector<3x8x4xf32> to vector<3x8x1xf32>
    %46 = tpu.transpose %45, [0, 2, 1] : vector<3x8x1xf32> -> vector<3x1x8xf32>
    %47 = vector.extract_strided_slice %44 {offsets = [0, 0, 0], sizes = [3, 8, 1], strides = [1, 1, 1]} : vector<3x8x4xf32> to vector<3x8x1xf32>
    %48 = vector.broadcast %47 : vector<3x8x1xf32> to vector<3x8x8xf32>
    %49 = vector.broadcast %46 : vector<3x1x8xf32> to vector<3x8x8xf32>
    %50 = arith.addf %48, %49 : vector<3x8x8xf32>
    %cst_23 = arith.constant 0.000000e+00 : f32
    %51 = vector.broadcast %cst_23 : f32 to vector<3x8x8xf32>
    %52 = arith.cmpf ogt, %50, %51 : vector<3x8x8xf32>
    %cst_24 = arith.constant 2.000000e-01 : f32
    %53 = vector.broadcast %cst_24 : f32 to vector<3x8x8xf32>
    %54 = arith.mulf %53, %50 : vector<3x8x8xf32>
    %55 = arith.select %52, %50, %54 : vector<3x8x8xi1>, vector<3x8x8xf32>
    %cst_25 = arith.constant dense<0xFF800000> : vector<3x8xf32>
    %56 = vector.multi_reduction <maximumf>, %55, %cst_25 [2] : vector<3x8x8xf32> to vector<3x8xf32>
    %cst_26 = arith.constant 0xFF800000 : f32
    %57 = vector.broadcast %cst_26 : f32 to vector<3x8xf32>
    %58 = arith.maximumf %57, %56 : vector<3x8xf32>
    %59 = vector.shape_cast %58 : vector<3x8xf32> to vector<3x8x1xf32>
    %60 = vector.broadcast %59 : vector<3x8x1xf32> to vector<3x8x8xf32>
    %61 = arith.subf %55, %60 : vector<3x8x8xf32>
    %62 = math.exp %61 : vector<3x8x8xf32>
    %cst_27 = arith.constant dense<0.000000e+00> : vector<3x8xf32>
    %63 = vector.multi_reduction <add>, %62, %cst_27 [2] : vector<3x8x8xf32> to vector<3x8xf32>
    %64 = vector.shape_cast %63 : vector<3x8xf32> to vector<3x8x1xf32>
    %65 = vector.broadcast %64 : vector<3x8x1xf32> to vector<3x8x8xf32>
    %66 = arith.divf %62, %65 : vector<3x8x8xf32>
    %67 = vector.extract_strided_slice %38 {offsets = [0, 0, 0], sizes = [3, 8, 8], strides = [1, 1, 1]} : vector<3x8x32xf32> to vector<3x8x8xf32>
    "tpu.trace_start"() <{level = 10 : i32, message = "vts,vsd->vtd"}> : () -> ()
    %cst_28 = arith.constant dense<0.000000e+00> : vector<3x8x8xf32>
    %68 = tpu.matmul %66, %67, %cst_28 {dimension_numbers = #tpu.dot_dimension_numbers<[2], [1], [1], [2], [0, 0, 0, 1, 1, 2], [0], [0]>} : vector<3x8x8xf32>, vector<3x8x8xf32>, vector<3x8x8xf32> -> vector<3x8x8xf32>
    "tpu.trace_stop"() : () -> ()
    %69 = vector.extract_strided_slice %41 {offsets = [0, 0, 1], sizes = [3, 8, 1], strides = [1, 1, 1]} : vector<3x8x4xf32> to vector<3x8x1xf32>
    %70 = tpu.transpose %69, [0, 2, 1] : vector<3x8x1xf32> -> vector<3x1x8xf32>
    %71 = vector.extract_strided_slice %44 {offsets = [0, 0, 1], sizes = [3, 8, 1], strides = [1, 1, 1]} : vector<3x8x4xf32> to vector<3x8x1xf32>
    %72 = vector.broadcast %71 : vector<3x8x1xf32> to vector<3x8x8xf32>
    %73 = vector.broadcast %70 : vector<3x1x8xf32> to vector<3x8x8xf32>
    %74 = arith.addf %72, %73 : vector<3x8x8xf32>
    %cst_29 = arith.constant 0.000000e+00 : f32
    %75 = vector.broadcast %cst_29 : f32 to vector<3x8x8xf32>
    %76 = arith.cmpf ogt, %74, %75 : vector<3x8x8xf32>
    %cst_30 = arith.constant 2.000000e-01 : f32
    %77 = vector.broadcast %cst_30 : f32 to vector<3x8x8xf32>
    %78 = arith.mulf %77, %74 : vector<3x8x8xf32>
    %79 = arith.select %76, %74, %78 : vector<3x8x8xi1>, vector<3x8x8xf32>
    %cst_31 = arith.constant dense<0xFF800000> : vector<3x8xf32>
    %80 = vector.multi_reduction <maximumf>, %79, %cst_31 [2] : vector<3x8x8xf32> to vector<3x8xf32>
    %cst_32 = arith.constant 0xFF800000 : f32
    %81 = vector.broadcast %cst_32 : f32 to vector<3x8xf32>
    %82 = arith.maximumf %81, %80 : vector<3x8xf32>
    %83 = vector.shape_cast %82 : vector<3x8xf32> to vector<3x8x1xf32>
    %84 = vector.broadcast %83 : vector<3x8x1xf32> to vector<3x8x8xf32>
    %85 = arith.subf %79, %84 : vector<3x8x8xf32>
    %86 = math.exp %85 : vector<3x8x8xf32>
    %cst_33 = arith.constant dense<0.000000e+00> : vector<3x8xf32>
    %87 = vector.multi_reduction <add>, %86, %cst_33 [2] : vector<3x8x8xf32> to vector<3x8xf32>
    %88 = vector.shape_cast %87 : vector<3x8xf32> to vector<3x8x1xf32>
    %89 = vector.broadcast %88 : vector<3x8x1xf32> to vector<3x8x8xf32>
    %90 = arith.divf %86, %89 : vector<3x8x8xf32>
    %91 = vector.extract_strided_slice %38 {offsets = [0, 0, 8], sizes = [3, 8, 8], strides = [1, 1, 1]} : vector<3x8x32xf32> to vector<3x8x8xf32>
    "tpu.trace_start"() <{level = 10 : i32, message = "vts,vsd->vtd"}> : () -> ()
    %cst_34 = arith.constant dense<0.000000e+00> : vector<3x8x8xf32>
    %92 = tpu.matmul %90, %91, %cst_34 {dimension_numbers = #tpu.dot_dimension_numbers<[2], [1], [1], [2], [0, 0, 0, 1, 1, 2], [0], [0]>} : vector<3x8x8xf32>, vector<3x8x8xf32>, vector<3x8x8xf32> -> vector<3x8x8xf32>
    "tpu.trace_stop"() : () -> ()
    %93 = vector.extract_strided_slice %41 {offsets = [0, 0, 2], sizes = [3, 8, 1], strides = [1, 1, 1]} : vector<3x8x4xf32> to vector<3x8x1xf32>
    %94 = tpu.transpose %93, [0, 2, 1] : vector<3x8x1xf32> -> vector<3x1x8xf32>
    %95 = vector.extract_strided_slice %44 {offsets = [0, 0, 2], sizes = [3, 8, 1], strides = [1, 1, 1]} : vector<3x8x4xf32> to vector<3x8x1xf32>
    %96 = vector.broadcast %95 : vector<3x8x1xf32> to vector<3x8x8xf32>
    %97 = vector.broadcast %94 : vector<3x1x8xf32> to vector<3x8x8xf32>
    %98 = arith.addf %96, %97 : vector<3x8x8xf32>
    %cst_35 = arith.constant 0.000000e+00 : f32
    %99 = vector.broadcast %cst_35 : f32 to vector<3x8x8xf32>
    %100 = arith.cmpf ogt, %98, %99 : vector<3x8x8xf32>
    %cst_36 = arith.constant 2.000000e-01 : f32
    %101 = vector.broadcast %cst_36 : f32 to vector<3x8x8xf32>
    %102 = arith.mulf %101, %98 : vector<3x8x8xf32>
    %103 = arith.select %100, %98, %102 : vector<3x8x8xi1>, vector<3x8x8xf32>
    %cst_37 = arith.constant dense<0xFF800000> : vector<3x8xf32>
    %104 = vector.multi_reduction <maximumf>, %103, %cst_37 [2] : vector<3x8x8xf32> to vector<3x8xf32>
    %cst_38 = arith.constant 0xFF800000 : f32
    %105 = vector.broadcast %cst_38 : f32 to vector<3x8xf32>
    %106 = arith.maximumf %105, %104 : vector<3x8xf32>
    %107 = vector.shape_cast %106 : vector<3x8xf32> to vector<3x8x1xf32>
    %108 = vector.broadcast %107 : vector<3x8x1xf32> to vector<3x8x8xf32>
    %109 = arith.subf %103, %108 : vector<3x8x8xf32>
    %110 = math.exp %109 : vector<3x8x8xf32>
    %cst_39 = arith.constant dense<0.000000e+00> : vector<3x8xf32>
    %111 = vector.multi_reduction <add>, %110, %cst_39 [2] : vector<3x8x8xf32> to vector<3x8xf32>
    %112 = vector.shape_cast %111 : vector<3x8xf32> to vector<3x8x1xf32>
    %113 = vector.broadcast %112 : vector<3x8x1xf32> to vector<3x8x8xf32>
    %114 = arith.divf %110, %113 : vector<3x8x8xf32>
    %115 = vector.extract_strided_slice %38 {offsets = [0, 0, 16], sizes = [3, 8, 8], strides = [1, 1, 1]} : vector<3x8x32xf32> to vector<3x8x8xf32>
    "tpu.trace_start"() <{level = 10 : i32, message = "vts,vsd->vtd"}> : () -> ()
    %cst_40 = arith.constant dense<0.000000e+00> : vector<3x8x8xf32>
    %116 = tpu.matmul %114, %115, %cst_40 {dimension_numbers = #tpu.dot_dimension_numbers<[2], [1], [1], [2], [0, 0, 0, 1, 1, 2], [0], [0]>} : vector<3x8x8xf32>, vector<3x8x8xf32>, vector<3x8x8xf32> -> vector<3x8x8xf32>
    "tpu.trace_stop"() : () -> ()
    %117 = vector.extract_strided_slice %41 {offsets = [0, 0, 3], sizes = [3, 8, 1], strides = [1, 1, 1]} : vector<3x8x4xf32> to vector<3x8x1xf32>
    %118 = tpu.transpose %117, [0, 2, 1] : vector<3x8x1xf32> -> vector<3x1x8xf32>
    %119 = vector.extract_strided_slice %44 {offsets = [0, 0, 3], sizes = [3, 8, 1], strides = [1, 1, 1]} : vector<3x8x4xf32> to vector<3x8x1xf32>
    %120 = vector.broadcast %119 : vector<3x8x1xf32> to vector<3x8x8xf32>
    %121 = vector.broadcast %118 : vector<3x1x8xf32> to vector<3x8x8xf32>
    %122 = arith.addf %120, %121 : vector<3x8x8xf32>
    %cst_41 = arith.constant 0.000000e+00 : f32
    %123 = vector.broadcast %cst_41 : f32 to vector<3x8x8xf32>
    %124 = arith.cmpf ogt, %122, %123 : vector<3x8x8xf32>
    %cst_42 = arith.constant 2.000000e-01 : f32
    %125 = vector.broadcast %cst_42 : f32 to vector<3x8x8xf32>
    %126 = arith.mulf %125, %122 : vector<3x8x8xf32>
    %127 = arith.select %124, %122, %126 : vector<3x8x8xi1>, vector<3x8x8xf32>
    %cst_43 = arith.constant dense<0xFF800000> : vector<3x8xf32>
    %128 = vector.multi_reduction <maximumf>, %127, %cst_43 [2] : vector<3x8x8xf32> to vector<3x8xf32>
    %cst_44 = arith.constant 0xFF800000 : f32
    %129 = vector.broadcast %cst_44 : f32 to vector<3x8xf32>
    %130 = arith.maximumf %129, %128 : vector<3x8xf32>
    %131 = vector.shape_cast %130 : vector<3x8xf32> to vector<3x8x1xf32>
    %132 = vector.broadcast %131 : vector<3x8x1xf32> to vector<3x8x8xf32>
    %133 = arith.subf %127, %132 : vector<3x8x8xf32>
    %134 = math.exp %133 : vector<3x8x8xf32>
    %cst_45 = arith.constant dense<0.000000e+00> : vector<3x8xf32>
    %135 = vector.multi_reduction <add>, %134, %cst_45 [2] : vector<3x8x8xf32> to vector<3x8xf32>
    %136 = vector.shape_cast %135 : vector<3x8xf32> to vector<3x8x1xf32>
    %137 = vector.broadcast %136 : vector<3x8x1xf32> to vector<3x8x8xf32>
    %138 = arith.divf %134, %137 : vector<3x8x8xf32>
    %139 = vector.extract_strided_slice %38 {offsets = [0, 0, 24], sizes = [3, 8, 8], strides = [1, 1, 1]} : vector<3x8x32xf32> to vector<3x8x8xf32>
    "tpu.trace_start"() <{level = 10 : i32, message = "vts,vsd->vtd"}> : () -> ()
    %cst_46 = arith.constant dense<0.000000e+00> : vector<3x8x8xf32>
    %140 = tpu.matmul %138, %139, %cst_46 {dimension_numbers = #tpu.dot_dimension_numbers<[2], [1], [1], [2], [0, 0, 0, 1, 1, 2], [0], [0]>} : vector<3x8x8xf32>, vector<3x8x8xf32>, vector<3x8x8xf32> -> vector<3x8x8xf32>
    "tpu.trace_stop"() : () -> ()
    %141 = tpu.concatenate %68, %92, %116, %140 in 2 : vector<3x8x8xf32>, vector<3x8x8xf32>, vector<3x8x8xf32>, vector<3x8x8xf32> -> vector<3x8x32xf32>
    %c0_47 = arith.constant 0 : index
    %c0_48 = arith.constant 0 : index
    %142 = vector.load %arg6[%c0_47, %c0_48] : memref<1x32xf32, #tpu.memory_space<vmem>>, vector<1x32xf32>
    %143 = vector.shape_cast %142 : vector<1x32xf32> to vector<1x1x32xf32>
    %144 = vector.broadcast %143 : vector<1x1x32xf32> to vector<3x8x32xf32>
    %145 = arith.addf %141, %144 : vector<3x8x32xf32>
    %cst_49 = arith.constant 0.000000e+00 : f32
    %146 = vector.broadcast %cst_49 : f32 to vector<3x8x32xf32>
    %147 = arith.maximumf %145, %146 : vector<3x8x32xf32>
    %148 = vector.shape_cast %147 : vector<3x8x32xf32> to vector<24x32xf32>
    %c0_50 = arith.constant 0 : index
    %c0_51 = arith.constant 0 : index
    %149 = vector.load %arg7[%c0_50, %c0_51] : memref<32x32xf32, #tpu.memory_space<vmem>>, vector<32x32xf32>
    %cst_52 = arith.constant dense<0.000000e+00> : vector<24x32xf32>
    %150 = tpu.matmul %148, %149, %cst_52 {dimension_numbers = #tpu.dot_dimension_numbers<[1], [0], [0], [1], [0, 0, 1, 1], [], []>} : vector<24x32xf32>, vector<32x32xf32>, vector<24x32xf32> -> vector<24x32xf32>
    %151 = vector.shape_cast %150 : vector<24x32xf32> to vector<3x8x32xf32>
    %c0_53 = arith.constant 0 : index
    %c0_54 = arith.constant 0 : index
    %152 = vector.load %arg8[%c0_53, %c0_54] : memref<32x1xf32, #tpu.memory_space<vmem>>, vector<32x1xf32>
    %cst_55 = arith.constant dense<0.000000e+00> : vector<24x1xf32>
    %153 = tpu.matmul %150, %152, %cst_55 {dimension_numbers = #tpu.dot_dimension_numbers<[1], [0], [0], [1], [0, 0, 1, 1], [], []>} : vector<24x32xf32>, vector<32x1xf32>, vector<24x1xf32> -> vector<24x1xf32>
    %154 = vector.shape_cast %153 : vector<24x1xf32> to vector<3x8x1xf32>
    %155 = tpu.transpose %154, [0, 2, 1] : vector<3x8x1xf32> -> vector<3x1x8xf32>
    %c0_56 = arith.constant 0 : index
    %c0_57 = arith.constant 0 : index
    %156 = vector.load %arg9[%c0_56, %c0_57] : memref<32x1xf32, #tpu.memory_space<vmem>>, vector<32x1xf32>
    %cst_58 = arith.constant dense<0.000000e+00> : vector<24x1xf32>
    %157 = tpu.matmul %150, %156, %cst_58 {dimension_numbers = #tpu.dot_dimension_numbers<[1], [0], [0], [1], [0, 0, 1, 1], [], []>} : vector<24x32xf32>, vector<32x1xf32>, vector<24x1xf32> -> vector<24x1xf32>
    %158 = vector.shape_cast %157 : vector<24x1xf32> to vector<3x8x1xf32>
    %159 = vector.broadcast %158 : vector<3x8x1xf32> to vector<3x8x8xf32>
    %160 = vector.broadcast %155 : vector<3x1x8xf32> to vector<3x8x8xf32>
    %161 = arith.addf %159, %160 : vector<3x8x8xf32>
    %cst_59 = arith.constant 0.000000e+00 : f32
    %162 = vector.broadcast %cst_59 : f32 to vector<3x8x8xf32>
    %163 = arith.cmpf ogt, %161, %162 : vector<3x8x8xf32>
    %cst_60 = arith.constant 2.000000e-01 : f32
    %164 = vector.broadcast %cst_60 : f32 to vector<3x8x8xf32>
    %165 = arith.mulf %164, %161 : vector<3x8x8xf32>
    %166 = arith.select %163, %161, %165 : vector<3x8x8xi1>, vector<3x8x8xf32>
    %cst_61 = arith.constant dense<0xFF800000> : vector<3x8xf32>
    %167 = vector.multi_reduction <maximumf>, %166, %cst_61 [2] : vector<3x8x8xf32> to vector<3x8xf32>
    %cst_62 = arith.constant 0xFF800000 : f32
    %168 = vector.broadcast %cst_62 : f32 to vector<3x8xf32>
    %169 = arith.maximumf %168, %167 : vector<3x8xf32>
    %170 = vector.shape_cast %169 : vector<3x8xf32> to vector<3x8x1xf32>
    %171 = vector.broadcast %170 : vector<3x8x1xf32> to vector<3x8x8xf32>
    %172 = arith.subf %166, %171 : vector<3x8x8xf32>
    %173 = math.exp %172 : vector<3x8x8xf32>
    %cst_63 = arith.constant dense<0.000000e+00> : vector<3x8xf32>
    %174 = vector.multi_reduction <add>, %173, %cst_63 [2] : vector<3x8x8xf32> to vector<3x8xf32>
    %175 = vector.shape_cast %174 : vector<3x8xf32> to vector<3x8x1xf32>
    %176 = vector.broadcast %175 : vector<3x8x1xf32> to vector<3x8x8xf32>
    %177 = arith.divf %173, %176 : vector<3x8x8xf32>
    "tpu.trace_start"() <{level = 10 : i32, message = "vts,vsd->vtd"}> : () -> ()
    %cst_64 = arith.constant dense<0.000000e+00> : vector<3x8x32xf32>
    %178 = tpu.matmul %177, %151, %cst_64 {dimension_numbers = #tpu.dot_dimension_numbers<[2], [1], [1], [2], [0, 0, 0, 1, 1, 2], [0], [0]>} : vector<3x8x8xf32>, vector<3x8x32xf32>, vector<3x8x32xf32> -> vector<3x8x32xf32>
    "tpu.trace_stop"() : () -> ()
    %c0_65 = arith.constant 0 : index
    %c0_66 = arith.constant 0 : index
    %179 = vector.load %arg10[%c0_65, %c0_66] : memref<1x32xf32, #tpu.memory_space<vmem>>, vector<1x32xf32>
    %180 = vector.shape_cast %179 : vector<1x32xf32> to vector<1x1x32xf32>
    %181 = vector.broadcast %180 : vector<1x1x32xf32> to vector<3x8x32xf32>
    %182 = arith.addf %178, %181 : vector<3x8x32xf32>
    %c0_67 = arith.constant 0 : index
    %c0_68 = arith.constant 0 : index
    %183 = vector.load %arg11[%c0_67, %c0_68] : memref<1x32xf32, #tpu.memory_space<vmem>>, vector<1x32xf32>
    %c0_69 = arith.constant 0 : index
    %c0_70 = arith.constant 0 : index
    %184 = vector.load %arg12[%c0_69, %c0_70] : memref<1x32xf32, #tpu.memory_space<vmem>>, vector<1x32xf32>
    %cst_71 = arith.constant dense<0.000000e+00> : vector<3x8xf32>
    %185 = vector.multi_reduction <add>, %182, %cst_71 [2] : vector<3x8x32xf32> to vector<3x8xf32>
    %186 = vector.shape_cast %185 : vector<3x8xf32> to vector<3x8x1xf32>
    %cst_72 = arith.constant 3.200000e+01 : f32
    %187 = vector.broadcast %cst_72 : f32 to vector<3x8x1xf32>
    %188 = arith.divf %186, %187 : vector<3x8x1xf32>
    %189 = vector.broadcast %188 : vector<3x8x1xf32> to vector<3x8x32xf32>
    %190 = arith.subf %182, %189 : vector<3x8x32xf32>
    %191 = arith.mulf %190, %190 : vector<3x8x32xf32>
    %cst_73 = arith.constant dense<0.000000e+00> : vector<3x8xf32>
    %192 = vector.multi_reduction <add>, %191, %cst_73 [2] : vector<3x8x32xf32> to vector<3x8xf32>
    %193 = vector.shape_cast %192 : vector<3x8xf32> to vector<3x8x1xf32>
    %cst_74 = arith.constant 3.200000e+01 : f32
    %194 = vector.broadcast %cst_74 : f32 to vector<3x8x1xf32>
    %195 = arith.divf %193, %194 : vector<3x8x1xf32>
    %196 = vector.broadcast %188 : vector<3x8x1xf32> to vector<3x8x32xf32>
    %197 = arith.subf %182, %196 : vector<3x8x32xf32>
    %cst_75 = arith.constant 9.99999974E-6 : f32
    %198 = vector.broadcast %cst_75 : f32 to vector<3x8x1xf32>
    %199 = arith.addf %195, %198 : vector<3x8x1xf32>
    %200 = math.rsqrt %199 : vector<3x8x1xf32>
    %201 = vector.broadcast %200 : vector<3x8x1xf32> to vector<3x8x32xf32>
    %202 = arith.mulf %197, %201 : vector<3x8x32xf32>
    %203 = vector.shape_cast %183 : vector<1x32xf32> to vector<1x1x32xf32>
    %204 = vector.broadcast %203 : vector<1x1x32xf32> to vector<3x8x32xf32>
    %205 = arith.mulf %202, %204 : vector<3x8x32xf32>
    %206 = vector.shape_cast %184 : vector<1x32xf32> to vector<1x1x32xf32>
    %207 = vector.broadcast %206 : vector<1x1x32xf32> to vector<3x8x32xf32>
    %208 = arith.addf %205, %207 : vector<3x8x32xf32>
    %cst_76 = arith.constant dense<0.000000e+00> : vector<3x32xf32>
    %209 = vector.multi_reduction <add>, %208, %cst_76 [1] : vector<3x8x32xf32> to vector<3x32xf32>
    %cst_77 = arith.constant 8.000000e+00 : f32
    %210 = vector.broadcast %cst_77 : f32 to vector<3x32xf32>
    %211 = arith.divf %209, %210 : vector<3x32xf32>
    %c0_78 = arith.constant 0 : index
    %c0_79 = arith.constant 0 : index
    %c0_80 = arith.constant 0 : index
    %212 = vector.load %arg13[%c0_78, %c0_79, %c0_80] : memref<1x512x32xf32, #tpu.memory_space<vmem>>, vector<1x1x32xf32>
    %213 = vector.shape_cast %212 : vector<1x1x32xf32> to vector<1x32xf32>
    %214 = vector.broadcast %213 : vector<1x32xf32> to vector<3x32xf32>
    %215 = arith.addf %211, %214 : vector<3x32xf32>
    %c0_81 = arith.constant 0 : index
    %c0_82 = arith.constant 0 : index
    %216 = vector.load %arg14[%c0_81, %c0_82] : memref<1x32xf32, #tpu.memory_space<vmem>>, vector<1x32xf32>
    %c0_83 = arith.constant 0 : index
    %c0_84 = arith.constant 0 : index
    %217 = vector.load %arg15[%c0_83, %c0_84] : memref<1x32xf32, #tpu.memory_space<vmem>>, vector<1x32xf32>
    %cst_85 = arith.constant dense<0.000000e+00> : vector<3xf32>
    %218 = vector.multi_reduction <add>, %215, %cst_85 [1] : vector<3x32xf32> to vector<3xf32>
    %219 = vector.shape_cast %218 : vector<3xf32> to vector<3x1xf32>
    %cst_86 = arith.constant 3.200000e+01 : f32
    %220 = vector.broadcast %cst_86 : f32 to vector<3x1xf32>
    %221 = arith.divf %219, %220 : vector<3x1xf32>
    %222 = vector.broadcast %221 : vector<3x1xf32> to vector<3x32xf32>
    %223 = arith.subf %215, %222 : vector<3x32xf32>
    %224 = arith.mulf %223, %223 : vector<3x32xf32>
    %cst_87 = arith.constant dense<0.000000e+00> : vector<3xf32>
    %225 = vector.multi_reduction <add>, %224, %cst_87 [1] : vector<3x32xf32> to vector<3xf32>
    %226 = vector.shape_cast %225 : vector<3xf32> to vector<3x1xf32>
    %cst_88 = arith.constant 3.200000e+01 : f32
    %227 = vector.broadcast %cst_88 : f32 to vector<3x1xf32>
    %228 = arith.divf %226, %227 : vector<3x1xf32>
    %229 = vector.broadcast %221 : vector<3x1xf32> to vector<3x32xf32>
    %230 = arith.subf %215, %229 : vector<3x32xf32>
    %cst_89 = arith.constant 9.99999974E-6 : f32
    %231 = vector.broadcast %cst_89 : f32 to vector<3x1xf32>
    %232 = arith.addf %228, %231 : vector<3x1xf32>
    %233 = math.rsqrt %232 : vector<3x1xf32>
    %234 = vector.broadcast %233 : vector<3x1xf32> to vector<3x32xf32>
    %235 = arith.mulf %230, %234 : vector<3x32xf32>
    %236 = vector.broadcast %216 : vector<1x32xf32> to vector<3x32xf32>
    %237 = arith.mulf %235, %236 : vector<3x32xf32>
    %238 = vector.broadcast %217 : vector<1x32xf32> to vector<3x32xf32>
    %239 = arith.addf %237, %238 : vector<3x32xf32>
    %c0_90 = arith.constant 0 : index
    %c0_91 = arith.constant 0 : index
    %c0_92 = arith.constant 0 : index
    %240 = vector.load %arg16[%c0_90, %c0_91, %c0_92] : memref<2x32x32xf32, #tpu.memory_space<vmem>>, vector<1x32x32xf32>
    %241 = vector.shape_cast %240 : vector<1x32x32xf32> to vector<32x32xf32>
    %cst_93 = arith.constant dense<0.000000e+00> : vector<3x32xf32>
    %242 = tpu.matmul %239, %241, %cst_93 {dimension_numbers = #tpu.dot_dimension_numbers<[1], [0], [0], [1], [0, 0, 1, 1], [], []>} : vector<3x32xf32>, vector<32x32xf32>, vector<3x32xf32> -> vector<3x32xf32>
    %c0_94 = arith.constant 0 : index
    %c0_95 = arith.constant 0 : index
    %c0_96 = arith.constant 0 : index
    %243 = vector.load %arg17[%c0_94, %c0_95, %c0_96] : memref<2x1x32xf32, #tpu.memory_space<vmem>>, vector<1x1x32xf32>
    %244 = vector.shape_cast %243 : vector<1x1x32xf32> to vector<1x32xf32>
    %245 = vector.broadcast %244 : vector<1x32xf32> to vector<3x32xf32>
    %246 = arith.addf %242, %245 : vector<3x32xf32>
    %c0_97 = arith.constant 0 : index
    %c0_98 = arith.constant 0 : index
    %c0_99 = arith.constant 0 : index
    %247 = vector.load %arg18[%c0_97, %c0_98, %c0_99] : memref<2x32x32xf32, #tpu.memory_space<vmem>>, vector<1x32x32xf32>
    %248 = vector.shape_cast %247 : vector<1x32x32xf32> to vector<32x32xf32>
    %cst_100 = arith.constant dense<0.000000e+00> : vector<3x32xf32>
    %249 = tpu.matmul %246, %248, %cst_100 {dimension_numbers = #tpu.dot_dimension_numbers<[1], [0], [0], [1], [0, 0, 1, 1], [], []>} : vector<3x32xf32>, vector<32x32xf32>, vector<3x32xf32> -> vector<3x32xf32>
    %c0_101 = arith.constant 0 : index
    %c0_102 = arith.constant 0 : index
    %c0_103 = arith.constant 0 : index
    %250 = vector.load %arg19[%c0_101, %c0_102, %c0_103] : memref<2x1x32xf32, #tpu.memory_space<vmem>>, vector<1x1x32xf32>
    %251 = vector.shape_cast %250 : vector<1x1x32xf32> to vector<1x32xf32>
    %252 = vector.broadcast %251 : vector<1x32xf32> to vector<3x32xf32>
    %253 = arith.addf %249, %252 : vector<3x32xf32>
    %254 = arith.addf %239, %253 : vector<3x32xf32>
    %c0_104 = arith.constant 0 : index
    %c0_105 = arith.constant 0 : index
    %c0_106 = arith.constant 0 : index
    %255 = vector.load %arg20[%c0_104, %c0_105, %c0_106] : memref<2x1x32xf32, #tpu.memory_space<vmem>>, vector<1x1x32xf32>
    %256 = vector.shape_cast %255 : vector<1x1x32xf32> to vector<1x32xf32>
    %c0_107 = arith.constant 0 : index
    %c0_108 = arith.constant 0 : index
    %c0_109 = arith.constant 0 : index
    %257 = vector.load %arg21[%c0_107, %c0_108, %c0_109] : memref<2x1x32xf32, #tpu.memory_space<vmem>>, vector<1x1x32xf32>
    %258 = vector.shape_cast %257 : vector<1x1x32xf32> to vector<1x32xf32>
    %cst_110 = arith.constant dense<0.000000e+00> : vector<3xf32>
    %259 = vector.multi_reduction <add>, %254, %cst_110 [1] : vector<3x32xf32> to vector<3xf32>
    %260 = vector.shape_cast %259 : vector<3xf32> to vector<3x1xf32>
    %cst_111 = arith.constant 3.200000e+01 : f32
    %261 = vector.broadcast %cst_111 : f32 to vector<3x1xf32>
    %262 = arith.divf %260, %261 : vector<3x1xf32>
    %263 = vector.broadcast %262 : vector<3x1xf32> to vector<3x32xf32>
    %264 = arith.subf %254, %263 : vector<3x32xf32>
    %265 = arith.mulf %264, %264 : vector<3x32xf32>
    %cst_112 = arith.constant dense<0.000000e+00> : vector<3xf32>
    %266 = vector.multi_reduction <add>, %265, %cst_112 [1] : vector<3x32xf32> to vector<3xf32>
    %267 = vector.shape_cast %266 : vector<3xf32> to vector<3x1xf32>
    %cst_113 = arith.constant 3.200000e+01 : f32
    %268 = vector.broadcast %cst_113 : f32 to vector<3x1xf32>
    %269 = arith.divf %267, %268 : vector<3x1xf32>
    %270 = vector.broadcast %262 : vector<3x1xf32> to vector<3x32xf32>
    %271 = arith.subf %254, %270 : vector<3x32xf32>
    %cst_114 = arith.constant 9.99999974E-6 : f32
    %272 = vector.broadcast %cst_114 : f32 to vector<3x1xf32>
    %273 = arith.addf %269, %272 : vector<3x1xf32>
    %274 = math.rsqrt %273 : vector<3x1xf32>
    %275 = vector.broadcast %274 : vector<3x1xf32> to vector<3x32xf32>
    %276 = arith.mulf %271, %275 : vector<3x32xf32>
    %277 = vector.broadcast %256 : vector<1x32xf32> to vector<3x32xf32>
    %278 = arith.mulf %276, %277 : vector<3x32xf32>
    %279 = vector.broadcast %258 : vector<1x32xf32> to vector<3x32xf32>
    %280 = arith.addf %278, %279 : vector<3x32xf32>
    %c0_115 = arith.constant 0 : index
    %c0_116 = arith.constant 0 : index
    %c0_117 = arith.constant 0 : index
    %281 = vector.load %arg22[%c0_115, %c0_116, %c0_117] : memref<2x32x128xf32, #tpu.memory_space<vmem>>, vector<1x32x128xf32>
    %282 = vector.shape_cast %281 : vector<1x32x128xf32> to vector<32x128xf32>
    %cst_118 = arith.constant dense<0.000000e+00> : vector<3x128xf32>
    %283 = tpu.matmul %280, %282, %cst_118 {dimension_numbers = #tpu.dot_dimension_numbers<[1], [0], [0], [1], [0, 0, 1, 1], [], []>} : vector<3x32xf32>, vector<32x128xf32>, vector<3x128xf32> -> vector<3x128xf32>
    %c0_119 = arith.constant 0 : index
    %c0_120 = arith.constant 0 : index
    %c0_121 = arith.constant 0 : index
    %284 = vector.load %arg23[%c0_119, %c0_120, %c0_121] : memref<2x1x128xf32, #tpu.memory_space<vmem>>, vector<1x1x128xf32>
    %285 = vector.shape_cast %284 : vector<1x1x128xf32> to vector<1x128xf32>
    %286 = vector.broadcast %285 : vector<1x128xf32> to vector<3x128xf32>
    %287 = arith.addf %283, %286 : vector<3x128xf32>
    %cst_122 = arith.constant 5.000000e-01 : f32
    %288 = vector.broadcast %cst_122 : f32 to vector<3x128xf32>
    %289 = arith.mulf %288, %287 : vector<3x128xf32>
    %cst_123 = arith.constant 0.707106769 : f32
    %290 = vector.broadcast %cst_123 : f32 to vector<3x128xf32>
    %291 = arith.mulf %287, %290 : vector<3x128xf32>
    %cst_124 = arith.constant 0.000000e+00 : f32
    %292 = vector.broadcast %cst_124 : f32 to vector<3x128xf32>
    %293 = arith.cmpf oge, %291, %292 : vector<3x128xf32>
    %cst_125 = arith.constant 1.000000e+00 : f32
    %cst_126 = arith.constant -1.000000e+00 : f32
    %294 = vector.broadcast %cst_125 : f32 to vector<3x128xf32>
    %295 = vector.broadcast %cst_126 : f32 to vector<3x128xf32>
    %296 = arith.select %293, %294, %295 : vector<3x128xi1>, vector<3x128xf32>
    %297 = math.absf %291 : vector<3x128xf32>
    %cst_127 = arith.constant 0.327591091 : f32
    %298 = vector.broadcast %cst_127 : f32 to vector<3x128xf32>
    %299 = arith.mulf %298, %297 : vector<3x128xf32>
    %cst_128 = arith.constant 1.000000e+00 : f32
    %300 = vector.broadcast %cst_128 : f32 to vector<3x128xf32>
    %301 = arith.addf %300, %299 : vector<3x128xf32>
    %cst_129 = arith.constant 1.000000e+00 : f32
    %302 = vector.broadcast %cst_129 : f32 to vector<3x128xf32>
    %303 = arith.divf %302, %301 : vector<3x128xf32>
    %cst_130 = arith.constant 1.06140542 : f32
    %304 = vector.broadcast %cst_130 : f32 to vector<3x128xf32>
    %305 = arith.mulf %304, %303 : vector<3x128xf32>
    %cst_131 = arith.constant -1.45315206 : f32
    %306 = vector.broadcast %cst_131 : f32 to vector<3x128xf32>
    %307 = arith.addf %305, %306 : vector<3x128xf32>
    %308 = arith.mulf %307, %303 : vector<3x128xf32>
    %cst_132 = arith.constant 1.42141378 : f32
    %309 = vector.broadcast %cst_132 : f32 to vector<3x128xf32>
    %310 = arith.addf %308, %309 : vector<3x128xf32>
    %311 = arith.mulf %310, %303 : vector<3x128xf32>
    %cst_133 = arith.constant -0.284496725 : f32
    %312 = vector.broadcast %cst_133 : f32 to vector<3x128xf32>
    %313 = arith.addf %311, %312 : vector<3x128xf32>
    %314 = arith.mulf %313, %303 : vector<3x128xf32>
    %cst_134 = arith.constant 0.254829586 : f32
    %315 = vector.broadcast %cst_134 : f32 to vector<3x128xf32>
    %316 = arith.addf %314, %315 : vector<3x128xf32>
    %317 = arith.mulf %316, %303 : vector<3x128xf32>
    %cst_135 = arith.constant 0.000000e+00 : f32
    %318 = vector.broadcast %cst_135 : f32 to vector<3x128xf32>
    %319 = arith.subf %318, %297 : vector<3x128xf32>
    %320 = arith.mulf %319, %297 : vector<3x128xf32>
    %321 = math.exp %320 : vector<3x128xf32>
    %322 = arith.mulf %317, %321 : vector<3x128xf32>
    %cst_136 = arith.constant 1.000000e+00 : f32
    %323 = vector.broadcast %cst_136 : f32 to vector<3x128xf32>
    %324 = arith.subf %323, %322 : vector<3x128xf32>
    %325 = arith.mulf %296, %324 : vector<3x128xf32>
    %cst_137 = arith.constant 1.000000e+00 : f32
    %326 = vector.broadcast %cst_137 : f32 to vector<3x128xf32>
    %327 = arith.addf %326, %325 : vector<3x128xf32>
    %328 = arith.mulf %289, %327 : vector<3x128xf32>
    %c0_138 = arith.constant 0 : index
    %c0_139 = arith.constant 0 : index
    %c0_140 = arith.constant 0 : index
    %329 = vector.load %arg24[%c0_138, %c0_139, %c0_140] : memref<2x128x32xf32, #tpu.memory_space<vmem>>, vector<1x128x32xf32>
    %330 = vector.shape_cast %329 : vector<1x128x32xf32> to vector<128x32xf32>
    %cst_141 = arith.constant dense<0.000000e+00> : vector<3x32xf32>
    %331 = tpu.matmul %328, %330, %cst_141 {dimension_numbers = #tpu.dot_dimension_numbers<[1], [0], [0], [1], [0, 0, 1, 1], [], []>} : vector<3x128xf32>, vector<128x32xf32>, vector<3x32xf32> -> vector<3x32xf32>
    %c0_142 = arith.constant 0 : index
    %c0_143 = arith.constant 0 : index
    %c0_144 = arith.constant 0 : index
    %332 = vector.load %arg25[%c0_142, %c0_143, %c0_144] : memref<2x1x32xf32, #tpu.memory_space<vmem>>, vector<1x1x32xf32>
    %333 = vector.shape_cast %332 : vector<1x1x32xf32> to vector<1x32xf32>
    %334 = vector.broadcast %333 : vector<1x32xf32> to vector<3x32xf32>
    %335 = arith.addf %331, %334 : vector<3x32xf32>
    %336 = arith.addf %280, %335 : vector<3x32xf32>
    %c0_145 = arith.constant 0 : index
    %c0_146 = arith.constant 0 : index
    %c0_147 = arith.constant 0 : index
    %337 = vector.load %arg26[%c0_145, %c0_146, %c0_147] : memref<2x1x32xf32, #tpu.memory_space<vmem>>, vector<1x1x32xf32>
    %338 = vector.shape_cast %337 : vector<1x1x32xf32> to vector<1x32xf32>
    %c0_148 = arith.constant 0 : index
    %c0_149 = arith.constant 0 : index
    %c0_150 = arith.constant 0 : index
    %339 = vector.load %arg27[%c0_148, %c0_149, %c0_150] : memref<2x1x32xf32, #tpu.memory_space<vmem>>, vector<1x1x32xf32>
    %340 = vector.shape_cast %339 : vector<1x1x32xf32> to vector<1x32xf32>
    %cst_151 = arith.constant dense<0.000000e+00> : vector<3xf32>
    %341 = vector.multi_reduction <add>, %336, %cst_151 [1] : vector<3x32xf32> to vector<3xf32>
    %342 = vector.shape_cast %341 : vector<3xf32> to vector<3x1xf32>
    %cst_152 = arith.constant 3.200000e+01 : f32
    %343 = vector.broadcast %cst_152 : f32 to vector<3x1xf32>
    %344 = arith.divf %342, %343 : vector<3x1xf32>
    %345 = vector.broadcast %344 : vector<3x1xf32> to vector<3x32xf32>
    %346 = arith.subf %336, %345 : vector<3x32xf32>
    %347 = arith.mulf %346, %346 : vector<3x32xf32>
    %cst_153 = arith.constant dense<0.000000e+00> : vector<3xf32>
    %348 = vector.multi_reduction <add>, %347, %cst_153 [1] : vector<3x32xf32> to vector<3xf32>
    %349 = vector.shape_cast %348 : vector<3xf32> to vector<3x1xf32>
    %cst_154 = arith.constant 3.200000e+01 : f32
    %350 = vector.broadcast %cst_154 : f32 to vector<3x1xf32>
    %351 = arith.divf %349, %350 : vector<3x1xf32>
    %352 = vector.broadcast %344 : vector<3x1xf32> to vector<3x32xf32>
    %353 = arith.subf %336, %352 : vector<3x32xf32>
    %cst_155 = arith.constant 9.99999974E-6 : f32
    %354 = vector.broadcast %cst_155 : f32 to vector<3x1xf32>
    %355 = arith.addf %351, %354 : vector<3x1xf32>
    %356 = math.rsqrt %355 : vector<3x1xf32>
    %357 = vector.broadcast %356 : vector<3x1xf32> to vector<3x32xf32>
    %358 = arith.mulf %353, %357 : vector<3x32xf32>
    %359 = vector.broadcast %338 : vector<1x32xf32> to vector<3x32xf32>
    %360 = arith.mulf %358, %359 : vector<3x32xf32>
    %361 = vector.broadcast %340 : vector<1x32xf32> to vector<3x32xf32>
    %362 = arith.addf %360, %361 : vector<3x32xf32>
    %c1 = arith.constant 1 : index
    %c0_156 = arith.constant 0 : index
    %c0_157 = arith.constant 0 : index
    %363 = vector.load %arg16[%c1, %c0_156, %c0_157] : memref<2x32x32xf32, #tpu.memory_space<vmem>>, vector<1x32x32xf32>
    %364 = vector.shape_cast %363 : vector<1x32x32xf32> to vector<32x32xf32>
    %cst_158 = arith.constant dense<0.000000e+00> : vector<3x32xf32>
    %365 = tpu.matmul %362, %364, %cst_158 {dimension_numbers = #tpu.dot_dimension_numbers<[1], [0], [0], [1], [0, 0, 1, 1], [], []>} : vector<3x32xf32>, vector<32x32xf32>, vector<3x32xf32> -> vector<3x32xf32>
    %c1_159 = arith.constant 1 : index
    %c0_160 = arith.constant 0 : index
    %c0_161 = arith.constant 0 : index
    %366 = vector.load %arg17[%c1_159, %c0_160, %c0_161] : memref<2x1x32xf32, #tpu.memory_space<vmem>>, vector<1x1x32xf32>
    %367 = vector.shape_cast %366 : vector<1x1x32xf32> to vector<1x32xf32>
    %368 = vector.broadcast %367 : vector<1x32xf32> to vector<3x32xf32>
    %369 = arith.addf %365, %368 : vector<3x32xf32>
    %c1_162 = arith.constant 1 : index
    %c0_163 = arith.constant 0 : index
    %c0_164 = arith.constant 0 : index
    %370 = vector.load %arg18[%c1_162, %c0_163, %c0_164] : memref<2x32x32xf32, #tpu.memory_space<vmem>>, vector<1x32x32xf32>
    %371 = vector.shape_cast %370 : vector<1x32x32xf32> to vector<32x32xf32>
    %cst_165 = arith.constant dense<0.000000e+00> : vector<3x32xf32>
    %372 = tpu.matmul %369, %371, %cst_165 {dimension_numbers = #tpu.dot_dimension_numbers<[1], [0], [0], [1], [0, 0, 1, 1], [], []>} : vector<3x32xf32>, vector<32x32xf32>, vector<3x32xf32> -> vector<3x32xf32>
    %c1_166 = arith.constant 1 : index
    %c0_167 = arith.constant 0 : index
    %c0_168 = arith.constant 0 : index
    %373 = vector.load %arg19[%c1_166, %c0_167, %c0_168] : memref<2x1x32xf32, #tpu.memory_space<vmem>>, vector<1x1x32xf32>
    %374 = vector.shape_cast %373 : vector<1x1x32xf32> to vector<1x32xf32>
    %375 = vector.broadcast %374 : vector<1x32xf32> to vector<3x32xf32>
    %376 = arith.addf %372, %375 : vector<3x32xf32>
    %377 = arith.addf %362, %376 : vector<3x32xf32>
    %c1_169 = arith.constant 1 : index
    %c0_170 = arith.constant 0 : index
    %c0_171 = arith.constant 0 : index
    %378 = vector.load %arg20[%c1_169, %c0_170, %c0_171] : memref<2x1x32xf32, #tpu.memory_space<vmem>>, vector<1x1x32xf32>
    %379 = vector.shape_cast %378 : vector<1x1x32xf32> to vector<1x32xf32>
    %c1_172 = arith.constant 1 : index
    %c0_173 = arith.constant 0 : index
    %c0_174 = arith.constant 0 : index
    %380 = vector.load %arg21[%c1_172, %c0_173, %c0_174] : memref<2x1x32xf32, #tpu.memory_space<vmem>>, vector<1x1x32xf32>
    %381 = vector.shape_cast %380 : vector<1x1x32xf32> to vector<1x32xf32>
    %cst_175 = arith.constant dense<0.000000e+00> : vector<3xf32>
    %382 = vector.multi_reduction <add>, %377, %cst_175 [1] : vector<3x32xf32> to vector<3xf32>
    %383 = vector.shape_cast %382 : vector<3xf32> to vector<3x1xf32>
    %cst_176 = arith.constant 3.200000e+01 : f32
    %384 = vector.broadcast %cst_176 : f32 to vector<3x1xf32>
    %385 = arith.divf %383, %384 : vector<3x1xf32>
    %386 = vector.broadcast %385 : vector<3x1xf32> to vector<3x32xf32>
    %387 = arith.subf %377, %386 : vector<3x32xf32>
    %388 = arith.mulf %387, %387 : vector<3x32xf32>
    %cst_177 = arith.constant dense<0.000000e+00> : vector<3xf32>
    %389 = vector.multi_reduction <add>, %388, %cst_177 [1] : vector<3x32xf32> to vector<3xf32>
    %390 = vector.shape_cast %389 : vector<3xf32> to vector<3x1xf32>
    %cst_178 = arith.constant 3.200000e+01 : f32
    %391 = vector.broadcast %cst_178 : f32 to vector<3x1xf32>
    %392 = arith.divf %390, %391 : vector<3x1xf32>
    %393 = vector.broadcast %385 : vector<3x1xf32> to vector<3x32xf32>
    %394 = arith.subf %377, %393 : vector<3x32xf32>
    %cst_179 = arith.constant 9.99999974E-6 : f32
    %395 = vector.broadcast %cst_179 : f32 to vector<3x1xf32>
    %396 = arith.addf %392, %395 : vector<3x1xf32>
    %397 = math.rsqrt %396 : vector<3x1xf32>
    %398 = vector.broadcast %397 : vector<3x1xf32> to vector<3x32xf32>
    %399 = arith.mulf %394, %398 : vector<3x32xf32>
    %400 = vector.broadcast %379 : vector<1x32xf32> to vector<3x32xf32>
    %401 = arith.mulf %399, %400 : vector<3x32xf32>
    %402 = vector.broadcast %381 : vector<1x32xf32> to vector<3x32xf32>
    %403 = arith.addf %401, %402 : vector<3x32xf32>
    %c1_180 = arith.constant 1 : index
    %c0_181 = arith.constant 0 : index
    %c0_182 = arith.constant 0 : index
    %404 = vector.load %arg22[%c1_180, %c0_181, %c0_182] : memref<2x32x128xf32, #tpu.memory_space<vmem>>, vector<1x32x128xf32>
    %405 = vector.shape_cast %404 : vector<1x32x128xf32> to vector<32x128xf32>
    %cst_183 = arith.constant dense<0.000000e+00> : vector<3x128xf32>
    %406 = tpu.matmul %403, %405, %cst_183 {dimension_numbers = #tpu.dot_dimension_numbers<[1], [0], [0], [1], [0, 0, 1, 1], [], []>} : vector<3x32xf32>, vector<32x128xf32>, vector<3x128xf32> -> vector<3x128xf32>
    %c1_184 = arith.constant 1 : index
    %c0_185 = arith.constant 0 : index
    %c0_186 = arith.constant 0 : index
    %407 = vector.load %arg23[%c1_184, %c0_185, %c0_186] : memref<2x1x128xf32, #tpu.memory_space<vmem>>, vector<1x1x128xf32>
    %408 = vector.shape_cast %407 : vector<1x1x128xf32> to vector<1x128xf32>
    %409 = vector.broadcast %408 : vector<1x128xf32> to vector<3x128xf32>
    %410 = arith.addf %406, %409 : vector<3x128xf32>
    %cst_187 = arith.constant 5.000000e-01 : f32
    %411 = vector.broadcast %cst_187 : f32 to vector<3x128xf32>
    %412 = arith.mulf %411, %410 : vector<3x128xf32>
    %cst_188 = arith.constant 0.707106769 : f32
    %413 = vector.broadcast %cst_188 : f32 to vector<3x128xf32>
    %414 = arith.mulf %410, %413 : vector<3x128xf32>
    %cst_189 = arith.constant 0.000000e+00 : f32
    %415 = vector.broadcast %cst_189 : f32 to vector<3x128xf32>
    %416 = arith.cmpf oge, %414, %415 : vector<3x128xf32>
    %cst_190 = arith.constant 1.000000e+00 : f32
    %cst_191 = arith.constant -1.000000e+00 : f32
    %417 = vector.broadcast %cst_190 : f32 to vector<3x128xf32>
    %418 = vector.broadcast %cst_191 : f32 to vector<3x128xf32>
    %419 = arith.select %416, %417, %418 : vector<3x128xi1>, vector<3x128xf32>
    %420 = math.absf %414 : vector<3x128xf32>
    %cst_192 = arith.constant 0.327591091 : f32
    %421 = vector.broadcast %cst_192 : f32 to vector<3x128xf32>
    %422 = arith.mulf %421, %420 : vector<3x128xf32>
    %cst_193 = arith.constant 1.000000e+00 : f32
    %423 = vector.broadcast %cst_193 : f32 to vector<3x128xf32>
    %424 = arith.addf %423, %422 : vector<3x128xf32>
    %cst_194 = arith.constant 1.000000e+00 : f32
    %425 = vector.broadcast %cst_194 : f32 to vector<3x128xf32>
    %426 = arith.divf %425, %424 : vector<3x128xf32>
    %cst_195 = arith.constant 1.06140542 : f32
    %427 = vector.broadcast %cst_195 : f32 to vector<3x128xf32>
    %428 = arith.mulf %427, %426 : vector<3x128xf32>
    %cst_196 = arith.constant -1.45315206 : f32
    %429 = vector.broadcast %cst_196 : f32 to vector<3x128xf32>
    %430 = arith.addf %428, %429 : vector<3x128xf32>
    %431 = arith.mulf %430, %426 : vector<3x128xf32>
    %cst_197 = arith.constant 1.42141378 : f32
    %432 = vector.broadcast %cst_197 : f32 to vector<3x128xf32>
    %433 = arith.addf %431, %432 : vector<3x128xf32>
    %434 = arith.mulf %433, %426 : vector<3x128xf32>
    %cst_198 = arith.constant -0.284496725 : f32
    %435 = vector.broadcast %cst_198 : f32 to vector<3x128xf32>
    %436 = arith.addf %434, %435 : vector<3x128xf32>
    %437 = arith.mulf %436, %426 : vector<3x128xf32>
    %cst_199 = arith.constant 0.254829586 : f32
    %438 = vector.broadcast %cst_199 : f32 to vector<3x128xf32>
    %439 = arith.addf %437, %438 : vector<3x128xf32>
    %440 = arith.mulf %439, %426 : vector<3x128xf32>
    %cst_200 = arith.constant 0.000000e+00 : f32
    %441 = vector.broadcast %cst_200 : f32 to vector<3x128xf32>
    %442 = arith.subf %441, %420 : vector<3x128xf32>
    %443 = arith.mulf %442, %420 : vector<3x128xf32>
    %444 = math.exp %443 : vector<3x128xf32>
    %445 = arith.mulf %440, %444 : vector<3x128xf32>
    %cst_201 = arith.constant 1.000000e+00 : f32
    %446 = vector.broadcast %cst_201 : f32 to vector<3x128xf32>
    %447 = arith.subf %446, %445 : vector<3x128xf32>
    %448 = arith.mulf %419, %447 : vector<3x128xf32>
    %cst_202 = arith.constant 1.000000e+00 : f32
    %449 = vector.broadcast %cst_202 : f32 to vector<3x128xf32>
    %450 = arith.addf %449, %448 : vector<3x128xf32>
    %451 = arith.mulf %412, %450 : vector<3x128xf32>
    %c1_203 = arith.constant 1 : index
    %c0_204 = arith.constant 0 : index
    %c0_205 = arith.constant 0 : index
    %452 = vector.load %arg24[%c1_203, %c0_204, %c0_205] : memref<2x128x32xf32, #tpu.memory_space<vmem>>, vector<1x128x32xf32>
    %453 = vector.shape_cast %452 : vector<1x128x32xf32> to vector<128x32xf32>
    %cst_206 = arith.constant dense<0.000000e+00> : vector<3x32xf32>
    %454 = tpu.matmul %451, %453, %cst_206 {dimension_numbers = #tpu.dot_dimension_numbers<[1], [0], [0], [1], [0, 0, 1, 1], [], []>} : vector<3x128xf32>, vector<128x32xf32>, vector<3x32xf32> -> vector<3x32xf32>
    %c1_207 = arith.constant 1 : index
    %c0_208 = arith.constant 0 : index
    %c0_209 = arith.constant 0 : index
    %455 = vector.load %arg25[%c1_207, %c0_208, %c0_209] : memref<2x1x32xf32, #tpu.memory_space<vmem>>, vector<1x1x32xf32>
    %456 = vector.shape_cast %455 : vector<1x1x32xf32> to vector<1x32xf32>
    %457 = vector.broadcast %456 : vector<1x32xf32> to vector<3x32xf32>
    %458 = arith.addf %454, %457 : vector<3x32xf32>
    %459 = arith.addf %403, %458 : vector<3x32xf32>
    %c1_210 = arith.constant 1 : index
    %c0_211 = arith.constant 0 : index
    %c0_212 = arith.constant 0 : index
    %460 = vector.load %arg26[%c1_210, %c0_211, %c0_212] : memref<2x1x32xf32, #tpu.memory_space<vmem>>, vector<1x1x32xf32>
    %461 = vector.shape_cast %460 : vector<1x1x32xf32> to vector<1x32xf32>
    %c1_213 = arith.constant 1 : index
    %c0_214 = arith.constant 0 : index
    %c0_215 = arith.constant 0 : index
    %462 = vector.load %arg27[%c1_213, %c0_214, %c0_215] : memref<2x1x32xf32, #tpu.memory_space<vmem>>, vector<1x1x32xf32>
    %463 = vector.shape_cast %462 : vector<1x1x32xf32> to vector<1x32xf32>
    %cst_216 = arith.constant dense<0.000000e+00> : vector<3xf32>
    %464 = vector.multi_reduction <add>, %459, %cst_216 [1] : vector<3x32xf32> to vector<3xf32>
    %465 = vector.shape_cast %464 : vector<3xf32> to vector<3x1xf32>
    %cst_217 = arith.constant 3.200000e+01 : f32
    %466 = vector.broadcast %cst_217 : f32 to vector<3x1xf32>
    %467 = arith.divf %465, %466 : vector<3x1xf32>
    %468 = vector.broadcast %467 : vector<3x1xf32> to vector<3x32xf32>
    %469 = arith.subf %459, %468 : vector<3x32xf32>
    %470 = arith.mulf %469, %469 : vector<3x32xf32>
    %cst_218 = arith.constant dense<0.000000e+00> : vector<3xf32>
    %471 = vector.multi_reduction <add>, %470, %cst_218 [1] : vector<3x32xf32> to vector<3xf32>
    %472 = vector.shape_cast %471 : vector<3xf32> to vector<3x1xf32>
    %cst_219 = arith.constant 3.200000e+01 : f32
    %473 = vector.broadcast %cst_219 : f32 to vector<3x1xf32>
    %474 = arith.divf %472, %473 : vector<3x1xf32>
    %475 = vector.broadcast %467 : vector<3x1xf32> to vector<3x32xf32>
    %476 = arith.subf %459, %475 : vector<3x32xf32>
    %cst_220 = arith.constant 9.99999974E-6 : f32
    %477 = vector.broadcast %cst_220 : f32 to vector<3x1xf32>
    %478 = arith.addf %474, %477 : vector<3x1xf32>
    %479 = math.rsqrt %478 : vector<3x1xf32>
    %480 = vector.broadcast %479 : vector<3x1xf32> to vector<3x32xf32>
    %481 = arith.mulf %476, %480 : vector<3x32xf32>
    %482 = vector.broadcast %461 : vector<1x32xf32> to vector<3x32xf32>
    %483 = arith.mulf %481, %482 : vector<3x32xf32>
    %484 = vector.broadcast %463 : vector<1x32xf32> to vector<3x32xf32>
    %485 = arith.addf %483, %484 : vector<3x32xf32>
    %c0_221 = arith.constant 0 : index
    %c0_222 = arith.constant 0 : index
    %486 = vector.load %arg28[%c0_221, %c0_222] : memref<32x32xf32, #tpu.memory_space<vmem>>, vector<32x32xf32>
    %cst_223 = arith.constant dense<0.000000e+00> : vector<3x32xf32>
    %487 = tpu.matmul %485, %486, %cst_223 {dimension_numbers = #tpu.dot_dimension_numbers<[1], [0], [0], [1], [0, 0, 1, 1], [], []>} : vector<3x32xf32>, vector<32x32xf32>, vector<3x32xf32> -> vector<3x32xf32>
    %c0_224 = arith.constant 0 : index
    %c0_225 = arith.constant 0 : index
    %488 = vector.load %arg29[%c0_224, %c0_225] : memref<1x32xf32, #tpu.memory_space<vmem>>, vector<1x32xf32>
    %489 = vector.broadcast %488 : vector<1x32xf32> to vector<3x32xf32>
    %490 = arith.addf %487, %489 : vector<3x32xf32>
    %c0_226 = arith.constant 0 : index
    %c0_227 = arith.constant 0 : index
    %491 = vector.load %arg30[%c0_226, %c0_227] : memref<1x32xf32, #tpu.memory_space<vmem>>, vector<1x32xf32>
    %c0_228 = arith.constant 0 : index
    %c0_229 = arith.constant 0 : index
    %492 = vector.load %arg31[%c0_228, %c0_229] : memref<1x32xf32, #tpu.memory_space<vmem>>, vector<1x32xf32>
    %cst_230 = arith.constant dense<0.000000e+00> : vector<3xf32>
    %493 = vector.multi_reduction <add>, %490, %cst_230 [1] : vector<3x32xf32> to vector<3xf32>
    %494 = vector.shape_cast %493 : vector<3xf32> to vector<3x1xf32>
    %cst_231 = arith.constant 3.200000e+01 : f32
    %495 = vector.broadcast %cst_231 : f32 to vector<3x1xf32>
    %496 = arith.divf %494, %495 : vector<3x1xf32>
    %497 = vector.broadcast %496 : vector<3x1xf32> to vector<3x32xf32>
    %498 = arith.subf %490, %497 : vector<3x32xf32>
    %499 = arith.mulf %498, %498 : vector<3x32xf32>
    %cst_232 = arith.constant dense<0.000000e+00> : vector<3xf32>
    %500 = vector.multi_reduction <add>, %499, %cst_232 [1] : vector<3x32xf32> to vector<3xf32>
    %501 = vector.shape_cast %500 : vector<3xf32> to vector<3x1xf32>
    %cst_233 = arith.constant 3.200000e+01 : f32
    %502 = vector.broadcast %cst_233 : f32 to vector<3x1xf32>
    %503 = arith.divf %501, %502 : vector<3x1xf32>
    %504 = vector.broadcast %496 : vector<3x1xf32> to vector<3x32xf32>
    %505 = arith.subf %490, %504 : vector<3x32xf32>
    %cst_234 = arith.constant 9.99999974E-6 : f32
    %506 = vector.broadcast %cst_234 : f32 to vector<3x1xf32>
    %507 = arith.addf %503, %506 : vector<3x1xf32>
    %508 = math.rsqrt %507 : vector<3x1xf32>
    %509 = vector.broadcast %508 : vector<3x1xf32> to vector<3x32xf32>
    %510 = arith.mulf %505, %509 : vector<3x32xf32>
    %511 = vector.broadcast %491 : vector<1x32xf32> to vector<3x32xf32>
    %512 = arith.mulf %510, %511 : vector<3x32xf32>
    %513 = vector.broadcast %492 : vector<1x32xf32> to vector<3x32xf32>
    %514 = arith.addf %512, %513 : vector<3x32xf32>
    %cst_235 = arith.constant 5.000000e-01 : f32
    %515 = vector.broadcast %cst_235 : f32 to vector<3x32xf32>
    %516 = arith.mulf %515, %514 : vector<3x32xf32>
    %cst_236 = arith.constant 0.707106769 : f32
    %517 = vector.broadcast %cst_236 : f32 to vector<3x32xf32>
    %518 = arith.mulf %514, %517 : vector<3x32xf32>
    %cst_237 = arith.constant 0.000000e+00 : f32
    %519 = vector.broadcast %cst_237 : f32 to vector<3x32xf32>
    %520 = arith.cmpf oge, %518, %519 : vector<3x32xf32>
    %cst_238 = arith.constant 1.000000e+00 : f32
    %cst_239 = arith.constant -1.000000e+00 : f32
    %521 = vector.broadcast %cst_238 : f32 to vector<3x32xf32>
    %522 = vector.broadcast %cst_239 : f32 to vector<3x32xf32>
    %523 = arith.select %520, %521, %522 : vector<3x32xi1>, vector<3x32xf32>
    %524 = math.absf %518 : vector<3x32xf32>
    %cst_240 = arith.constant 0.327591091 : f32
    %525 = vector.broadcast %cst_240 : f32 to vector<3x32xf32>
    %526 = arith.mulf %525, %524 : vector<3x32xf32>
    %cst_241 = arith.constant 1.000000e+00 : f32
    %527 = vector.broadcast %cst_241 : f32 to vector<3x32xf32>
    %528 = arith.addf %527, %526 : vector<3x32xf32>
    %cst_242 = arith.constant 1.000000e+00 : f32
    %529 = vector.broadcast %cst_242 : f32 to vector<3x32xf32>
    %530 = arith.divf %529, %528 : vector<3x32xf32>
    %cst_243 = arith.constant 1.06140542 : f32
    %531 = vector.broadcast %cst_243 : f32 to vector<3x32xf32>
    %532 = arith.mulf %531, %530 : vector<3x32xf32>
    %cst_244 = arith.constant -1.45315206 : f32
    %533 = vector.broadcast %cst_244 : f32 to vector<3x32xf32>
    %534 = arith.addf %532, %533 : vector<3x32xf32>
    %535 = arith.mulf %534, %530 : vector<3x32xf32>
    %cst_245 = arith.constant 1.42141378 : f32
    %536 = vector.broadcast %cst_245 : f32 to vector<3x32xf32>
    %537 = arith.addf %535, %536 : vector<3x32xf32>
    %538 = arith.mulf %537, %530 : vector<3x32xf32>
    %cst_246 = arith.constant -0.284496725 : f32
    %539 = vector.broadcast %cst_246 : f32 to vector<3x32xf32>
    %540 = arith.addf %538, %539 : vector<3x32xf32>
    %541 = arith.mulf %540, %530 : vector<3x32xf32>
    %cst_247 = arith.constant 0.254829586 : f32
    %542 = vector.broadcast %cst_247 : f32 to vector<3x32xf32>
    %543 = arith.addf %541, %542 : vector<3x32xf32>
    %544 = arith.mulf %543, %530 : vector<3x32xf32>
    %cst_248 = arith.constant 0.000000e+00 : f32
    %545 = vector.broadcast %cst_248 : f32 to vector<3x32xf32>
    %546 = arith.subf %545, %524 : vector<3x32xf32>
    %547 = arith.mulf %546, %524 : vector<3x32xf32>
    %548 = math.exp %547 : vector<3x32xf32>
    %549 = arith.mulf %544, %548 : vector<3x32xf32>
    %cst_249 = arith.constant 1.000000e+00 : f32
    %550 = vector.broadcast %cst_249 : f32 to vector<3x32xf32>
    %551 = arith.subf %550, %549 : vector<3x32xf32>
    %552 = arith.mulf %523, %551 : vector<3x32xf32>
    %cst_250 = arith.constant 1.000000e+00 : f32
    %553 = vector.broadcast %cst_250 : f32 to vector<3x32xf32>
    %554 = arith.addf %553, %552 : vector<3x32xf32>
    %555 = arith.mulf %516, %554 : vector<3x32xf32>
    %c0_251 = arith.constant 0 : index
    %c0_252 = arith.constant 0 : index
    %556 = vector.load %arg32[%c0_251, %c0_252] : memref<32x1xf32, #tpu.memory_space<vmem>>, vector<32x1xf32>
    %cst_253 = arith.constant dense<0.000000e+00> : vector<3x1xf32>
    %557 = tpu.matmul %555, %556, %cst_253 {dimension_numbers = #tpu.dot_dimension_numbers<[1], [0], [0], [1], [0, 0, 1, 1], [], []>} : vector<3x32xf32>, vector<32x1xf32>, vector<3x1xf32> -> vector<3x1xf32>
    %c0_254 = arith.constant 0 : index
    %c0_255 = arith.constant 0 : index
    %558 = vector.load %arg33[%c0_254, %c0_255] : memref<1x1xf32, #tpu.memory_space<vmem>>, vector<1x1xf32>
    %559 = vector.broadcast %558 : vector<1x1xf32> to vector<3x1xf32>
    %560 = arith.addf %557, %559 : vector<3x1xf32>
    %561 = arith.negf %560 : vector<3x1xf32>
    %562 = math.exp %561 : vector<3x1xf32>
    %cst_256 = arith.constant 1.000000e+00 : f32
    %563 = vector.broadcast %cst_256 : f32 to vector<3x1xf32>
    %564 = arith.addf %563, %562 : vector<3x1xf32>
    %565 = arith.divf %563, %564 : vector<3x1xf32>
    %c0_257 = arith.constant 0 : index
    %c0_258 = arith.constant 0 : index
    %566 = vector.load %arg34[%c0_257, %c0_258] : memref<3x1xf32, #tpu.memory_space<vmem>>, vector<3x1xf32>
    tpu.vector_store %arg34[%c0_257, %c0_258], %565 {strides = array<i32>} : memref<3x1xf32, #tpu.memory_space<vmem>>, vector<3x1xf32>,
    return
  }
  func.func @transform_0(%arg0: i32) -> (i32, i32, i32) {
    %c0_i32 = arith.constant 0 : i32
    %c0_i32_0 = arith.constant 0 : i32
    %c0_i32_1 = arith.constant 0 : i32
    %c0_i32_2 = arith.constant 0 : i32
    return %c0_i32, %c0_i32_0, %c0_i32_1 : i32, i32, i32
  }
  func.func @transform_1(%arg0: i32) -> (i32, i32) {
    %c0_i32 = arith.constant 0 : i32
    %c0_i32_0 = arith.constant 0 : i32
    %c0_i32_1 = arith.constant 0 : i32
    return %c0_i32, %c0_i32_0 : i32, i32
  }
  func.func @transform_2(%arg0: i32) -> (i32, i32) {
    %c0_i32 = arith.constant 0 : i32
    %c0_i32_0 = arith.constant 0 : i32
    %c0_i32_1 = arith.constant 0 : i32
    return %c0_i32, %c0_i32_0 : i32, i32
  }
  func.func @transform_3(%arg0: i32) -> (i32, i32) {
    %c0_i32 = arith.constant 0 : i32
    %c0_i32_0 = arith.constant 0 : i32
    %c0_i32_1 = arith.constant 0 : i32
    return %c0_i32, %c0_i32_0 : i32, i32
  }
  func.func @transform_4(%arg0: i32) -> (i32, i32) {
    %c0_i32 = arith.constant 0 : i32
    %c0_i32_0 = arith.constant 0 : i32
    %c0_i32_1 = arith.constant 0 : i32
    return %c0_i32, %c0_i32_0 : i32, i32
  }
  func.func @transform_5(%arg0: i32) -> (i32, i32) {
    %c0_i32 = arith.constant 0 : i32
    %c0_i32_0 = arith.constant 0 : i32
    %c0_i32_1 = arith.constant 0 : i32
    return %c0_i32, %c0_i32_0 : i32, i32
  }
  func.func @transform_6(%arg0: i32) -> (i32, i32) {
    %c0_i32 = arith.constant 0 : i32
    %c0_i32_0 = arith.constant 0 : i32
    %c0_i32_1 = arith.constant 0 : i32
    return %c0_i32, %c0_i32_0 : i32, i32
  }
  func.func @transform_7(%arg0: i32) -> (i32, i32) {
    %c0_i32 = arith.constant 0 : i32
    %c0_i32_0 = arith.constant 0 : i32
    %c0_i32_1 = arith.constant 0 : i32
    return %c0_i32, %c0_i32_0 : i32, i32
  }
  func.func @transform_8(%arg0: i32) -> (i32, i32) {
    %c0_i32 = arith.constant 0 : i32
    %c0_i32_0 = arith.constant 0 : i32
    %c0_i32_1 = arith.constant 0 : i32
    return %c0_i32, %c0_i32_0 : i32, i32
  }
  func.func @transform_9(%arg0: i32) -> (i32, i32) {
    %c0_i32 = arith.constant 0 : i32
    %c0_i32_0 = arith.constant 0 : i32
    %c0_i32_1 = arith.constant 0 : i32
    return %c0_i32, %c0_i32_0 : i32, i32
  }
  func.func @transform_10(%arg0: i32) -> (i32, i32) {
    %c0_i32 = arith.constant 0 : i32
    %c0_i32_0 = arith.constant 0 : i32
    %c0_i32_1 = arith.constant 0 : i32
    return %c0_i32, %c0_i32_0 : i32, i32
  }
  func.func @transform_11(%arg0: i32) -> (i32, i32) {
    %c0_i32 = arith.constant 0 : i32
    %c0_i32_0 = arith.constant 0 : i32
    %c0_i32_1 = arith.constant 0 : i32
    return %c0_i32, %c0_i32_0 : i32, i32
  }
  func.func @transform_12(%arg0: i32) -> (i32, i32, i32) {
    %c0_i32 = arith.constant 0 : i32
    %c0_i32_0 = arith.constant 0 : i32
    %c0_i32_1 = arith.constant 0 : i32
    %c0_i32_2 = arith.constant 0 : i32
    return %c0_i32, %c0_i32_0, %c0_i32_1 : i32, i32, i32
  }
  func.func @transform_13(%arg0: i32) -> (i32, i32) {
    %c0_i32 = arith.constant 0 : i32
    %c0_i32_0 = arith.constant 0 : i32
    %c0_i32_1 = arith.constant 0 : i32
    return %c0_i32, %c0_i32_0 : i32, i32
  }
  func.func @transform_14(%arg0: i32) -> (i32, i32) {
    %c0_i32 = arith.constant 0 : i32
    %c0_i32_0 = arith.constant 0 : i32
    %c0_i32_1 = arith.constant 0 : i32
    return %c0_i32, %c0_i32_0 : i32, i32
  }
  func.func @transform_15(%arg0: i32) -> (i32, i32, i32) {
    %c0_i32 = arith.constant 0 : i32
    %c0_i32_0 = arith.constant 0 : i32
    %c0_i32_1 = arith.constant 0 : i32
    %c0_i32_2 = arith.constant 0 : i32
    return %c0_i32, %c0_i32_0, %c0_i32_1 : i32, i32, i32
  }
  func.func @transform_16(%arg0: i32) -> (i32, i32, i32) {
    %c0_i32 = arith.constant 0 : i32
    %c0_i32_0 = arith.constant 0 : i32
    %c0_i32_1 = arith.constant 0 : i32
    %c0_i32_2 = arith.constant 0 : i32
    return %c0_i32, %c0_i32_0, %c0_i32_1 : i32, i32, i32
  }
  func.func @transform_17(%arg0: i32) -> (i32, i32, i32) {
    %c0_i32 = arith.constant 0 : i32
    %c0_i32_0 = arith.constant 0 : i32
    %c0_i32_1 = arith.constant 0 : i32
    %c0_i32_2 = arith.constant 0 : i32
    return %c0_i32, %c0_i32_0, %c0_i32_1 : i32, i32, i32
  }
  func.func @transform_18(%arg0: i32) -> (i32, i32, i32) {
    %c0_i32 = arith.constant 0 : i32
    %c0_i32_0 = arith.constant 0 : i32
    %c0_i32_1 = arith.constant 0 : i32
    %c0_i32_2 = arith.constant 0 : i32
    return %c0_i32, %c0_i32_0, %c0_i32_1 : i32, i32, i32
  }
  func.func @transform_19(%arg0: i32) -> (i32, i32, i32) {
    %c0_i32 = arith.constant 0 : i32
    %c0_i32_0 = arith.constant 0 : i32
    %c0_i32_1 = arith.constant 0 : i32
    %c0_i32_2 = arith.constant 0 : i32
    return %c0_i32, %c0_i32_0, %c0_i32_1 : i32, i32, i32
  }
  func.func @transform_20(%arg0: i32) -> (i32, i32, i32) {
    %c0_i32 = arith.constant 0 : i32
    %c0_i32_0 = arith.constant 0 : i32
    %c0_i32_1 = arith.constant 0 : i32
    %c0_i32_2 = arith.constant 0 : i32
    return %c0_i32, %c0_i32_0, %c0_i32_1 : i32, i32, i32
  }
  func.func @transform_21(%arg0: i32) -> (i32, i32, i32) {
    %c0_i32 = arith.constant 0 : i32
    %c0_i32_0 = arith.constant 0 : i32
    %c0_i32_1 = arith.constant 0 : i32
    %c0_i32_2 = arith.constant 0 : i32
    return %c0_i32, %c0_i32_0, %c0_i32_1 : i32, i32, i32
  }
  func.func @transform_22(%arg0: i32) -> (i32, i32, i32) {
    %c0_i32 = arith.constant 0 : i32
    %c0_i32_0 = arith.constant 0 : i32
    %c0_i32_1 = arith.constant 0 : i32
    %c0_i32_2 = arith.constant 0 : i32
    return %c0_i32, %c0_i32_0, %c0_i32_1 : i32, i32, i32
  }
  func.func @transform_23(%arg0: i32) -> (i32, i32, i32) {
    %c0_i32 = arith.constant 0 : i32
    %c0_i32_0 = arith.constant 0 : i32
    %c0_i32_1 = arith.constant 0 : i32
    %c0_i32_2 = arith.constant 0 : i32
    return %c0_i32, %c0_i32_0, %c0_i32_1 : i32, i32, i32
  }
  func.func @transform_24(%arg0: i32) -> (i32, i32, i32) {
    %c0_i32 = arith.constant 0 : i32
    %c0_i32_0 = arith.constant 0 : i32
    %c0_i32_1 = arith.constant 0 : i32
    %c0_i32_2 = arith.constant 0 : i32
    return %c0_i32, %c0_i32_0, %c0_i32_1 : i32, i32, i32
  }
  func.func @transform_25(%arg0: i32) -> (i32, i32, i32) {
    %c0_i32 = arith.constant 0 : i32
    %c0_i32_0 = arith.constant 0 : i32
    %c0_i32_1 = arith.constant 0 : i32
    %c0_i32_2 = arith.constant 0 : i32
    return %c0_i32, %c0_i32_0, %c0_i32_1 : i32, i32, i32
  }
  func.func @transform_26(%arg0: i32) -> (i32, i32, i32) {
    %c0_i32 = arith.constant 0 : i32
    %c0_i32_0 = arith.constant 0 : i32
    %c0_i32_1 = arith.constant 0 : i32
    %c0_i32_2 = arith.constant 0 : i32
    return %c0_i32, %c0_i32_0, %c0_i32_1 : i32, i32, i32
  }
  func.func @transform_27(%arg0: i32) -> (i32, i32) {
    %c0_i32 = arith.constant 0 : i32
    %c0_i32_0 = arith.constant 0 : i32
    %c0_i32_1 = arith.constant 0 : i32
    return %c0_i32, %c0_i32_0 : i32, i32
  }
  func.func @transform_28(%arg0: i32) -> (i32, i32) {
    %c0_i32 = arith.constant 0 : i32
    %c0_i32_0 = arith.constant 0 : i32
    %c0_i32_1 = arith.constant 0 : i32
    return %c0_i32, %c0_i32_0 : i32, i32
  }
  func.func @transform_29(%arg0: i32) -> (i32, i32) {
    %c0_i32 = arith.constant 0 : i32
    %c0_i32_0 = arith.constant 0 : i32
    %c0_i32_1 = arith.constant 0 : i32
    return %c0_i32, %c0_i32_0 : i32, i32
  }
  func.func @transform_30(%arg0: i32) -> (i32, i32) {
    %c0_i32 = arith.constant 0 : i32
    %c0_i32_0 = arith.constant 0 : i32
    %c0_i32_1 = arith.constant 0 : i32
    return %c0_i32, %c0_i32_0 : i32, i32
  }
  func.func @transform_31(%arg0: i32) -> (i32, i32) {
    %c0_i32 = arith.constant 0 : i32
    %c0_i32_0 = arith.constant 0 : i32
    %c0_i32_1 = arith.constant 0 : i32
    return %c0_i32, %c0_i32_0 : i32, i32
  }
  func.func @transform_32(%arg0: i32) -> (i32, i32) {
    %c0_i32 = arith.constant 0 : i32
    %c0_i32_0 = arith.constant 0 : i32
    %c0_i32_1 = arith.constant 0 : i32
    return %c0_i32, %c0_i32_0 : i32, i32
  }
  func.func @transform_33(%arg0: i32) -> (i32, i32) {
    %c0_i32 = arith.constant 0 : i32
    %c0_i32_0 = arith.constant 0 : i32
    %c0_i32_1 = arith.constant 0 : i32
    return %c0_i32, %c0_i32_0 : i32, i32
  }
}

</mosaic_0001>

<bundles_post_ra>
// kernel: tpu_custom_call.1
= control target key start
LH: loop header
LB: loop body
LE: loop exit
PB: predicated region body
PF: predicated region fallthrough
CT: control target
= control target key end

     0   :  { %v5370_v0 = vmov 2   ;;  %v5371_v1 = vmov 0   ;;  %s5372_s6 = smov 1   ;;  %v5373_v7 = vmov 0.0|0.0   ;;  %v5374_v8 = vmov 3   ;;  %s5378_s10 = smov 2   ;;  %s6189_s0 = inlined_call_operand.smem [shape: u32[34], index: -1, kind: input, shape index: {}] }
   0x1   :  { %5253 = vset.pattern.permute.xlu1 %v5370_v0  ;;  %5252 = vset.pattern.permute.xlu0 %v5371_v1  ;;  %s5427_s5 = sld [smem:[%s6189_s0]]   ;;  %v5375_v14 = vmov 1   ;;  %vm5376_vm0 = vmmov 0   ;;  %v5377_v20 = vmov 0.0   ;;  %v143_v26 = vlaneseq  ;;  %s5379_s14 = smov 4  }
   0x2   :  { %s5432_s9 = sld [smem:[%s6189_s0 + %s5372_s6]]   ;;  %5057 = vmatprep.subr.bf16.mxu0 %v5373_v7  ;;  %5069 = vmatprep.subr.bf16.mxu1 %v5373_v7  ;;  %vm225_vm5 = vcmask 523264   ;;  %s5380_s18 = smov 3   ;;  %vm322_vm14 = vcmask 261120  }
   0x3   :  { %4713 = vmatprep.mubr.msk.f32.mxu0 %vm5376_vm0, %v5377_v20  ;;  %4730 = vmatprep.mubr.msk.f32.mxu1 %vm5376_vm0, %v5377_v20  ;;  %s5468_s13 = sld [smem:[%s6189_s0 + %s5378_s10]]   ;;  %v144_v27 = vand.u32 127, %v143_v26  ;;  %s5381_s22 = smov 125  }
   0x4   :  { %s4402_s17 = sld [smem:[%s6189_s0 + %s5379_s14]]   ;;  %s5382_s23 = smov 127  }
   0x5   :  { %s4401_s21 = sld [smem:[%s6189_s0 + %s5380_s18]]   ;;  %s5383_s24 = smov 126  }
   0x6   :  { %s5384_s25 = smov 120   ;;  %s5385_s26 = smov 112  }
   0x7   :  { %v140_v2 = vld [vmem:[%s5427_s5] sm:$0xff]  ;;  %v141_v6 = vld [vmem:[%s5427_s5 + $0x8] sm:$0xff]  ;;  %v142_v16 = vld [vmem:[%s5427_s5 + $0x10] sm:$0xff]  ;;  %s5386_s27 = smov 104   ;;  %s5387_s28 = smov 8  }
   0x8   :  { %182 = vperm.xlu1 %5253, %v140_v2   ;;  %146 = vperm.xlu0 %5252, %v140_v2   ;;  %v217_v3 = vld [vmem:[%s5432_s9] sm:$0xff]  ;;  %v218_v4 = vld [vmem:[%s5432_s9 + $0x8] sm:$0xff]  ;;  %v219_v9 = vld [vmem:[%s5432_s9 + $0x10] sm:$0xff]  ;;  %s5388_s29 = smov 16   ;;  %s5389_s30 = smov 24  }
   0x9   :  { %v5058_v5 = vpack.c.bf16 %v218_v4, %v217_v3  ;;  %v220_v10 = vld [vmem:[%s5432_s9 + $0x18] sm:$0xff]  ;;  %v221_v12 = vld [vmem:[%s5432_s9 + $0x20] sm:$0xff]  ;;  %v222_v13 = vld [vmem:[%s5432_s9 + $0x28] sm:$0xff]  ;;  %s5390_s1 = smov 6   ;;  %s5391_s5 = smov 7  }
   0xa   :  { %v5061_v11 = vpack.c.bf16 %v220_v10, %v219_v9  ;;  %v5064_v15 = vpack.c.bf16 %v222_v13, %v221_v12  ;;  %v223_v17 = vld [vmem:[%s5432_s9 + $0x30] sm:$0xff]  ;;  %v224_v18 = vld [vmem:[%s5432_s9 + $0x38] sm:$0xff]  ;;  %v318_v21 = vld [vmem:[%s5468_s13] sm:$0xff]  ;;  %s4404_s4 = sld [smem:[%s6189_s0 + %s5390_s1]]   ;;  %s5392_s9 = smov 5  }
   0xb   :  { %5059 = vmatpush3.bf16.msra.mxu0 %v5058_v5  ;;  %v5067_v19 = vpack.c.bf16 %v224_v18, %v223_v17  ;;  %v319_v22 = vld [vmem:[%s5468_s13 + $0x8] sm:$0xff]  ;;  %v320_v59 = vld [vmem:[%s5468_s13 + $0x10] sm:$0xff]  ;;  %v321_v60 = vld [vmem:[%s5468_s13 + $0x18] sm:$0xff]  ;;  %s4405_s8 = sld [smem:[%s6189_s0 + %s5391_s5]]   ;;  %s5393_s16 = smov 9  }
   0xc   :  { %5254 = vset.pattern.permute.xlu1 %v5371_v1  ;;  %5256 = vset.pattern.permute.xlu0 %v5374_v8  ;;  %v5070_v23 = vpack.c.bf16 %v319_v22, %v318_v21  ;;  %v5073_v61 = vpack.c.bf16 %v321_v60, %v320_v59  ;;  %v505_v62 = vld [vmem:[%s4402_s17] sm:$0xff]  ;;  %v506_v63 = vld [vmem:[%s4402_s17 + $0x8] sm:$0xff]  ;;  %v507_v3 = vld [vmem:[%s4402_s17 + $0x10] sm:$0xff]  ;;  %s4403_s12 = sld [smem:[%s6189_s0 + %s5392_s9]]   ;;  %s5394_s20 = smov 10  }
   0xd   :  { %149 = vperm.xlu1 %5254, %v141_v6   ;;  %200 = vperm.xlu0 %5256, %v140_v2   ;;  %v508_v4 = vld [vmem:[%s4402_s17 + $0x18] sm:$0xff]  ;;  %v413_v9 = vld [vmem:[%s4401_s21 + $0x8] sm:$0xff]  ;;  %s4406_s15 = sld [smem:[%s6189_s0 + %s5387_s28]]   ;;  %s5403_s2 = smov 19  }
   0xe   :  { %5060 = vmatprep.subr.bf16.mxu0 %v5373_v7  ;;  %5071 = vmatpush3.bf16.msra.mxu1 %v5070_v23  ;;  %v5085_v5 = vpack.c.bf16 %v508_v4, %v507_v3  ;;  %s4407_s19 = sld [smem:[%s6189_s0 + %s5393_s16]]   ;;  %s5400_s16 = smov 14  }
   0xf   :  { %5062 = vmatpush3.bf16.msra.mxu0 %v5061_v11  ;;  %5072 = vmatprep.subr.bf16.mxu1 %v5373_v7  ;;  %s5980_s5 = sld [smem:[%s6189_s0 + %s5403_s2]]   ;;  %s5404_s6 = smov 20  }
  0x10   :  { %5063 = vmatprep.subr.bf16.mxu0 %v5373_v7  ;;  %s5985_s10 = sld [smem:[%s6189_s0 + %s5404_s6]]   ;;  %s5413_s13 = smov 32  }
  0x11   :  { %5255 = vset.pattern.permute.xlu1 %v5375_v14  ;;  %5257 = vset.pattern.permute.xlu0 %v5375_v14  ;;  %s5414_s17 = smov 29  }
  0x12   :  { %167 = vperm.xlu1 %5255, %v141_v6   ;;  %164 = vperm.xlu0 %5257, %v140_v2   ;;  %v5082_v2 = vpack.c.bf16 %v506_v63, %v505_v62 }
  0x13   :  { %5065 = vmatpush3.bf16.msra.mxu0 %v5064_v15  ;;  %5074 = vmatpush3.bf16.msra.mxu1 %v5073_v61  ;;  %v414_v15 = vld [vmem:[%s4401_s21 + $0x10] sm:$0xff] }
  0x14   :  { %5066 = vmatprep.subr.bf16.mxu0 %v5373_v7  ;;  %5075 = vmatprep.subr.bf16.mxu1 %v5373_v7 }
  0x16   :  { %5258 = vset.pattern.permute.xlu1 %v5370_v0  ;;  %170 = vperm.xlu0 %5257, %v142_v16  }
  0x17   :  { %185 = vperm.xlu1 %5258, %v141_v6   ;;  %5068 = vmatpush3.bf16.msra.mxu0 %v5067_v19 }
  0x18   :  { %5081 = vmatprep.subr.bf16.mxu0 %v5373_v7 }
  0x1a   :  { %5262 = vset.pattern.permute.xlu0 %v5374_v8 }
  0x1b   :  { %5259 = vset.pattern.permute.xlu1 %v5371_v1  ;;  %206 = vperm.xlu0 %5262, %v142_v16  }
  0x1c   :  { %152 = vperm.xlu1 %5259, %v142_v16  }
  0x20   :  { %5260 = vset.pattern.permute.xlu1 %v5374_v8 }
  0x21   :  { %203 = vperm.xlu1 %5260, %v141_v6   ;;  %v412_v6 = vld [vmem:[%s4401_s21] sm:$0xff] }
  0x22   :  { %v5076_v11 = vpack.c.bf16 %v413_v9, %v412_v6 }
  0x25   :  { %5261 = vset.pattern.permute.xlu1 %v5370_v0 }
  0x26   :  { %188 = vperm.xlu1 %5261, %v142_v16   ;;  %v415_v16 = vld [vmem:[%s4401_s21 + $0x18] sm:$0xff]  ;;  %s5415_s21 = smov 30  }
  0x27   :  { %v5079_v17 = vpack.c.bf16 %v415_v16, %v414_v15 }
  0x2a   :  { %5263 = vset.pattern.permute.xlu1 %v5371_v1 }
  0x87   :  { %v183_v24 = vpop.permute.xlu1 %182  ;;  %v147_v25 = vpop.permute.xlu0 %146 }
  0x88   :  { %vm154_vm1 = vcmp.eq.s32.totalorder %v147_v25, %v144_v27  ;;  %vm190_vm2 = vcmp.eq.s32.totalorder %v183_v24, %v144_v27 }
  0x89   :  { %v157_v32 = vsel %vm154_vm1, 1.0, %v5377_v20  ;;  %v193_v35 = vsel %vm190_vm2, 1.0, %v5377_v20  ;;  %vm724_vm1 = vcmask 64512  }
  0x8c   :  { %v150_v28 = vpop.permute.xlu1 %149  ;;  %v201_v29 = vpop.permute.xlu0 %200 }
  0x8d   :  { %vm208_vm4 = vcmp.eq.s32.totalorder %v201_v29, %v144_v27  ;;  %vm155_vm7 = vcmp.eq.s32.totalorder %v150_v28, %v144_v27 }
  0x8e   :  { %v211_v38 = vsel %vm208_vm4, 1.0, %v5377_v20  ;;  %v158_v43 = vsel %vm155_vm7, 1.0, %v5377_v20 }
  0x91   :  { %v168_v30 = vpop.permute.xlu1 %167  ;;  %v165_v31 = vpop.permute.xlu0 %164 }
  0x92   :  { %vm172_vm3 = vcmp.eq.s32.totalorder %v165_v31, %v144_v27  ;;  %vm173_vm6 = vcmp.eq.s32.totalorder %v168_v30, %v144_v27 }
  0x93   :  { %v175_v33 = vsel %vm172_vm3, 1.0, %v5377_v20  ;;  %v176_v41 = vsel %vm173_vm6, 1.0, %v5377_v20 }
  0x94   :  { %v178_v34 = vadd.f32 %v175_v33, %v157_v32  ;;  %v179_v45 = vadd.f32 %v176_v41, %v158_v43 }
  0x95   :  { %v171_v42 = vpop.permute.xlu0 %170 }
  0x96   :  { %v196_v36 = vadd.f32 %v193_v35, %v178_v34  ;;  %v186_v37 = vpop.permute.xlu1 %185  ;;  %vm174_vm11 = vcmp.eq.s32.totalorder %v171_v42, %v144_v27 }
  0x97   :  { %vm191_vm8 = vcmp.eq.s32.totalorder %v186_v37, %v144_v27  ;;  %v177_v52 = vsel %vm174_vm11, 1.0, %v5377_v20 }
  0x98   :  { %v214_v39 = vadd.f32 %v211_v38, %v196_v36  ;;  %v194_v44 = vsel %vm191_vm8, 1.0, %v5377_v20 }
  0x99   :  { %v197_v47 = vadd.f32 %v194_v44, %v179_v45 }
  0x9a   :  { %4714 = vmatmul.mubr.msk.f32.vlgmr.msra.gmra.mrb[0].mxu0 %vm225_vm5, %v214_v39  ;;  %v207_v48 = vpop.permute.xlu0 %206 }
  0x9b   :  { %v153_v40 = vpop.permute.xlu1 %152  ;;  %4716 = vmatprep.mubr.msk.f32.mxu0 %vm5376_vm0, %v5377_v20  ;;  %vm210_vm12 = vcmp.eq.s32.totalorder %v207_v48, %v144_v27  ;;  %5083 = vmatpush3.bf16.msra.mxu0 %v5082_v2 }
  0x9c   :  { %vm156_vm9 = vcmp.eq.s32.totalorder %v153_v40, %v144_v27  ;;  %v213_v56 = vsel %vm210_vm12, 1.0, %v5377_v20  ;;  %5084 = vmatprep.subr.bf16.mxu0 %v5373_v7 }
  0x9d   :  { %v159_v50 = vsel %vm156_vm9, 1.0, %v5377_v20 }
  0x9e   :  { %v180_v54 = vadd.f32 %v177_v52, %v159_v50 }
  0x9f   :  { %5086 = vmatpush3.bf16.msra.mxu0 %v5085_v5 }
  0xa0   :  { %v204_v46 = vpop.permute.xlu1 %203  ;;  %4783 = vmatprep.subr.mxu0 %v5377_v20 }
  0xa1   :  { %vm209_vm10 = vcmp.eq.s32.totalorder %v204_v46, %v144_v27 }
  0xa2   :  { %v212_v49 = vsel %vm209_vm10, 1.0, %v5377_v20 }
  0xa3   :  { %v215_v51 = vadd.f32 %v212_v49, %v197_v47 }
  0xa5   :  { %v189_v53 = vpop.permute.xlu1 %188  ;;  %4717 = vmatmul.mubr.msk.f32.gmra.mrb[2].mxu0 %vm225_vm5, %v215_v51 }
  0xa6   :  { %vm192_vm13 = vcmp.eq.s32.totalorder %v189_v53, %v144_v27  ;;  %4719 = vmatprep.mubr.msk.f32.mxu0 %vm5376_vm0, %v5377_v20 }
  0xa7   :  { %v195_v55 = vsel %vm192_vm13, 1.0, %v5377_v20  ;;  %vm2229_vm13 = vcmask 195584  }
  0xa8   :  { %v198_v57 = vadd.f32 %v195_v55, %v180_v54  ;;  %v701_v55 = vshrl.u32 %v143_v26, 7 }
  0xaa   :  { %v216_v58 = vadd.f32 %v213_v56, %v198_v57 }
  0xac   :  { %4720 = vmatmul.mubr.msk.f32.gmra.mrb[4].mxu0 %vm225_vm5, %v216_v58 }
  0xad   :  { %4764 = vmatprep.mubr.msk.f32.mxu0 %vm5376_vm0, %v5377_v20 }
 0x16d   :  { %v301_v10 = vpop.f32.mrb[0].mxu0 }
 0x16e   :  { %v315_v12 = vmul.f32 0.25, %v301_v10  ;;  %v4715_v13 = vpop.f32.mrb[1].mxu0 }
 0x170   :  { %4731 = vmatmul.mubr.msk.f32.vlgmr.msra.gmra.mrb[0].mxu1 %vm322_vm14, %v315_v12 }
 0x171   :  { %4733 = vmatprep.mubr.msk.f32.mxu1 %vm5376_vm0, %v5377_v20  ;;  %5077 = vmatpush3.bf16.msra.mxu1 %v5076_v11 }
 0x172   :  { %5078 = vmatprep.subr.bf16.mxu1 %v5373_v7 }
 0x175   :  { %5080 = vmatpush3.bf16.msra.mxu1 %v5079_v17 }
 0x176   :  { %5201 = vmatprep.subr.bf16.mxu1 %v5373_v7 }
 0x178   :  { %v306_v18 = vpop.f32.mrb[2].mxu0 }
 0x179   :  { %v316_v19 = vmul.f32 0.25, %v306_v18  ;;  %v4718_v21 = vpop.f32.mrb[3].mxu0 }
 0x17b   :  { %4734 = vmatmul.mubr.msk.f32.gmra.mrb[2].mxu1 %vm322_vm14, %v316_v19 }
 0x17c   :  { %4736 = vmatprep.mubr.msk.f32.mxu1 %vm5376_vm0, %v5377_v20 }
 0x17f   :  { %v311_v22 = vpop.f32.mrb[4].mxu0 }
 0x180   :  { %v317_v23 = vmul.f32 0.25, %v311_v22  ;;  %v4721_v24 = vpop.f32.mrb[5].mxu0 }
 0x182   :  { %4737 = vmatmul.mubr.msk.f32.gmra.mrb[4].mxu1 %vm322_vm14, %v317_v23 }
 0x183   :  { %4747 = vmatprep.mubr.msk.f32.mxu1 %vm5376_vm0, %v5377_v20 }
 0x243   :  { %v5517_v25 = vpop.f32.mrb[0].mxu1 }
 0x244   :  { %v4732_v27 = vpop.f32.mrb[1].mxu1  ;;  %4748 = vmatmul.mubr.msk.f32.vlgmr.msra.gmra.mrb[6].mxu1 %vm322_vm14, %v5517_v25  ;;  %4765 = vmatmul.mubr.msk.f32.vlgmr.msra.gmra.mrb[6].mxu0 %vm322_vm14, %v5517_v25 }
 0x245   :  { %4750 = vmatprep.mubr.msk.f32.mxu1 %vm5376_vm0, %v5377_v20  ;;  %5203 = vmatpush3.bf16.msra.mxu1 %v5082_v2 }
 0x246   :  { %5202 = vmatprep.subr.bf16.mxu1 %v5373_v7  ;;  %4785 = vmatprep.mubr.msk.f32.mxu0 %vm5376_vm0, %v5377_v20 }
 0x249   :  { %5204 = vmatpush3.bf16.msra.mxu1 %v5085_v5 }
 0x24a   :  { %4773 = vmatprep.subr.mxu1 %v5377_v20 }
 0x24e   :  { %v5529_v28 = vpop.f32.mrb[2].mxu1 }
 0x24f   :  { %v4735_v29 = vpop.f32.mrb[3].mxu1  ;;  %4751 = vmatmul.mubr.msk.f32.gmra.mrb[8].mxu1 %vm322_vm14, %v5529_v28 }
 0x250   :  { %4753 = vmatprep.mubr.msk.f32.mxu1 %vm5376_vm0, %v5377_v20 }
 0x255   :  { %v5535_v30 = vpop.f32.mrb[4].mxu1 }
 0x256   :  { %v4738_v31 = vpop.f32.mrb[5].mxu1  ;;  %4754 = vmatmul.mubr.msk.f32.gmra.mrb[10].mxu1 %vm322_vm14, %v5535_v30  ;;  %4784 = vmatpush3.msra.mxu0 %v5535_v30 }
 0x257   :  { %4767 = vmatprep.mubr.msk.f32.mxu1 %vm5376_vm0, %v5377_v20  ;;  %4793 = vmatprep.subr.mxu0 %v5377_v20 }
 0x25a   :  { %4768 = vmatmul.mubr.msk.f32.vlgmr.msra.gmra.mrb[12].mxu1 %vm322_vm14, %v5529_v28 }
 0x25b   :  { %4774 = vmatpush3.msra.mxu1 %v5517_v25  ;;  %4770 = vmatprep.mubr.msk.f32.mxu1 %vm5376_vm0, %v5377_v20 }
 0x25c   :  { %4778 = vmatprep.subr.mxu1 %v5377_v20 }
 0x25e   :  { %4771 = vmatmul.mubr.msk.f32.gmra.mrb[14].mxu1 %vm322_vm14, %v5535_v30 }
 0x25f   :  { %4775 = vmatprep.mubr.msk.f32.mxu1 %vm5376_vm0, %v5377_v20 }
 0x317   :  { %v491_v32 = vpop.f32.mrb[6].mxu1  ;;  %v575_v33 = vpop.f32.mrb[6].mxu0 }
 0x318   :  { %1784 = vrot.lane.b32.xlu0 %v491_v32, %s5381_s22  ;;  %980 = vrot.lane.b32.xlu1 %v491_v32, %s5382_s23  ;;  %v4749_v34 = vpop.f32.mrb[7].mxu1  ;;  %v4766_v35 = vpop.f32.mrb[7].mxu0 }
 0x31c   :  { %1382 = vrot.lane.b32.xlu1 %v491_v32, %s5383_s24 }
 0x320   :  { %687 = vperm.xlu1 %5263, %v575_v33  }
 0x322   :  { %v496_v36 = vpop.f32.mrb[8].mxu1 }
 0x323   :  { %1384 = vrot.lane.b32.xlu0 %v496_v36, %s5383_s24  ;;  %v4752_v37 = vpop.f32.mrb[9].mxu1 }
 0x324   :  { %5264 = vset.pattern.permute.xlu1 %v5375_v14 }
 0x325   :  { %1086 = vperm.xlu1 %5264, %v575_v33  }
 0x329   :  { %v501_v38 = vpop.f32.mrb[10].mxu1  ;;  %5265 = vset.pattern.permute.xlu1 %v5370_v0 }
 0x32a   :  { %v4755_v39 = vpop.f32.mrb[11].mxu1  ;;  %1488 = vperm.xlu1 %5265, %v575_v33  }
 0x32d   :  { %v580_v40 = vpop.f32.mrb[12].mxu1 }
 0x32e   :  { %v4769_v41 = vpop.f32.mrb[13].mxu1  ;;  %5266 = vset.pattern.permute.xlu1 %v5374_v8 }
 0x32f   :  { %1890 = vperm.xlu1 %5266, %v575_v33  }
 0x331   :  { %v585_v42 = vpop.f32.mrb[14].mxu1 }
 0x332   :  { %v4772_v43 = vpop.f32.mrb[15].mxu1 }
 0x341   :  { %621 = vxpose.xlu0.b32.start.end [1/1] (short) (narrow) %v496_v36, 8 }
 0x358   :  { %589 = vxpose.xlu1.b32.start.end [1/1] (short) (narrow) %v491_v32, 8 }
 0x36a   :  { %984 = vrot.lane.b32.xlu0 %v501_v38, %s5382_s23 }
 0x36b   :  { %5267 = vset.pattern.permute.xlu0 %v5371_v1 }
 0x36e   :  { %1788 = vrot.lane.b32.xlu0 %v501_v38, %s5381_s22 }
 0x372   :  { %692 = vperm.xlu0 %5267, %v580_v40  }
 0x376   :  { %5268 = vset.pattern.permute.xlu0 %v5375_v14  ;;  %982 = vrot.lane.b32.xlu1 %v496_v36, %s5382_s23  ;;  %s4408_s23 = sld [smem:[%s6189_s0 + %s5394_s20]]  }
 0x377   :  { %1090 = vperm.xlu0 %5268, %v580_v40   ;;  %s4427_s20 = sld [smem:[%s6189_s0 + %s5414_s17]]  }
 0x37a   :  { %1786 = vrot.lane.b32.xlu1 %v496_v36, %s5381_s22  ;;  %s5948_s22 = sld [smem:[%s6189_s0 + %s5388_s29]]  }
 0x37b   :  { %5269 = vset.pattern.permute.xlu0 %v5370_v0 }
 0x37c   :  { %1492 = vperm.xlu0 %5269, %v580_v40  }
 0x37e   :  { %1386 = vrot.lane.b32.xlu1 %v501_v38, %s5383_s24  ;;  %s5395_s24 = smov 11  }
 0x380   :  { %5270 = vset.pattern.permute.xlu0 %v5374_v8 }
 0x381   :  { %1894 = vperm.xlu0 %5270, %v580_v40  }
 0x385   :  { %1898 = vperm.xlu0 %5270, %v585_v42  }
 0x38a   :  { %v981_v44 = vpop.permute.xlu1 %980  ;;  %v1785_v45 = vpop.permute.xlu0 %1784 }
 0x38e   :  { %v1383_v8 = vpop.permute.xlu1 %1382 }
 0x395   :  { %v1385_v46 = vpop.permute.xlu0 %1384 }
 0x39f   :  { %v688_v49 = vpop.permute.xlu1 %687 }
 0x3a3   :  { %989 = vxpose.xlu0.b32.start.end [1/1] (short) (narrow) %v981_v44, 8 }
 0x3a4   :  { %v1087_v51 = vpop.permute.xlu1 %1086 }
 0x3a7   :  { %1793 = vxpose.xlu0.b32.start.end [1/1] (short) (narrow) %v1785_v45, 8  ;;  %653 = vxpose.xlu1.b32.start.end [1/1] (short) (narrow) %v501_v38, 8 }
 0x3a9   :  { %v5566_v52 = vpop.permute.xlu1 %1488 }
 0x3ab   :  { %1423 = vxpose.xlu0.b32.start.end [1/1] (short) (narrow) %v1385_v46, 8 }
 0x3ae   :  { %v1891_v53 = vpop.permute.xlu1 %1890 }
 0x3c1   :  { %v637_v47 = vpop.trf.xlu0 }
 0x3c5   :  { %5271 = vset.pattern.permute.xlu1 %v5371_v1 }
 0x3c6   :  { %697 = vperm.xlu1 %5271, %v585_v42  }
 0x3ca   :  { %5272 = vset.pattern.permute.xlu1 %v5375_v14  ;;  %v5569_v14 = vsub.s32 0, %v701_v55 }
 0x3cb   :  { %1094 = vperm.xlu1 %5272, %v585_v42  }
 0x3cc   :  { %v707_v58 = vrot.slane %v637_v47, %v5569_v14 }
 0x3cf   :  { %5273 = vset.pattern.permute.xlu1 %v5370_v0 }
 0x3d0   :  { %1496 = vperm.xlu1 %5273, %v585_v42  }
 0x3d8   :  { %v605_v54 = vpop.trf.xlu1 }
 0x3d9   :  { %v703_v63 = vrot.slane %v605_v54, %v5569_v14 }
 0x3db   :  { %v712_v2 = vadd.f32 %v703_v63, %v688_v49 }
 0x3dc   :  { %v985_v48 = vpop.permute.xlu0 %984 }
 0x3dd   :  { %1053 = vxpose.xlu0.b32.start.end [1/1] (short) (narrow) %v985_v48, 8  ;;  %v718_v4 = vmul.f32 0.2, %v712_v2  ;;  %vm715_vm2 = vcmp.gt.f32.partialorder %v712_v2, 0.0 }
 0x3df   :  { %v5579_v5 = vsel %vm715_vm2, %v712_v2, %v718_v4 }
 0x3e0   :  { %v1789_v50 = vpop.permute.xlu0 %1788  ;;  %v725_v9 = vsel %vm724_vm1, %v5579_v5, -inf }
 0x3e1   :  { %1857 = vxpose.xlu0.b32.start.end [1/1] (short) (narrow) %v1789_v50, 8 }
 0x3e8   :  { %v983_v56 = vpop.permute.xlu1 %982 }
 0x3ec   :  { %v1787_v0 = vpop.permute.xlu1 %1786 }
 0x3f0   :  { %v1387_v60 = vpop.permute.xlu1 %1386 }
 0x3f1   :  { %v693_v57 = vpop.permute.xlu0 %692 }
 0x3f2   :  { %v713_v59 = vadd.f32 %v707_v58, %v693_v57 }
 0x3f4   :  { %v719_v61 = vmul.f32 0.2, %v713_v59  ;;  %vm716_vm15 = vcmp.gt.f32.partialorder %v713_v59, 0.0 }
 0x3f6   :  { %v5572_v62 = vsel %vm716_vm15, %v713_v59, %v719_v61  ;;  %v1091_v3 = vpop.permute.xlu0 %1090  ;;  %vm2225_vm15 = vcmask 130048  }
 0x3f7   :  { %v728_v26 = vsel %vm724_vm1, %v5572_v62, -inf }
 0x3f9   :  { %1391 = vxpose.xlu1.b32.start.end [1/1] (short) (narrow) %v1383_v8, 8 }
 0x3fb   :  { %v1493_v6 = vpop.permute.xlu0 %1492 }
 0x3fd   :  { %1021 = vxpose.xlu1.b32.start.end [1/1] (short) (narrow) %v983_v56, 8 }
 0x400   :  { %v5583_v10 = vpop.permute.xlu0 %1894 }
 0x401   :  { %1825 = vxpose.xlu1.b32.start.end [1/1] (short) (narrow) %v1787_v0, 8 }
 0x404   :  { %v5585_v11 = vpop.permute.xlu0 %1898 }
 0x405   :  { %1455 = vxpose.xlu1.b32.start.end [1/1] (short) (narrow) %v1387_v60, 8 }
 0x40a   :  { %5275 = vset.pattern.permute.xlu0 %v5371_v1 }
 0x40e   :  { %729 = vmax.xlane.f32.xlu0 %v728_v26 }
 0x423   :  { %5274 = vset.pattern.permute.xlu1 %v5371_v1  ;;  %v1005_v12 = vpop.trf.xlu0 }
 0x424   :  { %v1100_v13 = vrot.slane %v1005_v12, %v5569_v14 }
 0x426   :  { %v1109_v17 = vadd.f32 %v1100_v13, %v1087_v51 }
 0x427   :  { %v1809_v15 = vpop.trf.xlu0  ;;  %v669_v16 = vpop.trf.xlu1 }
 0x428   :  { %v711_v1 = vrot.slane %v669_v16, %v5569_v14  ;;  %v1904_v18 = vrot.slane %v1809_v15, %v5569_v14  ;;  %v1115_v23 = vmul.f32 0.2, %v1109_v17  ;;  %vm1112_vm4 = vcmp.gt.f32.partialorder %v1109_v17, 0.0 }
 0x42a   :  { %v1913_v24 = vadd.f32 %v1904_v18, %v1891_v53  ;;  %v5595_v34 = vsel %vm1112_vm4, %v1109_v17, %v1115_v23 }
 0x42b   :  { %v1439_v19 = vpop.trf.xlu0  ;;  %v1121_v36 = vsel %vm724_vm1, %v5595_v34, -inf }
 0x42c   :  { %726 = vmax.xlane.f32.xlu1 %v725_v9  ;;  %v1506_v27 = vrot.slane %v1439_v19, %v5569_v14  ;;  %v1919_v35 = vmul.f32 0.2, %v1913_v24  ;;  %vm1916_vm5 = vcmp.gt.f32.partialorder %v1913_v24, 0.0 }
 0x42e   :  { %v1512_v33 = vadd.f32 %v1506_v27, %v1493_v6  ;;  %v5599_v37 = vsel %vm1916_vm5, %v1913_v24, %v1919_v35  ;;  %vm3012_vm5 = vcmask 1042434  }
 0x42f   :  { %v1925_v39 = vsel %vm724_vm1, %v5599_v37, -inf }
 0x430   :  { %v1518_v38 = vmul.f32 0.2, %v1512_v33  ;;  %vm1515_vm6 = vcmp.gt.f32.partialorder %v1512_v33, 0.0 }
 0x432   :  { %v5603_v40 = vsel %vm1515_vm6, %v1512_v33, %v1518_v38  ;;  %vm3015_vm6 = vcmask 256000  }
 0x433   :  { %v1526_v41 = vsel %vm724_vm1, %v5603_v40, -inf }
 0x445   :  { %v698_v21 = vpop.permute.xlu1 %697 }
 0x446   :  { %v714_v22 = vadd.f32 %v711_v1, %v698_v21 }
 0x448   :  { %v720_v29 = vmul.f32 0.2, %v714_v22  ;;  %vm717_vm3 = vcmp.gt.f32.partialorder %v714_v22, 0.0 }
 0x44a   :  { %v5591_v31 = vsel %vm717_vm3, %v714_v22, %v720_v29  ;;  %v1095_v44 = vpop.permute.xlu1 %1094 }
 0x44b   :  { %v731_v32 = vsel %vm724_vm1, %v5591_v31, -inf }
 0x44c   :  { %732 = vmax.xlane.f32.xlu1 %v731_v32 }
 0x44f   :  { %v1497_v48 = vpop.permute.xlu1 %1496 }
 0x450   :  { %1122 = vmax.xlane.f32.xlu1 %v1121_v36 }
 0x454   :  { %1926 = vmax.xlane.f32.xlu1 %v1925_v39 }
 0x458   :  { %1527 = vmax.xlane.f32.xlu1 %v1526_v41 }
 0x45d   :  { %v1069_v42 = vpop.trf.xlu0 }
 0x45e   :  { %v1108_v43 = vrot.slane %v1069_v42, %v5569_v14 }
 0x460   :  { %v1111_v45 = vadd.f32 %v1108_v43, %v1095_v44 }
 0x461   :  { %v1873_v9 = vpop.trf.xlu0 }
 0x462   :  { %vm1114_vm7 = vcmp.gt.f32.partialorder %v1111_v45, 0.0  ;;  %v1117_v46 = vmul.f32 0.2, %v1111_v45  ;;  %v1912_v15 = vrot.slane %v1873_v9, %v5569_v14 }
 0x464   :  { %v5608_v47 = vsel %vm1114_vm7, %v1111_v45, %v1117_v46  ;;  %v1915_v1 = vadd.f32 %v1912_v15, %v5585_v11 }
 0x465   :  { %v1127_v8 = vsel %vm724_vm1, %v5608_v47, -inf }
 0x466   :  { %1128 = vmax.xlane.f32.xlu1 %v1127_v8  ;;  %v1921_v17 = vmul.f32 0.2, %v1915_v1  ;;  %vm1918_vm12 = vcmp.gt.f32.partialorder %v1915_v1, 0.0 }
 0x468   :  { %v5640_v18 = vsel %vm1918_vm12, %v1915_v1, %v1921_v17 }
 0x469   :  { %v1931_v19 = vsel %vm724_vm1, %v5640_v18, -inf }
 0x477   :  { %1230 = vrot.lane.b32.xlu1 %v5529_v28, %s5384_s25 }
 0x479   :  { %v1407_v49 = vpop.trf.xlu1 }
 0x47a   :  { %v1502_v50 = vrot.slane %v1407_v49, %v5569_v14 }
 0x47b   :  { %1306 = vrot.lane.b32.xlu1 %v5535_v30, %s5384_s25 }
 0x47c   :  { %v1511_v53 = vadd.f32 %v1502_v50, %v5566_v52 }
 0x47d   :  { %v1037_v51 = vpop.trf.xlu1 }
 0x47e   :  { %v1104_v54 = vrot.slane %v1037_v51, %v5569_v14  ;;  %v1517_v58 = vmul.f32 0.2, %v1511_v53  ;;  %vm1514_vm9 = vcmp.gt.f32.partialorder %v1511_v53, 0.0 }
 0x480   :  { %v1110_v55 = vadd.f32 %v1104_v54, %v1091_v3  ;;  %v5626_v63 = vsel %vm1514_vm9, %v1511_v53, %v1517_v58  ;;  %vm4393_vm9 = vcmask 2048  }
 0x481   :  { %v1841_v56 = vpop.trf.xlu1  ;;  %v1523_v3 = vsel %vm724_vm1, %v5626_v63, -inf }
 0x482   :  { %v1908_v0 = vrot.slane %v1841_v56, %v5569_v14  ;;  %vm1113_vm8 = vcmp.gt.f32.partialorder %v1110_v55, 0.0  ;;  %v1116_v57 = vmul.f32 0.2, %v1110_v55 }
 0x484   :  { %v5620_v59 = vsel %vm1113_vm8, %v1110_v55, %v1116_v57  ;;  %v1914_v26 = vadd.f32 %v1908_v0, %v5583_v10 }
 0x485   :  { %v1471_v60 = vpop.trf.xlu1  ;;  %v1124_v61 = vsel %vm724_vm1, %v5620_v59, -inf }
 0x486   :  { %v1510_v52 = vrot.slane %v1471_v60, %v5569_v14  ;;  %1125 = vmax.xlane.f32.xlu0 %v1124_v61  ;;  %v1920_v6 = vmul.f32 0.2, %v1914_v26  ;;  %vm1917_vm11 = vcmp.gt.f32.partialorder %v1914_v26, 0.0 }
 0x488   :  { %v1513_v2 = vadd.f32 %v1510_v52, %v1497_v48  ;;  %v5634_v13 = vsel %vm1917_vm11, %v1914_v26, %v1920_v6 }
 0x489   :  { %v1928_v16 = vsel %vm724_vm1, %v5634_v13, -inf }
 0x48a   :  { %1524 = vmax.xlane.f32.xlu0 %v1523_v3  ;;  %vm1516_vm10 = vcmp.gt.f32.partialorder %v1513_v2, 0.0  ;;  %v1519_v4 = vmul.f32 0.2, %v1513_v2 }
 0x48c   :  { %v5630_v12 = vsel %vm1516_vm10, %v1513_v2, %v1519_v4 }
 0x48d   :  { %v1529_v10 = vsel %vm724_vm1, %v5630_v12, -inf }
 0x48e   :  { %1530 = vmax.xlane.f32.xlu0 %v1529_v10 }
 0x492   :  { %1929 = vmax.xlane.f32.xlu0 %v1928_v16 }
 0x49b   :  { %v730_v22 = vpop.xlane.xlu0 %729 }
 0x49c   :  { %v735_v24 = vsub.f32 %v5572_v62, %v730_v22 }
 0x49e   :  { %v739_v27 = vmul.f32 1.442695, %v735_v24 }
 0x49f   :  { %1932 = vmax.xlane.f32.xlu1 %v1931_v19 }
 0x4a8   :  { %1154 = vrot.lane.b32.xlu0 %v5517_v25, %s5384_s25  ;;  %s5416_s25 = smov 33  }
 0x4ac   :  { %1556 = vrot.lane.b32.xlu0 %v5517_v25, %s5385_s26 }
 0x4b0   :  { %1632 = vrot.lane.b32.xlu1 %v5529_v28, %s5385_s26  ;;  %1708 = vrot.lane.b32.xlu0 %v5535_v30, %s5385_s26 }
 0x4b9   :  { %v727_v21 = vpop.xlane.xlu1 %726 }
 0x4ba   :  { %v734_v11 = vsub.f32 %v5579_v5, %v727_v21 }
 0x4bc   :  { %v737_v23 = vmul.f32 1.442695, %v734_v11 }
 0x4be   :  { %5276 = vpow2.f32 %v737_v23 }
 0x4bf   :  { %5278 = vpow2.f32 %v739_v27 }
 0x4c8   :  { %v5651_v29 = vpop.eup %5276 }
 0x4c9   :  { %v743_v32 = vsel %vm724_vm1, %v5651_v29, 0.0  ;;  %v5655_v33 = vpop.eup %5278 }
 0x4ca   :  { %v746_v35 = vsel %vm724_vm1, %v5655_v33, 0.0 }
 0x4cf   :  { %744 = vadd.xlane.f32.xlu0 %v743_v32 }
 0x4d4   :  { %747 = vadd.xlane.f32.xlu1 %v746_v35 }
 0x4d9   :  { %v733_v5 = vpop.xlane.xlu1 %732 }
 0x4da   :  { %v736_v36 = vsub.f32 %v5591_v31, %v733_v5 }
 0x4dc   :  { %v741_v38 = vmul.f32 1.442695, %v736_v36 }
 0x4dd   :  { %v1123_v62 = vpop.xlane.xlu1 %1122 }
 0x4de   :  { %5280 = vpow2.f32 %v741_v38  ;;  %v1130_v39 = vsub.f32 %v5595_v34, %v1123_v62 }
 0x4e0   :  { %v1133_v41 = vmul.f32 1.442695, %v1130_v39 }
 0x4e1   :  { %v1927_v42 = vpop.xlane.xlu1 %1926 }
 0x4e2   :  { %5282 = vpow2.f32 %v1133_v41  ;;  %v1934_v43 = vsub.f32 %v5599_v37, %v1927_v42 }
 0x4e4   :  { %v1937_v44 = vmul.f32 1.442695, %v1934_v43 }
 0x4e5   :  { %v1528_v45 = vpop.xlane.xlu1 %1527 }
 0x4e6   :  { %5284 = vpow2.f32 %v1937_v44  ;;  %v1533_v46 = vsub.f32 %v5603_v40, %v1528_v45 }
 0x4e8   :  { %v5663_v8 = vpop.eup %5280  ;;  %v1537_v48 = vmul.f32 1.442695, %v1533_v46 }
 0x4e9   :  { %v749_v31 = vsel %vm724_vm1, %v5663_v8, 0.0 }
 0x4ea   :  { %5286 = vpow2.f32 %v1537_v48  ;;  %750 = vadd.xlane.f32.xlu0 %v749_v31 }
 0x4ec   :  { %v5667_v49 = vpop.eup %5282 }
 0x4ed   :  { %v1139_v34 = vsel %vm724_vm1, %v5667_v49, 0.0 }
 0x4ee   :  { %1140 = vadd.xlane.f32.xlu1 %v1139_v34 }
 0x4f0   :  { %v5671_v37 = vpop.eup %5284 }
 0x4f1   :  { %v1943_v50 = vsel %vm724_vm1, %v5671_v37, 0.0 }
 0x4f2   :  { %1944 = vadd.xlane.f32.xlu1 %v1943_v50 }
 0x4f3   :  { %v1129_v40 = vpop.xlane.xlu1 %1128 }
 0x4f4   :  { %v5675_v51 = vpop.eup %5286  ;;  %v1132_v53 = vsub.f32 %v5608_v47, %v1129_v40 }
 0x4f5   :  { %v1544_v54 = vsel %vm724_vm1, %v5675_v51, 0.0 }
 0x4f6   :  { %v1137_v55 = vmul.f32 1.442695, %v1132_v53  ;;  %1545 = vadd.xlane.f32.xlu1 %v1544_v54 }
 0x4f7   :  { %v1231_v6 = vpop.permute.xlu1 %1230 }
 0x4f8   :  { %5288 = vpow2.f32 %v1137_v55 }
 0x4fb   :  { %v1307_v15 = vpop.permute.xlu1 %1306 }
 0x502   :  { %v5680_v56 = vpop.eup %5288 }
 0x503   :  { %v1145_v0 = vsel %vm724_vm1, %v5680_v56, 0.0 }
 0x504   :  { %1146 = vadd.xlane.f32.xlu1 %v1145_v0 }
 0x513   :  { %v1126_v57 = vpop.xlane.xlu0 %1125 }
 0x514   :  { %v1131_v58 = vsub.f32 %v5620_v59, %v1126_v57 }
 0x515   :  { %1958 = vrot.lane.b32.xlu1 %v5517_v25, %s5386_s27 }
 0x516   :  { %v1135_v61 = vmul.f32 1.442695, %v1131_v58 }
 0x517   :  { %v1525_v47 = vpop.xlane.xlu0 %1524 }
 0x518   :  { %v1532_v60 = vsub.f32 %v5626_v63, %v1525_v47 }
 0x51a   :  { %v1535_v26 = vmul.f32 1.442695, %v1532_v60 }
 0x51b   :  { %v1531_v52 = vpop.xlane.xlu0 %1530 }
 0x51c   :  { %5290 = vpow2.f32 %v1535_v26  ;;  %v1534_v2 = vsub.f32 %v5630_v12, %v1531_v52 }
 0x51d   :  { %5292 = vpow2.f32 %v1135_v61 }
 0x51e   :  { %v1539_v9 = vmul.f32 1.442695, %v1534_v2 }
 0x51f   :  { %v1930_v3 = vpop.xlane.xlu0 %1929 }
 0x520   :  { %v1935_v4 = vsub.f32 %v5634_v13, %v1930_v3 }
 0x522   :  { %v1939_v10 = vmul.f32 1.442695, %v1935_v4 }
 0x524   :  { %5294 = vpow2.f32 %v1939_v10 }
 0x525   :  { %5296 = vpow2.f32 %v1539_v9 }
 0x526   :  { %v5690_v25 = vpop.eup %5290 }
 0x527   :  { %v1541_v59 = vsel %vm724_vm1, %v5690_v25, 0.0  ;;  %v5694_v63 = vpop.eup %5292 }
 0x528   :  { %1542 = vadd.xlane.f32.xlu0 %v1541_v59  ;;  %v1142_v12 = vsel %vm724_vm1, %v5694_v63, 0.0 }
 0x52c   :  { %1143 = vadd.xlane.f32.xlu0 %v1142_v12  ;;  %v1933_v16 = vpop.xlane.xlu1 %1932 }
 0x52d   :  { %v1936_v13 = vsub.f32 %v5640_v18, %v1933_v16  ;;  %v1155_v18 = vpop.permute.xlu0 %1154 }
 0x52e   :  { %v5699_v1 = vpop.eup %5294 }
 0x52f   :  { %v1941_v17 = vmul.f32 1.442695, %v1936_v13  ;;  %v1946_v19 = vsel %vm724_vm1, %v5699_v1, 0.0  ;;  %v5703_v21 = vpop.eup %5296 }
 0x530   :  { %1947 = vadd.xlane.f32.xlu0 %v1946_v19  ;;  %v1547_v11 = vsel %vm724_vm1, %v5703_v21, 0.0  ;;  %v1633_v35 = vpop.permute.xlu1 %1632 }
 0x531   :  { %5298 = vpow2.f32 %v1941_v17  ;;  %v5715_v24 = vpop.permute.xlu0 %1556 }
 0x534   :  { %1548 = vadd.xlane.f32.xlu0 %v1547_v11  ;;  %v2247_v11 = vld [vmem:[%s4404_s4 + $0x8] sm:$0xff] }
 0x535   :  { %v5717_v27 = vpop.permute.xlu0 %1708 }
 0x53b   :  { %v5707_v22 = vpop.eup %5298 }
 0x53c   :  { %v1949_v23 = vsel %vm724_vm1, %v5707_v22, 0.0 }
 0x53d   :  { %1950 = vadd.xlane.f32.xlu1 %v1949_v23  ;;  %v2248_v23 = vld [vmem:[%s4404_s4 + $0x10] sm:$0xff] }
 0x54a   :  { %2034 = vrot.lane.b32.xlu0 %v5529_v28, %s5386_s27 }
 0x54e   :  { %2110 = vrot.lane.b32.xlu1 %v5535_v30, %s5386_s27  ;;  %s4409_s27 = sld [smem:[%s6189_s0 + %s5395_s24]]  }
 0x54f   :  { %s4428_s24 = sld [smem:[%s6189_s0 + %s5415_s21]]  }
 0x55c   :  { %v745_v32 = vpop.xlane.xlu0 %744 }
 0x55d   :  { %5300 = vrcp.f32 %v745_v32 }
 0x561   :  { %v748_v5 = vpop.xlane.xlu1 %747 }
 0x562   :  { %5302 = vrcp.f32 %v748_v5 }
 0x567   :  { %v5301_v36 = vpop.eup %5300 }
 0x568   :  { %v753_v38 = vmul.f32 %v5301_v36, %v5651_v29 }
 0x56a   :  { %4776 = vmatmul.mubr.msk.f32.vlgmr.msra.gmra.mrb[16].mxu1 %vm724_vm1, %v753_v38 }
 0x56b   :  { %4779 = vmatpush3.msra.mxu1 %v5529_v28  ;;  %4780 = vmatprep.mubr.msk.f32.mxu1 %vm5376_vm0, %v5377_v20 }
 0x56c   :  { %v5303_v30 = vpop.eup %5302  ;;  %4788 = vmatprep.subr.mxu1 %v5377_v20 }
 0x56d   :  { %v755_v62 = vmul.f32 %v5303_v30, %v5655_v33 }
 0x56f   :  { %4781 = vmatmul.mubr.msk.f32.vlgmr.msra.gmra.mrb[18].mxu1 %vm724_vm1, %v755_v62 }
 0x570   :  { %4789 = vmatpush3.msra.mxu1 %v1155_v18  ;;  %4790 = vmatprep.mubr.msk.f32.mxu1 %vm5376_vm0, %v5377_v20  ;;  %v2249_v18 = vld [vmem:[%s4404_s4 + $0x18] sm:$0xff] }
 0x571   :  { %4798 = vmatprep.subr.mxu1 %v5377_v20 }
 0x577   :  { %v751_v29 = vpop.xlane.xlu0 %750 }
 0x578   :  { %5304 = vrcp.f32 %v751_v29 }
 0x57b   :  { %v1141_v39 = vpop.xlane.xlu1 %1140 }
 0x57c   :  { %5306 = vrcp.f32 %v1141_v39  ;;  %v2339_v39 = vld [vmem:[%s4405_s8] sm:$0xff] }
 0x57f   :  { %v1945_v43 = vpop.xlane.xlu1 %1944 }
 0x582   :  { %v5305_v28 = vpop.eup %5304 }
 0x583   :  { %v757_v41 = vmul.f32 %v5305_v28, %v5663_v8  ;;  %v1546_v44 = vpop.xlane.xlu1 %1545  ;;  %v2340_v28 = vld [vmem:[%s4405_s8 + $0x8] sm:$0xff] }
 0x585   :  { %4786 = vmatmul.mubr.msk.f32.vlgmr.msra.gmra.mrb[8].mxu0 %vm724_vm1, %v757_v41  ;;  %v2341_v41 = vld [vmem:[%s4405_s8 + $0x10] sm:$0xff] }
 0x586   :  { %v5307_v42 = vpop.eup %5306  ;;  %4794 = vmatpush3.msra.mxu0 %v1231_v6  ;;  %4795 = vmatprep.mubr.msk.f32.mxu0 %vm5376_vm0, %v5377_v20 }
 0x587   :  { %v1149_v33 = vmul.f32 %v5307_v42, %v5667_v49  ;;  %4803 = vmatprep.subr.mxu0 %v5377_v20 }
 0x589   :  { %4791 = vmatmul.mubr.msk.f32.vlgmr.msra.gmra.mrb[20].mxu1 %vm724_vm1, %v1149_v33  ;;  %v5094_v33 = vpack.c.bf16 %v2340_v28, %v2339_v39 }
 0x58a   :  { %4799 = vmatpush3.msra.mxu1 %v1307_v15  ;;  %4800 = vmatprep.mubr.msk.f32.mxu1 %vm5376_vm0, %v5377_v20 }
 0x58b   :  { %4808 = vmatprep.subr.mxu1 %v5377_v20 }
 0x591   :  { %v1147_v45 = vpop.xlane.xlu1 %1146 }
 0x592   :  { %5308 = vrcp.f32 %v1147_v45 }
 0x593   :  { %5310 = vrcp.f32 %v1546_v44 }
 0x594   :  { %5312 = vrcp.f32 %v1945_v43  ;;  %v2342_v43 = vld [vmem:[%s4405_s8 + $0x18] sm:$0xff]  ;;  %s5398_s8 = smov 17  }
 0x595   :  { %v1959_v34 = vpop.permute.xlu1 %1958  ;;  %v5097_v44 = vpack.c.bf16 %v2342_v43, %v2341_v41  ;;  %s5925_s11 = sld [smem:[%s6189_s0 + %s5398_s8]]   ;;  %s5412_s8 = smov 31  }
 0x59c   :  { %v5309_v46 = vpop.eup %5308 }
 0x59d   :  { %v1153_v8 = vmul.f32 %v5309_v46, %v5680_v56  ;;  %v5311_v48 = vpop.eup %5310 }
 0x59e   :  { %v1553_v31 = vmul.f32 %v5311_v48, %v5675_v51  ;;  %v5313_v49 = vpop.eup %5312 }
 0x59f   :  { %4801 = vmatmul.mubr.msk.f32.vlgmr.msra.gmra.mrb[22].mxu1 %vm724_vm1, %v1153_v8  ;;  %v1953_v50 = vmul.f32 %v5313_v49, %v5671_v37 }
 0x5a0   :  { %4809 = vmatpush3.msra.mxu1 %v1633_v35  ;;  %4810 = vmatprep.mubr.msk.f32.mxu1 %vm5376_vm0, %v5377_v20 }
 0x5a1   :  { %4818 = vmatprep.subr.mxu1 %v5377_v20 }
 0x5a3   :  { %4811 = vmatmul.mubr.msk.f32.vlgmr.msra.gmra.mrb[24].mxu1 %vm724_vm1, %v1553_v31  ;;  %v4456_v31 = vld [vmem:[%s4403_s12] ss:$0 sm:$0xff]  ;;  %s5399_s12 = smov 13  }
 0x5a4   :  { %4819 = vmatpush3.msra.mxu1 %v1959_v34  ;;  %4820 = vmatprep.mubr.msk.f32.mxu1 %vm5376_vm0, %v5377_v20 }
 0x5a5   :  { %4828 = vmatprep.subr.mxu1 %v5377_v20 }
 0x5a7   :  { %4821 = vmatmul.mubr.msk.f32.vlgmr.msra.gmra.mrb[26].mxu1 %vm724_vm1, %v1953_v50 }
 0x5a8   :  { %4830 = vmatprep.mubr.msk.f32.mxu1 %vm5376_vm0, %v5377_v20 }
 0x5b5   :  { %v1543_v40 = vpop.xlane.xlu0 %1542 }
 0x5b9   :  { %v1144_v51 = vpop.xlane.xlu0 %1143 }
 0x5ba   :  { %5314 = vrcp.f32 %v1144_v51  ;;  %v2529_v51 = vld [vmem:[%s4406_s15 + $0x8] sm:$0xff] }
 0x5bb   :  { %5316 = vrcp.f32 %v1543_v40  ;;  %v2528_v40 = vld [vmem:[%s4406_s15] sm:$0xff] }
 0x5bd   :  { %v1948_v53 = vpop.xlane.xlu0 %1947 }
 0x5c1   :  { %v1549_v54 = vpop.xlane.xlu0 %1548 }
 0x5c2   :  { %5318 = vrcp.f32 %v1549_v54 }
 0x5c3   :  { %5320 = vrcp.f32 %v1948_v53 }
 0x5c4   :  { %v5315_v55 = vpop.eup %5314 }
 0x5c5   :  { %v1151_v56 = vmul.f32 %v5315_v55, %v5694_v63  ;;  %v5317_v0 = vpop.eup %5316  ;;  %v2035_v26 = vpop.permute.xlu0 %2034  ;;  %v5100_v55 = vpack.c.bf16 %v2529_v51, %v2528_v40 }
 0x5c6   :  { %v1551_v37 = vmul.f32 %v5317_v0, %v5690_v25 }
 0x5c7   :  { %4796 = vmatmul.mubr.msk.f32.vlgmr.msra.gmra.mrb[10].mxu0 %vm724_vm1, %v1151_v56 }
 0x5c8   :  { %4804 = vmatpush3.msra.mxu0 %v5715_v24  ;;  %4805 = vmatprep.mubr.msk.f32.mxu0 %vm5376_vm0, %v5377_v20  ;;  %v5091_v24 = vpack.c.bf16 %v2249_v18, %v2248_v23 }
 0x5c9   :  { %4813 = vmatprep.subr.mxu0 %v5377_v20 }
 0x5ca   :  { %v1951_v57 = vpop.xlane.xlu1 %1950 }
 0x5cb   :  { %5322 = vrcp.f32 %v1951_v57  ;;  %4806 = vmatmul.mubr.msk.f32.vlgmr.msra.gmra.mrb[12].mxu0 %vm724_vm1, %v1551_v37  ;;  %v2530_v37 = vld [vmem:[%s4406_s15 + $0x10] sm:$0xff]  ;;  %v2531_v57 = vld [vmem:[%s4406_s15 + $0x18] sm:$0xff]  ;;  %s4411_s15 = sld [smem:[%s6189_s0 + %s5399_s12]]   ;;  %s5405_s12 = smov 23  }
 0x5cc   :  { %v5319_v58 = vpop.eup %5318  ;;  %4814 = vmatpush3.msra.mxu0 %v5717_v27  ;;  %4815 = vmatprep.mubr.msk.f32.mxu0 %vm5376_vm0, %v5377_v20 }
 0x5cd   :  { %v1555_v47 = vmul.f32 %v5319_v58, %v5703_v21  ;;  %4823 = vmatprep.subr.mxu0 %v5377_v20  ;;  %v5321_v60 = vpop.eup %5320  ;;  %v2246_v21 = vld [vmem:[%s4404_s4] sm:$0xff]  ;;  %s5397_s4 = smov 15  }
 0x5ce   :  { %v2111_v61 = vpop.permute.xlu1 %2110  ;;  %v1955_v52 = vmul.f32 %v5321_v60, %v5699_v1  ;;  %v5103_v60 = vpack.c.bf16 %v2531_v57, %v2530_v37  ;;  %s5914_s7 = sld [smem:[%s6189_s0 + %s5397_s4]]  }
 0x5cf   :  { %4816 = vmatmul.mubr.msk.f32.vlgmr.msra.gmra.mrb[14].mxu0 %vm724_vm1, %v1555_v47  ;;  %4829 = vmatpush3.msra.mxu1 %v2111_v61 }
 0x5d0   :  { %4824 = vmatpush3.msra.mxu0 %v2035_v26  ;;  %4825 = vmatprep.mubr.msk.f32.mxu0 %vm5376_vm0, %v5377_v20 }
 0x5d1   :  { %5087 = vmatprep.subr.bf16.mxu0 %v5373_v7  ;;  %5093 = vmatprep.subr.bf16.mxu1 %v5373_v7 }
 0x5d3   :  { %4826 = vmatmul.mubr.msk.f32.vlgmr.msra.gmra.mrb[16].mxu0 %vm724_vm1, %v1955_v52 }
 0x5d4   :  { %4841 = vmatprep.mubr.msk.f32.mxu0 %vm5376_vm0, %v5377_v20 }
 0x5d5   :  { %v5323_v2 = vpop.eup %5322 }
 0x5d6   :  { %v1957_v3 = vmul.f32 %v5323_v2, %v5707_v22  ;;  %v5088_v22 = vpack.c.bf16 %v2247_v11, %v2246_v21 }
 0x5d8   :  { %4831 = vmatmul.mubr.msk.f32.vlgmr.msra.gmra.mrb[28].mxu1 %vm724_vm1, %v1957_v3  ;;  %5089 = vmatpush3.bf16.msra.mxu0 %v5088_v22 }
 0x5d9   :  { %4858 = vmatprep.mubr.msk.f32.mxu1 %vm5376_vm0, %v5377_v20  ;;  %5090 = vmatprep.subr.bf16.mxu0 %v5373_v7 }
 0x5da   :  { %5095 = vmatpush3.bf16.msra.mxu1 %v5094_v33 }
 0x5db   :  { %5096 = vmatprep.subr.bf16.mxu1 %v5373_v7 }
 0x5dc   :  { %5092 = vmatpush3.bf16.msra.mxu0 %v5091_v24 }
 0x5dd   :  { %5099 = vmatprep.subr.bf16.mxu0 %v5373_v7 }
 0x5de   :  { %5098 = vmatpush3.bf16.msra.mxu1 %v5097_v44 }
 0x5df   :  { %4884 = vmatprep.subr.mxu1 %v5377_v20 }
 0x63d   :  { %v5780_v4 = vpop.f32.mrb[16].mxu1 }
 0x63e   :  { %v4777_v6 = vpop.f32.mrb[17].mxu1 }
 0x642   :  { %v5782_v9 = vpop.f32.mrb[18].mxu1 }
 0x643   :  { %v4782_v10 = vpop.f32.mrb[19].mxu1 }
 0x658   :  { %v5784_v25 = vpop.f32.mrb[8].mxu0 }
 0x659   :  { %v4787_v59 = vpop.f32.mrb[9].mxu0 }
 0x65c   :  { %v1226_v63 = vpop.f32.mrb[20].mxu1 }
 0x65d   :  { %2189 = vrot.lane.b32.xlu0 %v1226_v63, %s5387_s28  ;;  %v4792_v15 = vpop.f32.mrb[21].mxu1 }
 0x672   :  { %v1378_v12 = vpop.f32.mrb[22].mxu1 }
 0x673   :  { %v4802_v16 = vpop.f32.mrb[23].mxu1 }
 0x676   :  { %v1704_v13 = vpop.f32.mrb[24].mxu1 }
 0x677   :  { %2203 = vrot.lane.b32.xlu0 %v1704_v13, %s5388_s29  ;;  %v4812_v1 = vpop.f32.mrb[25].mxu1 }
 0x67a   :  { %v2030_v17 = vpop.f32.mrb[26].mxu1 }
 0x67b   :  { %2213 = vrot.lane.b32.xlu0 %v2030_v17, %s5389_s30  ;;  %v4822_v19 = vpop.f32.mrb[27].mxu1 }
 0x67f   :  { %2193 = vrot.lane.b32.xlu0 %v1378_v12, %s5387_s28 }
 0x69a   :  { %v1302_v27 = vpop.f32.mrb[10].mxu0 }
 0x69b   :  { %2191 = vrot.lane.b32.xlu1 %v1302_v27, %s5387_s28  ;;  %v4797_v32 = vpop.f32.mrb[11].mxu0  ;;  %s5396_s28 = smov 12  }
 0x69c   :  { %s4410_s3 = sld [smem:[%s6189_s0 + %s5396_s28]]  }
 0x69e   :  { %v1628_v35 = vpop.f32.mrb[12].mxu0 }
 0x69f   :  { %2201 = vrot.lane.b32.xlu1 %v1628_v35, %s5388_s29  ;;  %v4807_v5 = vpop.f32.mrb[13].mxu0 }
 0x6a2   :  { %v1780_v36 = vpop.f32.mrb[14].mxu0 }
 0x6a3   :  { %v4817_v38 = vpop.f32.mrb[15].mxu0 }
 0x6a6   :  { %v2106_v30 = vpop.f32.mrb[16].mxu0 }
 0x6a7   :  { %2215 = vrot.lane.b32.xlu1 %v2106_v30, %s5389_s30  ;;  %v4827_v62 = vpop.f32.mrb[17].mxu0 }
 0x6ab   :  { %v2182_v29 = vpop.f32.mrb[28].mxu1  ;;  %2205 = vrot.lane.b32.xlu1 %v1780_v36, %s5388_s29  ;;  %s5402_s29 = smov 21  }
 0x6ac   :  { %2217 = vrot.lane.b32.xlu0 %v2182_v29, %s5389_s30  ;;  %v4832_v42 = vpop.f32.mrb[29].mxu1  ;;  %s5969_s1 = sld [smem:[%s6189_s0 + %s5402_s29]]  }
 0x6cf   :  { %v2190_v45 = vpop.permute.xlu0 %2189 }
 0x6d0   :  { %v2222_v48 = vsel %vm724_vm1, %v5780_v4, %v2190_v45 }
 0x6e9   :  { %v2204_v46 = vpop.permute.xlu0 %2203 }
 0x6ed   :  { %v2214_v34 = vpop.permute.xlu0 %2213 }
 0x6f1   :  { %v2194_v61 = vpop.permute.xlu0 %2193 }
 0x6f2   :  { %v2224_v2 = vsel %vm724_vm1, %v5784_v25, %v2194_v61 }
 0x70d   :  { %v2192_v8 = vpop.permute.xlu1 %2191 }
 0x70e   :  { %v2223_v56 = vsel %vm724_vm1, %v5782_v9, %v2192_v8 }
 0x70f   :  { %v2227_v58 = vsel %vm2225_vm15, %v2223_v56, %v2204_v46 }
 0x711   :  { %v2202_v49 = vpop.permute.xlu1 %2201 }
 0x712   :  { %v2226_v50 = vsel %vm2225_vm15, %v2222_v48, %v2202_v49 }
 0x713   :  { %v2230_v53 = vsel %vm2229_vm13, %v2226_v50, %v2214_v34 }
 0x714   :  { %v2240_v54 = vadd.f32 %v4456_v31, %v2230_v53 }
 0x716   :  { %v2243_v0 = vmax.f32 %v2240_v54, 0.0 }
 0x718   :  { %4842 = vmatmul.mubr.msk.f32.vlgmr.msra.gmra.mrb[18].mxu0 %vm322_vm14, %v2243_v0 }
 0x719   :  { %v2216_v47 = vpop.permute.xlu1 %2215  ;;  %4844 = vmatprep.mubr.msk.f32.mxu0 %vm5376_vm0, %v5377_v20  ;;  %5101 = vmatpush3.bf16.msra.mxu0 %v5100_v55 }
 0x71a   :  { %v2231_v26 = vsel %vm2229_vm13, %v2227_v58, %v2216_v47  ;;  %5102 = vmatprep.subr.bf16.mxu0 %v5373_v7 }
 0x71b   :  { %v2241_v52 = vadd.f32 %v4456_v31, %v2231_v26 }
 0x71d   :  { %v2244_v3 = vmax.f32 %v2241_v52, 0.0  ;;  %v2206_v4 = vpop.permute.xlu1 %2205  ;;  %5104 = vmatpush3.bf16.msra.mxu0 %v5103_v60 }
 0x71e   :  { %v2228_v6 = vsel %vm2225_vm15, %v2224_v2, %v2206_v4  ;;  %v2218_v9 = vpop.permute.xlu0 %2217  ;;  %5105 = vmatprep.subr.bf16.mxu0 %v5373_v7 }
 0x71f   :  { %v2232_v10 = vsel %vm2229_vm13, %v2228_v6, %v2218_v9  ;;  %4845 = vmatmul.mubr.msk.f32.gmra.mrb[20].mxu0 %vm322_vm14, %v2244_v3 }
 0x720   :  { %v2242_v59 = vadd.f32 %v4456_v31, %v2232_v10  ;;  %4847 = vmatprep.mubr.msk.f32.mxu0 %vm5376_vm0, %v5377_v20 }
 0x722   :  { %v2245_v63 = vmax.f32 %v2242_v59, 0.0 }
 0x724   :  { %4848 = vmatmul.mubr.msk.f32.gmra.mrb[22].mxu0 %vm322_vm14, %v2245_v63 }
 0x725   :  { %4875 = vmatprep.mubr.msk.f32.mxu0 %vm5376_vm0, %v5377_v20 }
 0x7eb   :  { %v2325_v25 = vpop.f32.mrb[18].mxu0 }
 0x7ec   :  { %v4843_v15 = vpop.f32.mrb[19].mxu0  ;;  %4859 = vmatmul.mubr.msk.f32.vlgmr.msra.gmra.mrb[30].mxu1 %vm322_vm14, %v2325_v25  ;;  %4876 = vmatmul.mubr.msk.f32.vlgmr.msra.gmra.mrb[24].mxu0 %vm322_vm14, %v2325_v25 }
 0x7ed   :  { %4885 = vmatpush3.msra.mxu1 %v2325_v25  ;;  %4861 = vmatprep.mubr.msk.f32.mxu1 %vm5376_vm0, %v5377_v20 }
 0x7ee   :  { %4878 = vmatprep.mubr.msk.f32.mxu0 %vm5376_vm0, %v5377_v20  ;;  %4889 = vmatprep.subr.mxu1 %v5377_v20 }
 0x7f2   :  { %v5842_v12 = vpop.f32.mrb[20].mxu0 }
 0x7f3   :  { %v4846_v16 = vpop.f32.mrb[21].mxu0  ;;  %4862 = vmatmul.mubr.msk.f32.gmra.mrb[32].mxu1 %vm322_vm14, %v5842_v12  ;;  %4879 = vmatmul.mubr.msk.f32.gmra.mrb[26].mxu0 %vm322_vm14, %v5842_v12 }
 0x7f4   :  { %4864 = vmatprep.mubr.msk.f32.mxu1 %vm5376_vm0, %v5377_v20  ;;  %4881 = vmatprep.mubr.msk.f32.mxu0 %vm5376_vm0, %v5377_v20  ;;  %v4466_v16 = vld [vmem:[%s4407_s19] ss:$0 sm:$0xff]  ;;  %s4412_s19 = sld [smem:[%s6189_s0 + %s5400_s16]]   ;;  %s5406_s16 = smov 22  }
 0x7f7   :  { %v5852_v13 = vpop.f32.mrb[22].mxu0 }
 0x7f8   :  { %v4849_v1 = vpop.f32.mrb[23].mxu0  ;;  %4865 = vmatmul.mubr.msk.f32.gmra.mrb[34].mxu1 %vm322_vm14, %v5852_v13  ;;  %4882 = vmatmul.mubr.msk.f32.gmra.mrb[28].mxu0 %vm322_vm14, %v5852_v13 }
 0x7f9   :  { %4886 = vmatprep.mubr.msk.f32.mxu1 %vm5376_vm0, %v5377_v20  ;;  %4907 = vmatprep.mubr.msk.f32.mxu0 %vm5376_vm0, %v5377_v20 }
 0x8bf   :  { %v2418_v17 = vpop.f32.mrb[30].mxu1  ;;  %v2598_v19 = vpop.f32.mrb[24].mxu0 }
 0x8c0   :  { %v4860_v21 = vpop.f32.mrb[31].mxu1  ;;  %2614 = vperm.xlu1 %5274, %v2598_v19   ;;  %v4877_v11 = vpop.f32.mrb[25].mxu0 }
 0x8c6   :  { %v2423_v22 = vpop.f32.mrb[32].mxu1  ;;  %v2603_v23 = vpop.f32.mrb[26].mxu0 }
 0x8c7   :  { %v4863_v18 = vpop.f32.mrb[33].mxu1  ;;  %2619 = vperm.xlu0 %5275, %v2603_v23   ;;  %v4880_v24 = vpop.f32.mrb[27].mxu0 }
 0x8cb   :  { %v2428_v27 = vpop.f32.mrb[34].mxu1  ;;  %v2608_v32 = vpop.f32.mrb[28].mxu0 }
 0x8cc   :  { %v4866_v35 = vpop.f32.mrb[35].mxu1  ;;  %2624 = vperm.xlu1 %5274, %v2608_v32   ;;  %v4883_v5 = vpop.f32.mrb[29].mxu0 }
 0x8e5   :  { %2464 = vxpose.xlu0.b32.start.end [1/1] (short) (narrow) %v2423_v22, 8 }
 0x8e9   :  { %2496 = vxpose.xlu0.b32.start.end [1/1] (short) (narrow) %v2428_v27, 8 }
 0x8f5   :  { %2432 = vxpose.xlu1.b32.start.end [1/1] (short) (narrow) %v2418_v17, 8 }
 0x93f   :  { %v2615_v62 = vpop.permute.xlu1 %2614 }
 0x946   :  { %v2620_v36 = vpop.permute.xlu0 %2619 }
 0x94b   :  { %v2625_v42 = vpop.permute.xlu1 %2624 }
 0x965   :  { %v2480_v38 = vpop.trf.xlu0 }
 0x966   :  { %v2634_v30 = vrot.slane %v2480_v38, %v5569_v14 }
 0x968   :  { %v2640_v29 = vadd.f32 %v2634_v30, %v2620_v36 }
 0x969   :  { %v2512_v39 = vpop.trf.xlu0 }
 0x96a   :  { %v2646_v28 = vmul.f32 0.2, %v2640_v29  ;;  %v2638_v41 = vrot.slane %v2512_v39, %v5569_v14  ;;  %vm2643_vm2 = vcmp.gt.f32.partialorder %v2640_v29, 0.0 }
 0x96c   :  { %v2641_v33 = vadd.f32 %v2638_v41, %v2625_v42  ;;  %v2649_v43 = vsel %vm2643_vm2, %v2640_v29, %v2646_v28 }
 0x96d   :  { %v2654_v44 = vsel %vm724_vm1, %v2649_v43, -inf }
 0x96e   :  { %v2647_v45 = vmul.f32 0.2, %v2641_v33  ;;  %2655 = vmax.xlane.f32.xlu1 %v2654_v44  ;;  %vm2644_vm3 = vcmp.gt.f32.partialorder %v2641_v33, 0.0 }
 0x970   :  { %v2650_v46 = vsel %vm2644_vm3, %v2641_v33, %v2647_v45 }
 0x971   :  { %v2657_v8 = vsel %vm724_vm1, %v2650_v46, -inf }
 0x972   :  { %2658 = vmax.xlane.f32.xlu1 %v2657_v8 }
 0x975   :  { %v2448_v48 = vpop.trf.xlu1 }
 0x976   :  { %v2630_v31 = vrot.slane %v2448_v48, %v5569_v14 }
 0x978   :  { %v2639_v49 = vadd.f32 %v2630_v31, %v2615_v62 }
 0x97a   :  { %vm2642_vm4 = vcmp.gt.f32.partialorder %v2639_v49, 0.0  ;;  %v2645_v34 = vmul.f32 0.2, %v2639_v49 }
 0x97c   :  { %v2648_v50 = vsel %vm2642_vm4, %v2639_v49, %v2645_v34 }
 0x97d   :  { %v2651_v40 = vsel %vm724_vm1, %v2648_v50, -inf }
 0x97e   :  { %2652 = vmax.xlane.f32.xlu0 %v2651_v40 }
 0x9fb   :  { %v2656_v51 = vpop.xlane.xlu1 %2655 }
 0x9fc   :  { %v2661_v53 = vsub.f32 %v2649_v43, %v2656_v51  ;;  %v4470_v51 = vld [vmem:[%s4408_s23] ss:$0 sm:$0xff]  ;;  %s5401_s23 = smov 18  }
 0x9fd   :  { %s5957_s26 = sld [smem:[%s6189_s0 + %s5401_s23]]  }
 0x9fe   :  { %v2665_v54 = vmul.f32 1.442695, %v2661_v53  ;;  %s6045_s23 = sld [smem:[%s6189_s0 + %s5389_s30]]   ;;  %s5408_s30 = smov 25  }
 0x9ff   :  { %v2659_v55 = vpop.xlane.xlu1 %2658  ;;  %s6066_s29 = sld [smem:[%s6189_s0 + %s5408_s30]]  }
 0xa00   :  { %5324 = vpow2.f32 %v2665_v54  ;;  %v2662_v0 = vsub.f32 %v2650_v46, %v2659_v55  ;;  %v4471_v54 = vld [vmem:[%s4409_s27] ss:$0 sm:$0xff]  ;;  %s4431_s27 = sld [smem:[%s6189_s0 + %s5416_s25]]  }
 0xa02   :  { %v2667_v14 = vmul.f32 1.442695, %v2662_v0 }
 0xa0a   :  { %v5325_v56 = vpop.eup %5324 }
 0xa0b   :  { %v2653_v37 = vpop.xlane.xlu0 %2652  ;;  %v2672_v57 = vsel %vm724_vm1, %v5325_v56, 0.0 }
 0xa0c   :  { %v2660_v58 = vsub.f32 %v2648_v50, %v2653_v37  ;;  %2673 = vadd.xlane.f32.xlu1 %v2672_v57 }
 0xa0e   :  { %v2663_v47 = vmul.f32 1.442695, %v2660_v58 }
 0xa10   :  { %5326 = vpow2.f32 %v2663_v47 }
 0xa11   :  { %5328 = vpow2.f32 %v2667_v14 }
 0xa1a   :  { %v5327_v60 = vpop.eup %5326 }
 0xa1b   :  { %v2669_v61 = vsel %vm724_vm1, %v5327_v60, 0.0  ;;  %v5329_v26 = vpop.eup %5328 }
 0xa1c   :  { %2670 = vadd.xlane.f32.xlu0 %v2669_v61  ;;  %v2675_v52 = vsel %vm724_vm1, %v5329_v26, 0.0 }
 0xa20   :  { %2676 = vadd.xlane.f32.xlu0 %v2675_v52 }
 0xa99   :  { %v2674_v2 = vpop.xlane.xlu1 %2673 }
 0xaa9   :  { %v2671_v3 = vpop.xlane.xlu0 %2670 }
 0xaaa   :  { %5330 = vrcp.f32 %v2671_v3 }
 0xaab   :  { %5332 = vrcp.f32 %v2674_v2 }
 0xaad   :  { %v2677_v4 = vpop.xlane.xlu0 %2676 }
 0xaae   :  { %5334 = vrcp.f32 %v2677_v4 }
 0xab4   :  { %v5331_v6 = vpop.eup %5330 }
 0xab5   :  { %v2679_v9 = vmul.f32 %v5331_v6, %v5327_v60  ;;  %v5333_v10 = vpop.eup %5332 }
 0xab6   :  { %v2681_v59 = vmul.f32 %v5333_v10, %v5325_v56 }
 0xab7   :  { %4887 = vmatmul.mubr.msk.f32.vlgmr.msra.gmra.mrb[36].mxu1 %vm724_vm1, %v2679_v9 }
 0xab8   :  { %4890 = vmatpush3.msra.mxu1 %v5842_v12  ;;  %4891 = vmatprep.mubr.msk.f32.mxu1 %vm5376_vm0, %v5377_v20  ;;  %v5335_v63 = vpop.eup %5334 }
 0xab9   :  { %4894 = vmatprep.subr.mxu1 %v5377_v20  ;;  %v2683_v25 = vmul.f32 %v5335_v63, %v5329_v26 }
 0xabb   :  { %4892 = vmatmul.mubr.msk.f32.vlgmr.msra.gmra.mrb[38].mxu1 %vm724_vm1, %v2681_v59 }
 0xabc   :  { %4895 = vmatpush3.msra.mxu1 %v5852_v13  ;;  %4896 = vmatprep.mubr.msk.f32.mxu1 %vm5376_vm0, %v5377_v20 }
 0xabd   :  { %5111 = vmatprep.subr.bf16.mxu1 %v5373_v7 }
 0xabf   :  { %4897 = vmatmul.mubr.msk.f32.vlgmr.msra.gmra.mrb[40].mxu1 %vm724_vm1, %v2683_v25  ;;  %vm3009_vm1 = vcmask 1041409  }
 0xac0   :  { %4918 = vmatprep.mubr.msk.f32.mxu1 %vm5376_vm0, %v5377_v20 }
 0xb8a   :  { %v2760_v15 = vpop.f32.mrb[36].mxu1 }
 0xb8b   :  { %v4888_v12 = vpop.f32.mrb[37].mxu1  ;;  %v2761_v19 = vadd.f32 %v4466_v16, %v2760_v15 }
 0xb8d   :  { %v2912_v18 = vsel %vm322_vm14, %v2761_v19, 0.0 }
 0xb8e   :  { %v2833_v13 = vpop.f32.mrb[38].mxu1 }
 0xb8f   :  { %v2834_v1 = vadd.f32 %v4466_v16, %v2833_v13  ;;  %v4893_v17 = vpop.f32.mrb[39].mxu1 }
 0xb91   :  { %v2915_v21 = vsel %vm322_vm14, %v2834_v1, 0.0 }
 0xb92   :  { %2916 = vadd.xlane.f32.xlu1 %v2915_v21  ;;  %v2906_v11 = vpop.f32.mrb[40].mxu1 }
 0xb93   :  { %v2907_v22 = vadd.f32 %v4466_v16, %v2906_v11  ;;  %v4898_v23 = vpop.f32.mrb[41].mxu1  ;;  %v4472_v11 = vld [vmem:[%s4410_s3] ss:$0 sm:$0xff]  ;;  %s5411_s3 = smov 28  }
 0xb94   :  { %s4426_s6 = sld [smem:[%s6189_s0 + %s5411_s3]]  }
 0xb95   :  { %v2918_v24 = vsel %vm322_vm14, %v2907_v22, 0.0 }
 0xb96   :  { %2913 = vadd.xlane.f32.xlu1 %v2912_v18  ;;  %2919 = vadd.xlane.f32.xlu0 %v2918_v24 }
 0xc1f   :  { %v2917_v27 = vpop.xlane.xlu1 %2916 }
 0xc20   :  { %v2923_v32 = vmul.f32 0.03125, %v2917_v27 }
 0xc22   :  { %v2926_v35 = vsub.f32 %v2834_v1, %v2923_v32 }
 0xc23   :  { %v2914_v5 = vpop.xlane.xlu1 %2913  ;;  %v2920_v36 = vpop.xlane.xlu0 %2919 }
 0xc24   :  { %v2922_v38 = vmul.f32 0.03125, %v2914_v5  ;;  %v2924_v30 = vmul.f32 0.03125, %v2920_v36  ;;  %v2929_v62 = vmul.f32 %v2926_v35, %v2926_v35 }
 0xc26   :  { %v2925_v29 = vsub.f32 %v2761_v19, %v2922_v38  ;;  %v2927_v39 = vsub.f32 %v2907_v22, %v2924_v30  ;;  %v2934_v28 = vsel %vm322_vm14, %v2929_v62, 0.0 }
 0xc27   :  { %2935 = vadd.xlane.f32.xlu0 %v2934_v28 }
 0xc28   :  { %v2928_v41 = vmul.f32 %v2925_v29, %v2925_v29  ;;  %v2930_v42 = vmul.f32 %v2927_v39, %v2927_v39 }
 0xc2a   :  { %v2931_v33 = vsel %vm322_vm14, %v2928_v41, 0.0  ;;  %v2937_v43 = vsel %vm322_vm14, %v2930_v42, 0.0 }
 0xc2b   :  { %2932 = vadd.xlane.f32.xlu0 %v2931_v33  ;;  %2938 = vadd.xlane.f32.xlu1 %v2937_v43 }
 0xcb4   :  { %v2936_v44 = vpop.xlane.xlu0 %2935 }
 0xcb5   :  { %v2941_v45 = vmul.f32 0.03125, %v2936_v44 }
 0xcb7   :  { %v2944_v46 = vadd.f32 1e-05, %v2941_v45 }
 0xcb8   :  { %v2939_v8 = vpop.xlane.xlu1 %2938  ;;  %v2933_v48 = vpop.xlane.xlu0 %2932 }
 0xcb9   :  { %5336 = vrsqrt.f32 %v2944_v46  ;;  %v2942_v31 = vmul.f32 0.03125, %v2939_v8  ;;  %v2940_v49 = vmul.f32 0.03125, %v2933_v48 }
 0xcbb   :  { %v2945_v34 = vadd.f32 1e-05, %v2942_v31  ;;  %v2943_v50 = vadd.f32 1e-05, %v2940_v49 }
 0xcbd   :  { %5338 = vrsqrt.f32 %v2945_v34 }
 0xcbe   :  { %5340 = vrsqrt.f32 %v2943_v50 }
 0xcc3   :  { %v5337_v40 = vpop.eup %5336 }
 0xcc4   :  { %v2950_v53 = vmul.f32 %v5337_v40, %v2926_v35  ;;  %v3073_v40 = vld [vmem:[%s5914_s7] sm:$0xff] }
 0xcc6   :  { %v2959_v55 = vmul.f32 %v4470_v51, %v2950_v53  ;;  %v3075_v53 = vld [vmem:[%s5914_s7 + $0x10] sm:$0xff] }
 0xcc7   :  { %v5339_v56 = vpop.eup %5338 }
 0xcc8   :  { %v5341_v0 = vpop.eup %5340  ;;  %v2968_v37 = vadd.f32 %v4471_v54, %v2959_v55  ;;  %v2951_v57 = vmul.f32 %v5339_v56, %v2927_v39  ;;  %v3076_v55 = vld [vmem:[%s5914_s7 + $0x18] sm:$0xff] }
 0xcc9   :  { %v2949_v58 = vmul.f32 %v5341_v0, %v2925_v29  ;;  %v5109_v56 = vpack.c.bf16 %v3076_v55, %v3075_v53  ;;  %v3163_v0 = vld [vmem:[%s5925_s11] sm:$0xff] }
 0xcca   :  { %v2977_v14 = vsel %vm322_vm14, %v2968_v37, 0.0  ;;  %v2960_v47 = vmul.f32 %v4470_v51, %v2951_v57  ;;  %v3164_v37 = vld [vmem:[%s5925_s11 + $0x8] sm:$0xff]  ;;  %v3323_v55 = vld [vmem:[%s5969_s1] sm:$0xff] }
 0xccb   :  { %v2978_v60 = vrot.slane %v2977_v14, 4  ;;  %v2958_v61 = vmul.f32 %v4470_v51, %v2949_v58  ;;  %v3074_v51 = vld [vmem:[%s5914_s7 + $0x8] sm:$0xff]  ;;  %v5112_v57 = vpack.c.bf16 %v3164_v37, %v3163_v0  ;;  %v3325_v0 = vld [vmem:[%s5969_s1 + $0x10] sm:$0xff] }
 0xccc   :  { %v2969_v26 = vadd.f32 %v4471_v54, %v2960_v47 }
 0xccd   :  { %v2967_v52 = vadd.f32 %v4471_v54, %v2958_v61  ;;  %v2979_v2 = vadd.f32 %v2978_v60, %v2977_v14  ;;  %v5106_v54 = vpack.c.bf16 %v3074_v51, %v3073_v40  ;;  %5113 = vmatpush3.bf16.msra.mxu1 %v5112_v57  ;;  %v3326_v57 = vld [vmem:[%s5969_s1 + $0x18] sm:$0xff] }
 0xcce   :  { %v2984_v3 = vsel %vm322_vm14, %v2969_v26, 0.0  ;;  %5114 = vmatprep.subr.bf16.mxu1 %v5373_v7 }
 0xccf   :  { %v2970_v4 = vsel %vm322_vm14, %v2967_v52, 0.0  ;;  %v2980_v6 = vrot.slane %v2979_v2, 2  ;;  %v2985_v9 = vrot.slane %v2984_v3, 4  ;;  %5107 = vmatpush3.bf16.msra.mxu0 %v5106_v54 }
 0xcd0   :  { %v2971_v10 = vrot.slane %v2970_v4, 4  ;;  %5108 = vmatprep.subr.bf16.mxu0 %v5373_v7 }
 0xcd1   :  { %v2981_v59 = vadd.f32 %v2980_v6, %v2979_v2  ;;  %v2986_v63 = vadd.f32 %v2985_v9, %v2984_v3  ;;  %v4473_v2 = vld [vmem:[%s4411_s15] ss:$0 sm:$0xff]  ;;  %s6006_s15 = sld [smem:[%s6189_s0 + %s5405_s12]]  }
 0xcd2   :  { %v2972_v25 = vadd.f32 %v2971_v10, %v2970_v4  ;;  %s4429_s12 = sld [smem:[%s6189_s0 + %s5412_s8]]  }
 0xcd3   :  { %v2982_v15 = vrot.slane %v2981_v59, 1  ;;  %v2987_v12 = vrot.slane %v2986_v63, 2  ;;  %5110 = vmatpush3.bf16.msra.mxu0 %v5109_v56  ;;  %v3324_v56 = vld [vmem:[%s5969_s1 + $0x8] sm:$0xff] }
 0xcd4   :  { %v2973_v16 = vrot.slane %v2972_v25, 2  ;;  %5117 = vmatprep.subr.bf16.mxu0 %v5373_v7  ;;  %v5118_v37 = vpack.c.bf16 %v3324_v56, %v3323_v55 }
 0xcd5   :  { %v2983_v13 = vadd.f32 %v2982_v15, %v2981_v59  ;;  %v2988_v1 = vadd.f32 %v2987_v12, %v2986_v63  ;;  %v4474_v59 = vld [vmem:[%s4412_s19] ss:$0 sm:$0xff]  ;;  %s6035_s19 = sld [smem:[%s6189_s0 + %s5406_s16]]  }
 0xcd6   :  { %v2974_v17 = vadd.f32 %v2973_v16, %v2972_v25  ;;  %s4430_s16 = sld [smem:[%s6189_s0 + %s5413_s13]]  }
 0xcd7   :  { %v2989_v19 = vrot.slane %v2988_v1, 1  ;;  %v2993_v21 = vmul.f32 0.125, %v2983_v13 }
 0xcd8   :  { %v2975_v22 = vrot.slane %v2974_v17, 1 }
 0xcd9   :  { %v2990_v23 = vadd.f32 %v2989_v19, %v2988_v1  ;;  %v3001_v24 = vadd.f32 %v4472_v11, %v2993_v21  ;;  %v3166_v19 = vld [vmem:[%s5925_s11 + $0x18] sm:$0xff] }
 0xcda   :  { %v2976_v18 = vadd.f32 %v2975_v22, %v2974_v17  ;;  %v3165_v17 = vld [vmem:[%s5925_s11 + $0x10] sm:$0xff] }
 0xcdb   :  { %v2994_v27 = vmul.f32 0.125, %v2990_v23  ;;  %v3008_v36 = vrot.slane %v3001_v24, 7  ;;  %v5115_v21 = vpack.c.bf16 %v3166_v19, %v3165_v17  ;;  %v3440_v19 = vld [vmem:[%s6006_s15] sm:$0xff] }
 0xcdc   :  { %v2992_v32 = vmul.f32 0.125, %v2976_v18 }
 0xcdd   :  { %v3002_v35 = vadd.f32 %v4472_v11, %v2994_v27  ;;  %5116 = vmatpush3.bf16.msra.mxu1 %v5115_v21  ;;  %v3441_v21 = vld [vmem:[%s6006_s15 + $0x8] sm:$0xff] }
 0xcde   :  { %v3000_v5 = vadd.f32 %v4472_v11, %v2992_v32  ;;  %5123 = vmatprep.subr.bf16.mxu1 %v5373_v7  ;;  %v4475_v11 = vld [vmem:[%s5948_s22] ss:$0 sm:$0xff] }
 0xcdf   :  { %v3011_v38 = vrot.slane %v3002_v35, 6 }
 0xce0   :  { %v3010_v30 = vsel %vm3009_vm1, %v3008_v36, %v3000_v5 }
 0xce1   :  { %v3013_v62 = vsel %vm3012_vm5, %v3011_v38, %v3010_v30 }
 0xce2   :  { %v3016_v29 = vsel %vm3015_vm6, %v3013_v62, 0.0 }
 0xce3   :  { %3017 = vadd.xlane.f32.xlu1 %v3016_v29 }
 0xd70   :  { %v3018_v39 = vpop.xlane.xlu1 %3017 }
 0xd71   :  { %v3019_v28 = vmul.f32 0.03125, %v3018_v39 }
 0xd73   :  { %v3021_v41 = vrot.slane %v3019_v28, 1  ;;  %v3022_v42 = vrot.slane %v3019_v28, 2  ;;  %v3026_v33 = vsub.f32 %v3000_v5, %v3019_v28 }
 0xd75   :  { %v3027_v43 = vsub.f32 %v3001_v24, %v3021_v41  ;;  %v3028_v44 = vsub.f32 %v3002_v35, %v3022_v42  ;;  %v3029_v8 = vmul.f32 %v3026_v33, %v3026_v33  ;;  %v4477_v24 = vld [vmem:[%s5957_s26] ss:$0 sm:$0xff] }
 0xd77   :  { %v3030_v45 = vmul.f32 %v3027_v43, %v3027_v43  ;;  %v3031_v46 = vmul.f32 %v3028_v44, %v3028_v44 }
 0xd79   :  { %v3035_v48 = vrot.slane %v3030_v45, 7  ;;  %v3037_v31 = vrot.slane %v3031_v46, 6 }
 0xd7b   :  { %v3036_v49 = vsel %vm3009_vm1, %v3035_v48, %v3029_v8 }
 0xd7c   :  { %v3038_v34 = vsel %vm3012_vm5, %v3037_v31, %v3036_v49 }
 0xd7d   :  { %v3040_v50 = vsel %vm3015_vm6, %v3038_v34, 0.0 }
 0xd7e   :  { %3041 = vadd.xlane.f32.xlu0 %v3040_v50 }
 0xe0b   :  { %v3042_v58 = vpop.xlane.xlu0 %3041 }
 0xe0c   :  { %v3043_v14 = vmul.f32 0.03125, %v3042_v58  ;;  %v5121_v58 = vpack.c.bf16 %v3326_v57, %v3325_v0 }
 0xe0e   :  { %v3044_v47 = vadd.f32 1e-05, %v3043_v14 }
 0xe10   :  { %5342 = vrsqrt.f32 %v3044_v47 }
 0xe1a   :  { %v5343_v60 = vpop.eup %5342 }
 0xe1b   :  { %v3047_v61 = vrot.slane %v5343_v60, 1  ;;  %v3048_v26 = vrot.slane %v5343_v60, 2  ;;  %v3052_v52 = vmul.f32 %v5343_v60, %v3026_v33 }
 0xe1d   :  { %v3053_v3 = vmul.f32 %v3047_v61, %v3027_v43  ;;  %v3054_v4 = vmul.f32 %v3048_v26, %v3028_v44  ;;  %v3061_v6 = vmul.f32 %v4473_v2, %v3052_v52 }
 0xe1f   :  { %v3062_v9 = vmul.f32 %v4473_v2, %v3053_v3  ;;  %v3063_v10 = vmul.f32 %v4473_v2, %v3054_v4  ;;  %v3070_v15 = vadd.f32 %v4474_v59, %v3061_v6  ;;  %v4479_v3 = vld [vmem:[%s5980_s5] ss:$0 sm:$0xff] }
 0xe21   :  { %v3071_v63 = vadd.f32 %v4474_v59, %v3062_v9  ;;  %v3072_v25 = vadd.f32 %v4474_v59, %v3063_v10 }
 0xe23   :  { %v3087_v12 = vrot.slane %v3071_v63, 7  ;;  %v3089_v16 = vrot.slane %v3072_v25, 6 }
 0xe25   :  { %v3088_v13 = vsel %vm3009_vm1, %v3087_v12, %v3070_v15 }
 0xe26   :  { %v3090_v1 = vsel %vm3012_vm5, %v3089_v16, %v3088_v13 }
 0xe27   :  { %4908 = vmatmul.mubr.msk.f32.vlgmr.msra.gmra.mrb[30].mxu0 %vm322_vm14, %v3090_v1 }
 0xe28   :  { %4929 = vmatprep.mubr.msk.f32.mxu0 %vm5376_vm0, %v5377_v20  ;;  %5119 = vmatpush3.bf16.msra.mxu0 %v5118_v37 }
 0xe29   :  { %5120 = vmatprep.subr.bf16.mxu0 %v5373_v7 }
 0xe2c   :  { %5122 = vmatpush3.bf16.msra.mxu0 %v5121_v58 }
 0xe2d   :  { %5147 = vmatprep.subr.bf16.mxu0 %v5373_v7 }
 0xefa   :  { %v3159_v22 = vpop.f32.mrb[30].mxu0 }
 0xefb   :  { %v3160_v23 = vadd.f32 %v4475_v11, %v3159_v22  ;;  %v4909_v18 = vpop.f32.mrb[31].mxu0  ;;  %v5124_v11 = vpack.c.bf16 %v3441_v21, %v3440_v19  ;;  %v3442_v22 = vld [vmem:[%s6006_s15 + $0x10] sm:$0xff] }
 0xefd   :  { %4919 = vmatmul.mubr.msk.f32.vlgmr.msra.gmra.mrb[42].mxu1 %vm322_vm14, %v3160_v23  ;;  %v3443_v23 = vld [vmem:[%s6006_s15 + $0x18] sm:$0xff] }
 0xefe   :  { %4964 = vmatprep.mubr.msk.f32.mxu1 %vm5376_vm0, %v5377_v20  ;;  %5125 = vmatpush3.bf16.msra.mxu1 %v5124_v11  ;;  %v5127_v18 = vpack.c.bf16 %v3443_v23, %v3442_v22 }
 0xeff   :  { %5126 = vmatprep.subr.bf16.mxu1 %v5373_v7 }
 0xf02   :  { %5128 = vmatpush3.bf16.msra.mxu1 %v5127_v18 }
 0xf03   :  { %5129 = vmatprep.subr.bf16.mxu1 %v5373_v7 }
 0xfd0   :  { %v3243_v27 = vpop.f32.mrb[42].mxu1 }
 0xfd1   :  { %v3244_v32 = vadd.f32 %v4477_v24, %v3243_v27  ;;  %v4920_v35 = vpop.f32.mrb[43].mxu1  ;;  %v3444_v24 = vld [vmem:[%s6006_s15 + $0x20] sm:$0xff]  ;;  %v3445_v27 = vld [vmem:[%s6006_s15 + $0x28] sm:$0xff] }
 0xfd2   :  { %v3446_v35 = vld [vmem:[%s6006_s15 + $0x30] sm:$0xff] }
 0xfd3   :  { %v3248_v5 = vrot.slane %v3244_v32, 1  ;;  %v3249_v36 = vrot.slane %v3244_v32, 2  ;;  %v3253_v62 = vadd.f32 %v3244_v32, %v3070_v15  ;;  %v5130_v32 = vpack.c.bf16 %v3445_v27, %v3444_v24 }
 0xfd5   :  { %v3254_v38 = vadd.f32 %v3248_v5, %v3071_v63  ;;  %v3255_v30 = vadd.f32 %v3249_v36, %v3072_v25  ;;  %v4480_v63 = vld [vmem:[%s5985_s10] ss:$0 sm:$0xff]  ;;  %5131 = vmatpush3.bf16.msra.mxu1 %v5130_v32  ;;  %v3447_v5 = vld [vmem:[%s6006_s15 + $0x38] sm:$0xff] }
 0xfd6   :  { %5132 = vmatprep.subr.bf16.mxu1 %v5373_v7  ;;  %v5133_v36 = vpack.c.bf16 %v3447_v5, %v3446_v35 }
 0xfd7   :  { %v3261_v29 = vrot.slane %v3254_v38, 7  ;;  %v3263_v39 = vrot.slane %v3255_v30, 6 }
 0xfd9   :  { %v3262_v28 = vsel %vm3009_vm1, %v3261_v29, %v3253_v62  ;;  %5134 = vmatpush3.bf16.msra.mxu1 %v5133_v36  ;;  %v3450_v29 = vld [vmem:[%s6006_s15 + $0x50] sm:$0xff] }
 0xfda   :  { %v3264_v41 = vsel %vm3012_vm5, %v3263_v39, %v3262_v28  ;;  %5135 = vmatprep.subr.bf16.mxu1 %v5373_v7  ;;  %v3451_v39 = vld [vmem:[%s6006_s15 + $0x58] sm:$0xff] }
 0xfdb   :  { %v3266_v42 = vsel %vm3015_vm6, %v3264_v41, 0.0  ;;  %v5139_v28 = vpack.c.bf16 %v3451_v39, %v3450_v29  ;;  %v3452_v41 = vld [vmem:[%s6006_s15 + $0x60] sm:$0xff] }
 0xfdc   :  { %3267 = vadd.xlane.f32.xlu1 %v3266_v42  ;;  %v3453_v42 = vld [vmem:[%s6006_s15 + $0x68] sm:$0xff] }
0x1069   :  { %v3268_v33 = vpop.xlane.xlu1 %3267 }
0x106a   :  { %v3269_v43 = vmul.f32 0.03125, %v3268_v33  ;;  %v5142_v33 = vpack.c.bf16 %v3453_v42, %v3452_v41 }
0x106c   :  { %v3271_v44 = vrot.slane %v3269_v43, 1  ;;  %v3272_v45 = vrot.slane %v3269_v43, 2  ;;  %v3276_v46 = vsub.f32 %v3253_v62, %v3269_v43  ;;  %v3454_v43 = vld [vmem:[%s6006_s15 + $0x70] sm:$0xff] }
0x106e   :  { %v3277_v8 = vsub.f32 %v3254_v38, %v3271_v44  ;;  %v3278_v48 = vsub.f32 %v3255_v30, %v3272_v45  ;;  %v3279_v34 = vmul.f32 %v3276_v46, %v3276_v46  ;;  %v3448_v38 = vld [vmem:[%s6006_s15 + $0x40] sm:$0xff]  ;;  %v3449_v30 = vld [vmem:[%s6006_s15 + $0x48] sm:$0xff]  ;;  %v3455_v44 = vld [vmem:[%s6006_s15 + $0x78] sm:$0xff] }
0x106f   :  { %v5136_v62 = vpack.c.bf16 %v3449_v30, %v3448_v38  ;;  %v5145_v45 = vpack.c.bf16 %v3455_v44, %v3454_v43  ;;  %v4486_v43 = vld [vmem:[%s5914_s7 + $0x20] sm:$0xff]  ;;  %v4487_v44 = vld [vmem:[%s5914_s7 + $0x28] sm:$0xff] }
0x1070   :  { %v3280_v31 = vmul.f32 %v3277_v8, %v3277_v8  ;;  %v3281_v49 = vmul.f32 %v3278_v48, %v3278_v48 }
0x1071   :  { %5137 = vmatpush3.bf16.msra.mxu1 %v5136_v62 }
0x1072   :  { %v3285_v50 = vrot.slane %v3280_v31, 7  ;;  %v3287_v40 = vrot.slane %v3281_v49, 6  ;;  %5138 = vmatprep.subr.bf16.mxu1 %v5373_v7 }
0x1074   :  { %v3286_v51 = vsel %vm3009_vm1, %v3285_v50, %v3279_v34 }
0x1075   :  { %v3288_v53 = vsel %vm3012_vm5, %v3287_v40, %v3286_v51  ;;  %5140 = vmatpush3.bf16.msra.mxu1 %v5139_v28 }
0x1076   :  { %v3290_v54 = vsel %vm3015_vm6, %v3288_v53, 0.0  ;;  %5141 = vmatprep.subr.bf16.mxu1 %v5373_v7 }
0x1077   :  { %3291 = vadd.xlane.f32.xlu0 %v3290_v54 }
0x1079   :  { %5143 = vmatpush3.bf16.msra.mxu1 %v5142_v33 }
0x107a   :  { %5144 = vmatprep.subr.bf16.mxu1 %v5373_v7 }
0x107d   :  { %5146 = vmatpush3.bf16.msra.mxu1 %v5145_v45  ;;  %v4488_v45 = vld [vmem:[%s5914_s7 + $0x30] sm:$0xff] }
0x107e   :  { %5189 = vmatprep.subr.bf16.mxu1 %v5373_v7 }
0x1104   :  { %v3292_v14 = vpop.xlane.xlu0 %3291 }
0x1105   :  { %v3293_v47 = vmul.f32 0.03125, %v3292_v14 }
0x1107   :  { %v3294_v60 = vadd.f32 1e-05, %v3293_v47 }
0x1109   :  { %5344 = vrsqrt.f32 %v3294_v60 }
0x1113   :  { %v5345_v61 = vpop.eup %5344 }
0x1114   :  { %v3297_v26 = vrot.slane %v5345_v61, 1  ;;  %v3298_v52 = vrot.slane %v5345_v61, 2  ;;  %v3302_v2 = vmul.f32 %v5345_v61, %v3276_v46  ;;  %v4481_v46 = vld [vmem:[%s6035_s19] ss:$0 sm:$0xff] }
0x1116   :  { %v3303_v4 = vmul.f32 %v3297_v26, %v3277_v8  ;;  %v3304_v6 = vmul.f32 %v3298_v52, %v3278_v48  ;;  %v3311_v9 = vmul.f32 %v4479_v3, %v3302_v2 }
0x1118   :  { %v3312_v10 = vmul.f32 %v4479_v3, %v3303_v4  ;;  %v3313_v59 = vmul.f32 %v4479_v3, %v3304_v6  ;;  %v5993_v12 = vadd.f32 %v4480_v63, %v3311_v9  ;;  %v5407_v3 = vmov -1.0  }
0x111a   :  { %v5989_v25 = vadd.f32 %v4480_v63, %v3312_v10  ;;  %v5991_v15 = vadd.f32 %v4480_v63, %v3313_v59  ;;  %v4483_v63 = vld [vmem:[%s6045_s23] ss:$0 sm:$0xff] }
0x111c   :  { %v3337_v16 = vrot.slane %v5989_v25, 7  ;;  %v3339_v13 = vrot.slane %v5991_v15, 6 }
0x111e   :  { %v3338_v1 = vsel %vm3009_vm1, %v3337_v16, %v5993_v12 }
0x111f   :  { %v3340_v17 = vsel %vm3012_vm5, %v3339_v13, %v3338_v1 }
0x1120   :  { %4930 = vmatmul.mubr.msk.f32.vlgmr.msra.gmra.mrb[32].mxu0 %vm322_vm14, %v3340_v17 }
0x1121   :  { %4975 = vmatprep.mubr.msk.f32.mxu0 %vm5376_vm0, %v5377_v20 }
0x11f3   :  { %v3409_v8 = vpop.f32.mrb[32].mxu0 }
0x11f4   :  { %v3410_v48 = vadd.f32 %v4481_v46, %v3409_v8  ;;  %v4931_v31 = vpop.f32.mrb[33].mxu0  ;;  %v5148_v46 = vpack.c.bf16 %v4487_v44, %v4486_v43  ;;  %v4489_v8 = vld [vmem:[%s5914_s7 + $0x38] sm:$0xff]  ;;  %s5409_s7 = smov 26  }
0x11f5   :  { %s6071_s2 = sld [smem:[%s6189_s0 + %s5409_s7]]  }
0x11f6   :  { %v3414_v49 = vmul.f32 0.70710677, %v3410_v48  ;;  %v3413_v9 = vmul.f32 0.5, %v3410_v48  ;;  %5149 = vmatpush3.bf16.msra.mxu0 %v5148_v46  ;;  %v5151_v48 = vpack.c.bf16 %v4489_v8, %v4488_v45 }
0x11f7   :  { %5150 = vmatprep.subr.bf16.mxu0 %v5373_v7 }
0x11f8   :  { %v3417_v34 = vand.u32 2147483647, %v3414_v49  ;;  %vm3415_vm7 = vcmp.ge.f32.partialorder %v3414_v49, 0.0 }
0x11f9   :  { %v3416_v4 = vsel %vm3415_vm7, 1.0, %v5407_v3 }
0x11fa   :  { %v3418_v50 = vmul.f32 0.3275911, %v3417_v34  ;;  %v3431_v51 = vsub.f32 0.0, %v3417_v34  ;;  %5152 = vmatpush3.bf16.msra.mxu0 %v5151_v48  ;;  %v4504_v48 = vld [vmem:[%s5969_s1 + $0x20] sm:$0xff] }
0x11fb   :  { %5153 = vmatprep.subr.bf16.mxu0 %v5373_v7 }
0x11fc   :  { %v3419_v40 = vadd.f32 1.0, %v3418_v50  ;;  %v3432_v54 = vmul.f32 %v3431_v51, %v3417_v34 }
0x11fe   :  { %5346 = vrcp.f32 %v3419_v40  ;;  %v3433_v0 = vmul.f32 1.442695, %v3432_v54  ;;  %v4484_v54 = vld [vmem:[%s6066_s29] ss:$0 sm:$0xff] }
0x1200   :  { %5348 = vpow2.f32 %v3433_v0 }
0x1208   :  { %v5347_v53 = vpop.eup %5346 }
0x1209   :  { %v3422_v55 = vmul.f32 1.0614054, %v5347_v53 }
0x120a   :  { %v5349_v26 = vpop.eup %5348 }
0x120b   :  { %v3423_v56 = vadd.f32 -1.4531521, %v3422_v55 }
0x120d   :  { %v3424_v37 = vmul.f32 %v5347_v53, %v3423_v56 }
0x120f   :  { %v3425_v57 = vadd.f32 1.4214138, %v3424_v37 }
0x1211   :  { %v3426_v58 = vmul.f32 %v5347_v53, %v3425_v57 }
0x1213   :  { %v3427_v14 = vadd.f32 -0.28449672, %v3426_v58  ;;  %v4485_v58 = vld [vmem:[%s6071_s2] ss:$0 sm:$0xff] }
0x1215   :  { %v3428_v47 = vmul.f32 %v5347_v53, %v3427_v14 }
0x1217   :  { %v3429_v60 = vadd.f32 0.2548296, %v3428_v47 }
0x1219   :  { %v3430_v61 = vmul.f32 %v5347_v53, %v3429_v60  ;;  %v4493_v60 = vld [vmem:[%s5925_s11 + $0x20] sm:$0xff] }
0x121b   :  { %v3435_v52 = vmul.f32 %v5349_v26, %v3430_v61  ;;  %v4494_v61 = vld [vmem:[%s5925_s11 + $0x28] sm:$0xff] }
0x121d   :  { %v3436_v2 = vsub.f32 1.0, %v3435_v52 }
0x121f   :  { %v3437_v6 = vmul.f32 %v3436_v2, %v3416_v4  ;;  %v5154_v4 = vpack.c.bf16 %v4494_v61, %v4493_v60 }
0x1221   :  { %v3438_v10 = vadd.f32 1.0, %v3437_v6 }
0x1223   :  { %v3439_v59 = vmul.f32 %v3438_v10, %v3413_v9  ;;  %v4495_v10 = vld [vmem:[%s5925_s11 + $0x30] sm:$0xff] }
0x1225   :  { %4965 = vmatmul.mubr.f32.vlgmr.msra.gmra.mrb[44].mxu1 %v3439_v59  ;;  %v4496_v59 = vld [vmem:[%s5925_s11 + $0x38] sm:$0xff]  ;;  %s5410_s11 = smov 27  }
0x1226   :  { %5043 = vmatprep.mubr.msk.f32.mxu1 %vm5376_vm0, %v5377_v20 }
0x12f8   :  { %v3529_v16 = vpop.f32.mrb[44].mxu1 }
0x12f9   :  { %v3530_v13 = vadd.f32 %v4483_v63, %v3529_v16  ;;  %v4966_v1 = vpop.f32.mrb[45].mxu1  ;;  %v5157_v63 = vpack.c.bf16 %v4496_v59, %v4495_v10  ;;  %v4491_v16 = vld [vmem:[%s5948_s22 + $0x1] ss:$0 sm:$0xff] }
0x12fb   :  { %v3534_v17 = vrot.slane %v3530_v13, 1  ;;  %v3535_v19 = vrot.slane %v3530_v13, 2  ;;  %v3539_v22 = vadd.f32 %v3530_v13, %v5993_v12 }
0x12fd   :  { %v3540_v21 = vadd.f32 %v3534_v17, %v5989_v25  ;;  %v3541_v11 = vadd.f32 %v3535_v19, %v5991_v15  ;;  %v4498_v19 = vld [vmem:[%s5957_s26 + $0x1] ss:$0 sm:$0xff] }
0x12ff   :  { %v3547_v23 = vrot.slane %v3540_v21, 7  ;;  %v3549_v18 = vrot.slane %v3541_v11, 6 }
0x1301   :  { %v3548_v24 = vsel %vm3009_vm1, %v3547_v23, %v3539_v22 }
0x1302   :  { %v3550_v27 = vsel %vm3012_vm5, %v3549_v18, %v3548_v24 }
0x1303   :  { %v3552_v32 = vsel %vm3015_vm6, %v3550_v27, 0.0 }
0x1304   :  { %3553 = vadd.xlane.f32.xlu1 %v3552_v32 }
0x1391   :  { %v3554_v35 = vpop.xlane.xlu1 %3553 }
0x1392   :  { %v3555_v5 = vmul.f32 0.03125, %v3554_v35 }
0x1394   :  { %v3557_v36 = vrot.slane %v3555_v5, 1  ;;  %v3558_v25 = vrot.slane %v3555_v5, 2  ;;  %v3562_v38 = vsub.f32 %v3539_v22, %v3555_v5 }
0x1396   :  { %v3563_v15 = vsub.f32 %v3540_v21, %v3557_v36  ;;  %v3564_v12 = vsub.f32 %v3541_v11, %v3558_v25  ;;  %v3565_v29 = vmul.f32 %v3562_v38, %v3562_v38 }
0x1398   :  { %v3566_v30 = vmul.f32 %v3563_v15, %v3563_v15  ;;  %v3567_v62 = vmul.f32 %v3564_v12, %v3564_v12 }
0x139a   :  { %v3571_v39 = vrot.slane %v3566_v30, 7  ;;  %v3573_v28 = vrot.slane %v3567_v62, 6 }
0x139c   :  { %v3572_v41 = vsel %vm3009_vm1, %v3571_v39, %v3565_v29 }
0x139d   :  { %v3574_v42 = vsel %vm3012_vm5, %v3573_v28, %v3572_v41 }
0x139e   :  { %v3576_v33 = vsel %vm3015_vm6, %v3574_v42, 0.0 }
0x139f   :  { %3577 = vadd.xlane.f32.xlu0 %v3576_v33 }
0x142c   :  { %v3578_v31 = vpop.xlane.xlu0 %3577 }
0x142d   :  { %v3579_v49 = vmul.f32 0.03125, %v3578_v31  ;;  %v4505_v31 = vld [vmem:[%s5969_s1 + $0x28] sm:$0xff] }
0x142f   :  { %v3580_v34 = vadd.f32 1e-05, %v3579_v49  ;;  %v4506_v49 = vld [vmem:[%s5969_s1 + $0x30] sm:$0xff] }
0x1431   :  { %5350 = vrsqrt.f32 %v3580_v34  ;;  %v5160_v34 = vpack.c.bf16 %v4505_v31, %v4504_v48 }
0x143b   :  { %v5351_v50 = vpop.eup %5350 }
0x143c   :  { %v3583_v40 = vrot.slane %v5351_v50, 1  ;;  %v3584_v51 = vrot.slane %v5351_v50, 2  ;;  %v3588_v53 = vmul.f32 %v5351_v50, %v3562_v38  ;;  %v4507_v50 = vld [vmem:[%s5969_s1 + $0x38] sm:$0xff]  ;;  %s4425_s1 = sld [smem:[%s6189_s0 + %s5410_s11]]  }
0x143e   :  { %v3589_v55 = vmul.f32 %v3583_v40, %v3563_v15  ;;  %v3590_v56 = vmul.f32 %v3584_v51, %v3564_v12  ;;  %v3597_v0 = vmul.f32 %v4484_v54, %v3588_v53  ;;  %v5163_v40 = vpack.c.bf16 %v4507_v50, %v4506_v49 }
0x1440   :  { %v3598_v37 = vmul.f32 %v4484_v54, %v3589_v55  ;;  %v3599_v57 = vmul.f32 %v4484_v54, %v3590_v56  ;;  %v3606_v26 = vadd.f32 %v4485_v58, %v3597_v0 }
0x1442   :  { %v3607_v14 = vadd.f32 %v4485_v58, %v3598_v37  ;;  %v3608_v47 = vadd.f32 %v4485_v58, %v3599_v57  ;;  %v4502_v57 = vld [vmem:[%s5980_s5 + $0x1] ss:$0 sm:$0xff] }
0x1444   :  { %v3625_v52 = vrot.slane %v3607_v14, 7  ;;  %v3627_v2 = vrot.slane %v3608_v47, 6 }
0x1446   :  { %v3626_v6 = vsel %vm3009_vm1, %v3625_v52, %v3606_v26 }
0x1447   :  { %v3628_v9 = vsel %vm3012_vm5, %v3627_v2, %v3626_v6 }
0x1448   :  { %4976 = vmatmul.mubr.msk.f32.vlgmr.msra.gmra.mrb[34].mxu0 %vm322_vm14, %v3628_v9 }
0x1449   :  { %5155 = vmatpush3.bf16.msra.mxu0 %v5154_v4  ;;  %4986 = vmatprep.mubr.msk.f32.mxu0 %vm5376_vm0, %v5377_v20 }
0x144a   :  { %5156 = vmatprep.subr.bf16.mxu0 %v5373_v7 }
0x144d   :  { %5158 = vmatpush3.bf16.msra.mxu0 %v5157_v63  ;;  %v4511_v63 = vld [vmem:[%s6006_s15 + $0x80] sm:$0xff] }
0x144e   :  { %5159 = vmatprep.subr.bf16.mxu0 %v5373_v7 }
0x151b   :  { %v3697_v13 = vpop.f32.mrb[34].mxu0 }
0x151c   :  { %v3698_v1 = vadd.f32 %v4491_v16, %v3697_v13  ;;  %v4977_v17 = vpop.f32.mrb[35].mxu0  ;;  %v4512_v16 = vld [vmem:[%s6006_s15 + $0x88] sm:$0xff] }
0x151d   :  { %v5166_v13 = vpack.c.bf16 %v4512_v16, %v4511_v63  ;;  %v4514_v17 = vld [vmem:[%s6006_s15 + $0x98] sm:$0xff] }
0x151e   :  { %4987 = vmatmul.mubr.msk.f32.vlgmr.msra.gmra.mrb[36].mxu0 %vm322_vm14, %v3698_v1  ;;  %v4513_v1 = vld [vmem:[%s6006_s15 + $0x90] sm:$0xff] }
0x151f   :  { %4997 = vmatprep.mubr.msk.f32.mxu0 %vm5376_vm0, %v5377_v20  ;;  %5161 = vmatpush3.bf16.msra.mxu0 %v5160_v34 }
0x1520   :  { %5162 = vmatprep.subr.bf16.mxu0 %v5373_v7 }
0x1523   :  { %5164 = vmatpush3.bf16.msra.mxu0 %v5163_v40 }
0x1524   :  { %5165 = vmatprep.subr.bf16.mxu0 %v5373_v7 }
0x15f1   :  { %v3783_v21 = vpop.f32.mrb[36].mxu0 }
0x15f2   :  { %v3784_v11 = vadd.f32 %v4498_v19, %v3783_v21  ;;  %v4988_v22 = vpop.f32.mrb[37].mxu0  ;;  %v5169_v19 = vpack.c.bf16 %v4514_v17, %v4513_v1  ;;  %v4515_v21 = vld [vmem:[%s6006_s15 + $0xa0] sm:$0xff] }
0x15f4   :  { %v3788_v23 = vrot.slane %v3784_v11, 1  ;;  %v3789_v18 = vrot.slane %v3784_v11, 2  ;;  %v3793_v32 = vadd.f32 %v3784_v11, %v3606_v26  ;;  %v4503_v26 = vld [vmem:[%s5985_s10 + $0x1] ss:$0 sm:$0xff]  ;;  %v4516_v11 = vld [vmem:[%s6006_s15 + $0xa8] sm:$0xff] }
0x15f5   :  { %v5172_v22 = vpack.c.bf16 %v4516_v11, %v4515_v21 }
0x15f6   :  { %v3794_v24 = vadd.f32 %v3788_v23, %v3607_v14  ;;  %v3795_v27 = vadd.f32 %v3789_v18, %v3608_v47  ;;  %v4517_v23 = vld [vmem:[%s6006_s15 + $0xb0] sm:$0xff]  ;;  %v4518_v18 = vld [vmem:[%s6006_s15 + $0xb8] sm:$0xff] }
0x15f8   :  { %v3803_v35 = vrot.slane %v3794_v24, 7  ;;  %v3805_v5 = vrot.slane %v3795_v27, 6 }
0x15fa   :  { %v3804_v36 = vsel %vm3009_vm1, %v3803_v35, %v3793_v32 }
0x15fb   :  { %v3806_v25 = vsel %vm3012_vm5, %v3805_v5, %v3804_v36  ;;  %v4521_v5 = vld [vmem:[%s6006_s15 + $0xd0] sm:$0xff]  ;;  %v4522_v36 = vld [vmem:[%s6006_s15 + $0xd8] sm:$0xff] }
0x15fc   :  { %v3808_v38 = vsel %vm3015_vm6, %v3806_v25, 0.0  ;;  %v5181_v25 = vpack.c.bf16 %v4522_v36, %v4521_v5 }
0x15fd   :  { %3809 = vadd.xlane.f32.xlu1 %v3808_v38  ;;  %v4523_v38 = vld [vmem:[%s6006_s15 + $0xe0] sm:$0xff] }
0x168a   :  { %v3810_v15 = vpop.xlane.xlu1 %3809 }
0x168b   :  { %v3811_v12 = vmul.f32 0.03125, %v3810_v15  ;;  %v4524_v15 = vld [vmem:[%s6006_s15 + $0xe8] sm:$0xff] }
0x168d   :  { %v3813_v30 = vrot.slane %v3811_v12, 1  ;;  %v3814_v62 = vrot.slane %v3811_v12, 2  ;;  %v3818_v29 = vsub.f32 %v3793_v32, %v3811_v12  ;;  %v4520_v32 = vld [vmem:[%s6006_s15 + $0xc8] sm:$0xff]  ;;  %v5184_v12 = vpack.c.bf16 %v4524_v15, %v4523_v38 }
0x168f   :  { %v3819_v39 = vsub.f32 %v3794_v24, %v3813_v30  ;;  %v3820_v28 = vsub.f32 %v3795_v27, %v3814_v62  ;;  %v3821_v33 = vmul.f32 %v3818_v29, %v3818_v29  ;;  %v5175_v24 = vpack.c.bf16 %v4518_v18, %v4517_v23  ;;  %v4519_v27 = vld [vmem:[%s6006_s15 + $0xc0] sm:$0xff]  ;;  %v4525_v30 = vld [vmem:[%s6006_s15 + $0xf0] sm:$0xff]  ;;  %v4526_v62 = vld [vmem:[%s6006_s15 + $0xf8] sm:$0xff] }
0x1690   :  { %v5178_v35 = vpack.c.bf16 %v4520_v32, %v4519_v27 }
0x1691   :  { %v3822_v41 = vmul.f32 %v3819_v39, %v3819_v39  ;;  %v3823_v42 = vmul.f32 %v3820_v28, %v3820_v28 }
0x1693   :  { %v3827_v43 = vrot.slane %v3822_v41, 7  ;;  %v3829_v44 = vrot.slane %v3823_v42, 6 }
0x1695   :  { %v3828_v45 = vsel %vm3009_vm1, %v3827_v43, %v3821_v33 }
0x1696   :  { %v3830_v46 = vsel %vm3012_vm5, %v3829_v44, %v3828_v45 }
0x1697   :  { %v3832_v8 = vsel %vm3015_vm6, %v3830_v46, 0.0 }
0x1698   :  { %3833 = vadd.xlane.f32.xlu0 %v3832_v8 }
0x1725   :  { %v3834_v51 = vpop.xlane.xlu0 %3833 }
0x1726   :  { %v3835_v53 = vmul.f32 0.03125, %v3834_v51 }
0x1728   :  { %v3836_v54 = vadd.f32 1e-05, %v3835_v53 }
0x172a   :  { %5352 = vrsqrt.f32 %v3836_v54 }
0x1734   :  { %v5353_v55 = vpop.eup %5352 }
0x1735   :  { %v3839_v56 = vrot.slane %v5353_v55, 1  ;;  %v3840_v0 = vrot.slane %v5353_v55, 2  ;;  %v3844_v37 = vmul.f32 %v5353_v55, %v3818_v29  ;;  %v5187_v29 = vpack.c.bf16 %v4526_v62, %v4525_v30  ;;  %v4157_v30 = vld [vmem:[%s4425_s1] sm:$0xff]  ;;  %v4158_v62 = vld [vmem:[%s4425_s1 + $0x8] sm:$0xff] }
0x1737   :  { %v3845_v58 = vmul.f32 %v3839_v56, %v3819_v39  ;;  %v3846_v14 = vmul.f32 %v3840_v0, %v3820_v28  ;;  %v3853_v47 = vmul.f32 %v4502_v57, %v3844_v37  ;;  %v4509_v39 = vld [vmem:[%s6035_s19 + $0x1] ss:$0 sm:$0xff] }
0x1739   :  { %v3854_v60 = vmul.f32 %v4502_v57, %v3845_v58  ;;  %v3855_v61 = vmul.f32 %v4502_v57, %v3846_v14  ;;  %v6109_v4 = vadd.f32 %v4503_v26, %v3853_v47 }
0x173b   :  { %v6105_v52 = vadd.f32 %v4503_v26, %v3854_v60  ;;  %v6107_v2 = vadd.f32 %v4503_v26, %v3855_v61  ;;  %v4528_v26 = vld [vmem:[%s6045_s23 + $0x1] ss:$0 sm:$0xff] }
0x173d   :  { %v3881_v6 = vrot.slane %v6105_v52, 7  ;;  %v3883_v9 = vrot.slane %v6107_v2, 6 }
0x173f   :  { %v3882_v10 = vsel %vm3009_vm1, %v3881_v6, %v6109_v4 }
0x1740   :  { %v3884_v59 = vsel %vm3012_vm5, %v3883_v9, %v3882_v10 }
0x1741   :  { %4998 = vmatmul.mubr.msk.f32.vlgmr.msra.gmra.mrb[38].mxu0 %vm322_vm14, %v3884_v59 }
0x1742   :  { %5032 = vmatprep.mubr.msk.f32.mxu0 %vm5376_vm0, %v5377_v20  ;;  %5167 = vmatpush3.bf16.msra.mxu0 %v5166_v13 }
0x1743   :  { %5168 = vmatprep.subr.bf16.mxu0 %v5373_v7 }
0x1746   :  { %5170 = vmatpush3.bf16.msra.mxu0 %v5169_v19 }
0x1747   :  { %5171 = vmatprep.subr.bf16.mxu0 %v5373_v7 }
0x174a   :  { %5173 = vmatpush3.bf16.msra.mxu0 %v5172_v22 }
0x174b   :  { %5174 = vmatprep.subr.bf16.mxu0 %v5373_v7 }
0x174e   :  { %5176 = vmatpush3.bf16.msra.mxu0 %v5175_v24 }
0x174f   :  { %5177 = vmatprep.subr.bf16.mxu0 %v5373_v7 }
0x1752   :  { %5179 = vmatpush3.bf16.msra.mxu0 %v5178_v35 }
0x1753   :  { %5180 = vmatprep.subr.bf16.mxu0 %v5373_v7 }
0x1756   :  { %5182 = vmatpush3.bf16.msra.mxu0 %v5181_v25 }
0x1757   :  { %5183 = vmatprep.subr.bf16.mxu0 %v5373_v7 }
0x175a   :  { %5185 = vmatpush3.bf16.msra.mxu0 %v5184_v12 }
0x175b   :  { %5186 = vmatprep.subr.bf16.mxu0 %v5373_v7 }
0x175e   :  { %5188 = vmatpush3.bf16.msra.mxu0 %v5187_v29  ;;  %v4159_v29 = vld [vmem:[%s4425_s1 + $0x10] sm:$0xff] }
0x1814   :  { %v3953_v28 = vpop.f32.mrb[38].mxu0 }
0x1815   :  { %v3954_v41 = vadd.f32 %v4509_v39, %v3953_v28  ;;  %v4999_v42 = vpop.f32.mrb[39].mxu0  ;;  %v5190_v39 = vpack.c.bf16 %v4158_v62, %v4157_v30  ;;  %v4160_v28 = vld [vmem:[%s4425_s1 + $0x18] sm:$0xff] }
0x1817   :  { %v3958_v33 = vmul.f32 0.70710677, %v3954_v41  ;;  %v3957_v47 = vmul.f32 0.5, %v3954_v41  ;;  %5191 = vmatpush3.bf16.msra.mxu1 %v5190_v39  ;;  %v5193_v41 = vpack.c.bf16 %v4160_v28, %v4159_v29 }
0x1818   :  { %5192 = vmatprep.subr.bf16.mxu1 %v5373_v7 }
0x1819   :  { %v3961_v43 = vand.u32 2147483647, %v3958_v33  ;;  %vm3959_vm8 = vcmp.ge.f32.partialorder %v3958_v33, 0.0 }
0x181a   :  { %v3960_v58 = vsel %vm3959_vm8, 1.0, %v5407_v3 }
0x181b   :  { %v3962_v44 = vmul.f32 0.3275911, %v3961_v43  ;;  %v3975_v46 = vsub.f32 0.0, %v3961_v43  ;;  %5194 = vmatpush3.bf16.msra.mxu1 %v5193_v41 }
0x181c   :  { %5195 = vmatprep.subr.bf16.mxu1 %v5373_v7 }
0x181d   :  { %v3963_v45 = vadd.f32 1.0, %v3962_v44  ;;  %v3976_v48 = vmul.f32 %v3975_v46, %v3961_v43 }
0x181f   :  { %5354 = vrcp.f32 %v3963_v45  ;;  %v3977_v34 = vmul.f32 1.442695, %v3976_v48  ;;  %v4531_v48 = vld [vmem:[%s6066_s29 + $0x1] ss:$0 sm:$0xff] }
0x1821   :  { %5356 = vpow2.f32 %v3977_v34 }
0x1829   :  { %v5355_v8 = vpop.eup %5354 }
0x182a   :  { %v3966_v31 = vmul.f32 1.0614054, %v5355_v8 }
0x182b   :  { %v5357_v0 = vpop.eup %5356 }
0x182c   :  { %v3967_v49 = vadd.f32 -1.4531521, %v3966_v31 }
0x182e   :  { %v3968_v50 = vmul.f32 %v5355_v8, %v3967_v49 }
0x1830   :  { %v3969_v40 = vadd.f32 1.4214138, %v3968_v50 }
0x1832   :  { %v3970_v51 = vmul.f32 %v5355_v8, %v3969_v40 }
0x1834   :  { %v3971_v53 = vadd.f32 -0.28449672, %v3970_v51  ;;  %v4532_v51 = vld [vmem:[%s6071_s2 + $0x1] ss:$0 sm:$0xff] }
0x1836   :  { %v3972_v54 = vmul.f32 %v5355_v8, %v3971_v53 }
0x1838   :  { %v3973_v55 = vadd.f32 0.2548296, %v3972_v54 }
0x183a   :  { %v3974_v56 = vmul.f32 %v5355_v8, %v3973_v55 }
0x183c   :  { %v3979_v37 = vmul.f32 %v5357_v0, %v3974_v56 }
0x183e   :  { %v3980_v57 = vsub.f32 1.0, %v3979_v37 }
0x1840   :  { %v3981_v14 = vmul.f32 %v3980_v57, %v3960_v58  ;;  %v4533_v58 = vld [vmem:[%s4426_s6] ss:$0 sm:$0xff] }
0x1842   :  { %v3982_v60 = vadd.f32 1.0, %v3981_v14 }
0x1844   :  { %v3983_v61 = vmul.f32 %v3982_v60, %v3957_v47 }
0x1846   :  { %5033 = vmatmul.mubr.f32.vlgmr.msra.gmra.mrb[40].mxu0 %v3983_v61 }
0x1919   :  { %v4075_v6 = vpop.f32.mrb[40].mxu0 }
0x191a   :  { %v4076_v9 = vadd.f32 %v4528_v26, %v4075_v6  ;;  %v5034_v10 = vpop.f32.mrb[41].mxu0 }
0x191c   :  { %v4080_v59 = vrot.slane %v4076_v9, 1  ;;  %v4081_v63 = vrot.slane %v4076_v9, 2  ;;  %v4085_v1 = vadd.f32 %v4076_v9, %v6109_v4 }
0x191e   :  { %v4086_v16 = vadd.f32 %v4080_v59, %v6105_v52  ;;  %v4087_v13 = vadd.f32 %v4081_v63, %v6107_v2  ;;  %v4304_v63 = vld [vmem:[%s4429_s12 + $0x8] sm:$0xff] }
0x1920   :  { %v4095_v17 = vrot.slane %v4086_v16, 7  ;;  %v4097_v19 = vrot.slane %v4087_v13, 6 }
0x1922   :  { %v4096_v21 = vsel %vm3009_vm1, %v4095_v17, %v4085_v1 }
0x1923   :  { %v4098_v11 = vsel %vm3012_vm5, %v4097_v19, %v4096_v21  ;;  %v72_v19 = vstv %s4430_s16 }
0x1924   :  { %v4100_v22 = vsel %vm3015_vm6, %v4098_v11, 0.0  ;;  %73 = vst [vmem:[#allocation2] sm:$0x1] %v72_v19 }
0x1925   :  { %4101 = vadd.xlane.f32.xlu1 %v4100_v22 }
0x19b2   :  { %v4102_v23 = vpop.xlane.xlu1 %4101 }
0x19b3   :  { %v4103_v18 = vmul.f32 0.03125, %v4102_v23  ;;  %v4535_v23 = vld [vmem:[%s4427_s20] ss:$0 sm:$0xff] }
0x19b5   :  { %v4105_v24 = vrot.slane %v4103_v18, 1  ;;  %v4106_v27 = vrot.slane %v4103_v18, 2  ;;  %v4110_v32 = vsub.f32 %v4085_v1, %v4103_v18  ;;  %v4306_v1 = vld [vmem:[%s4429_s12 + $0x18] sm:$0xff] }
0x19b7   :  { %v4111_v35 = vsub.f32 %v4086_v16, %v4105_v24  ;;  %v4112_v52 = vsub.f32 %v4087_v13, %v4106_v27  ;;  %v4113_v36 = vmul.f32 %v4110_v32, %v4110_v32  ;;  %v4305_v16 = vld [vmem:[%s4429_s12 + $0x10] sm:$0xff]  ;;  %v4536_v24 = vld [vmem:[%s4428_s24] ss:$0 sm:$0xff] }
0x19b8   :  { %v5199_v17 = vpack.c.bf16 %v4306_v1, %v4305_v16 }
0x19b9   :  { %v4114_v5 = vmul.f32 %v4111_v35, %v4111_v35  ;;  %v4115_v2 = vmul.f32 %v4112_v52, %v4112_v52 }
0x19bb   :  { %v4119_v4 = vrot.slane %v4114_v5, 7  ;;  %v4121_v25 = vrot.slane %v4115_v2, 6 }
0x19bd   :  { %v4120_v38 = vsel %vm3009_vm1, %v4119_v4, %v4113_v36 }
0x19be   :  { %v4122_v15 = vsel %vm3012_vm5, %v4121_v25, %v4120_v38 }
0x19bf   :  { %v4124_v12 = vsel %vm3015_vm6, %v4122_v15, 0.0 }
0x19c0   :  { %4125 = vadd.xlane.f32.xlu0 %v4124_v12 }
0x1a4d   :  { %v4126_v42 = vpop.xlane.xlu0 %4125 }
0x1a4e   :  { %v4127_v33 = vmul.f32 0.03125, %v4126_v42 }
0x1a50   :  { %v4128_v43 = vadd.f32 1e-05, %v4127_v33 }
0x1a52   :  { %5358 = vrsqrt.f32 %v4128_v43 }
0x1a5c   :  { %v5359_v44 = vpop.eup %5358 }
0x1a5d   :  { %v4131_v45 = vrot.slane %v5359_v44, 1  ;;  %v4132_v46 = vrot.slane %v5359_v44, 2  ;;  %v4136_v8 = vmul.f32 %v5359_v44, %v4110_v32 }
0x1a5f   :  { %v4137_v31 = vmul.f32 %v4131_v45, %v4111_v35  ;;  %v4138_v49 = vmul.f32 %v4132_v46, %v4112_v52  ;;  %v4145_v34 = vmul.f32 %v4531_v48, %v4136_v8 }
0x1a61   :  { %v4146_v50 = vmul.f32 %v4531_v48, %v4137_v31  ;;  %v4147_v40 = vmul.f32 %v4531_v48, %v4138_v49  ;;  %v4154_v55 = vadd.f32 %v4532_v51, %v4145_v34  ;;  %v4537_v49 = vld [vmem:[#allocation2] ss:$0 sm:$0xff] }
0x1a63   :  { %v4155_v53 = vadd.f32 %v4532_v51, %v4146_v50  ;;  %v4156_v54 = vadd.f32 %v4532_v51, %v4147_v40 }
0x1a65   :  { %v4171_v56 = vrot.slane %v4155_v53, 7  ;;  %v4173_v0 = vrot.slane %v4156_v54, 6 }
0x1a67   :  { %v4172_v37 = vsel %vm3009_vm1, %v4171_v56, %v4154_v55 }
0x1a68   :  { %v4174_v57 = vsel %vm3012_vm5, %v4173_v0, %v4172_v37 }
0x1a69   :  { %5044 = vmatmul.mubr.msk.f32.vlgmr.msra.gmra.mrb[46].mxu1 %vm322_vm14, %v4174_v57 }
0x1a6a   :  { %5054 = vmatprep.mubr.msk.f32.mxu1 %vm5376_vm0, %v5377_v20  ;;  %v4303_v20 = vld [vmem:[%s4429_s12] sm:$0xff] }
0x1a6b   :  { %v5196_v13 = vpack.c.bf16 %v4304_v63, %v4303_v20 }
0x1a6d   :  { %5197 = vmatpush3.bf16.msra.mxu1 %v5196_v13 }
0x1a6e   :  { %5198 = vmatprep.subr.bf16.mxu1 %v5373_v7 }
0x1a71   :  { %5200 = vmatpush3.bf16.msra.mxu1 %v5199_v17 }
0x1b3c   :  { %v4243_v14 = vpop.f32.mrb[46].mxu1 }
0x1b3d   :  { %v4244_v47 = vadd.f32 %v4533_v58, %v4243_v14  ;;  %v5045_v60 = vpop.f32.mrb[47].mxu1 }
0x1b3f   :  { %v4249_v61 = vsel %vm3015_vm6, %v4244_v47, 0.0 }
0x1b40   :  { %4250 = vadd.xlane.f32.xlu1 %v4249_v61 }
0x1bcd   :  { %v4251_v26 = vpop.xlane.xlu1 %4250 }
0x1bce   :  { %v4252_v6 = vmul.f32 0.03125, %v4251_v26 }
0x1bd0   :  { %v4253_v9 = vsub.f32 %v4244_v47, %v4252_v6 }
0x1bd2   :  { %v4254_v10 = vmul.f32 %v4253_v9, %v4253_v9 }
0x1bd4   :  { %v4255_v59 = vsel %vm3015_vm6, %v4254_v10, 0.0 }
0x1bd5   :  { %4256 = vadd.xlane.f32.xlu0 %v4255_v59 }
0x1c62   :  { %v4257_v21 = vpop.xlane.xlu0 %4256 }
0x1c63   :  { %v4258_v11 = vmul.f32 0.03125, %v4257_v21 }
0x1c65   :  { %v4259_v22 = vadd.f32 1e-05, %v4258_v11 }
0x1c67   :  { %5360 = vrsqrt.f32 %v4259_v22 }
0x1c71   :  { %v5361_v7 = vpop.eup %5360 }
0x1c72   :  { %v4261_v18 = vmul.f32 %v5361_v7, %v4253_v9 }
0x1c74   :  { %v4268_v27 = vmul.f32 %v4535_v23, %v4261_v18 }
0x1c76   :  { %v4275_v32 = vadd.f32 %v4536_v24, %v4268_v27 }
0x1c78   :  { %v4277_v35 = vmul.f32 0.70710677, %v4275_v32  ;;  %v4276_v8 = vmul.f32 0.5, %v4275_v32 }
0x1c7a   :  { %v4280_v52 = vand.u32 2147483647, %v4277_v35  ;;  %vm4278_vm0 = vcmp.ge.f32.partialorder %v4277_v35, 0.0 }
0x1c7b   :  { %v4279_v45 = vsel %vm4278_vm0, 1.0, %v5407_v3 }
0x1c7c   :  { %v4281_v5 = vmul.f32 0.3275911, %v4280_v52  ;;  %v4294_v36 = vsub.f32 0.0, %v4280_v52 }
0x1c7e   :  { %v4282_v2 = vadd.f32 1.0, %v4281_v5  ;;  %v4295_v25 = vmul.f32 %v4294_v36, %v4280_v52 }
0x1c80   :  { %5362 = vrcp.f32 %v4282_v2  ;;  %v4296_v12 = vmul.f32 1.442695, %v4295_v25 }
0x1c82   :  { %5364 = vpow2.f32 %v4296_v12 }
0x1c8a   :  { %v5363_v4 = vpop.eup %5362 }
0x1c8b   :  { %v4285_v38 = vmul.f32 1.0614054, %v5363_v4 }
0x1c8c   :  { %v5365_v33 = vpop.eup %5364 }
0x1c8d   :  { %v4286_v15 = vadd.f32 -1.4531521, %v4285_v38 }
0x1c8f   :  { %v4287_v30 = vmul.f32 %v5363_v4, %v4286_v15 }
0x1c91   :  { %v4288_v62 = vadd.f32 1.4214138, %v4287_v30 }
0x1c93   :  { %v4289_v29 = vmul.f32 %v5363_v4, %v4288_v62 }
0x1c95   :  { %v4290_v39 = vadd.f32 -0.28449672, %v4289_v29 }
0x1c97   :  { %v4291_v28 = vmul.f32 %v5363_v4, %v4290_v39 }
0x1c99   :  { %v4292_v41 = vadd.f32 0.2548296, %v4291_v28 }
0x1c9b   :  { %v4293_v42 = vmul.f32 %v5363_v4, %v4292_v41 }
0x1c9d   :  { %v4298_v43 = vmul.f32 %v5365_v33, %v4293_v42 }
0x1c9f   :  { %v4299_v44 = vsub.f32 1.0, %v4298_v43 }
0x1ca1   :  { %v4300_v46 = vmul.f32 %v4299_v44, %v4279_v45 }
0x1ca3   :  { %v4301_v48 = vadd.f32 1.0, %v4300_v46 }
0x1ca5   :  { %v4302_v31 = vmul.f32 %v4301_v48, %v4276_v8 }
0x1ca7   :  { %5055 = vmatmul.mubr.msk.f32.vlgmr.msra.gmra.mrb[48].mxu1 %vm322_vm14, %v4302_v31 }
0x1d7a   :  { %v4383_v34 = vpop.f32.mrb[48].mxu1 }
0x1d7b   :  { %v4384_v50 = vadd.f32 %v4537_v49, %v4383_v34  ;;  %v5056_v40 = vpop.f32.mrb[49].mxu1 }
0x1d7d   :  { %v4539_v51 = vmul.f32 -1.442695, %v4384_v50 }
0x1d7f   :  { %5366 = vpow2.f32 %v4539_v51 }
0x1d89   :  { %v5367_v53 = vpop.eup %5366 }
0x1d8a   :  { %v4390_v54 = vadd.f32 1.0, %v5367_v53 }
0x1d8c   :  { %5368 = vrcp.f32 %v4390_v54 }
0x1d96   :  { %v5369_v3 = vpop.eup %5368 }
0x1d97   :  { %4394 = vst.msk [vmem:[%s4431_s27] sm:$0x7] %vm4393_vm9, %v5369_v3 }

</bundles_post_ra>
